<compile_context>
chip_gen: v7x
topology: tpu7x:2x2x1
jax: 0.10.0
libtpu: 0.0.40
codegen_flags: <defaults>
</compile_context>

<pallas_src>
import functools
import math

import jax
import jax.numpy as jnp
from jax.experimental import pallas as pl
from jax.experimental.pallas import tpu as pltpu

# ------------------------------------------------------------------
# scaled-down DenseNet-121-style config (same topology, small widths)
# ------------------------------------------------------------------
GROWTH = 8
INIT_FEATURES = 16
BLOCK_CONFIG = (2, 2, 2, 2)   # densenet121 uses (6, 12, 24, 16)
BN_SIZE = 4
BN_EPS = 1e-5

_CPARAMS = pltpu.CompilerParams(
    dimension_semantics=("parallel",),
    vmem_limit_bytes=32 * 1024 * 1024,   # safe on v5e/v6e/v7x; tiles here are tiny anyway
)


def _round_up(x, m):
    return ((x + m - 1) // m) * m


# ------------------------------------------------------------------
# Pallas kernels
# ------------------------------------------------------------------
def pallas_fused_matmul(x, w, *, pre=None, post=None, post_relu=False,
                        out_dtype=jnp.bfloat16):
    """out = [relu?]( [relu(x*s1+b1)?] @ w * s2 + b2 )   (bf16 MXU, f32 accumulation).

    pre  = (scale, bias) of shape (K,)  -> fused input BN+ReLU (only used for 1x1 convs)
    post = (scale, bias) of shape (N,)  -> fused epilogue affine (BN or linear bias)
    Tiled over rows: fixed tm, grid = ceil(M/tm), zero-padded ragged tail.
    """
    M, K = x.shape
    N = w.shape[1]
    tm = 256 if M >= 256 else _round_up(M, 8)
    Mp = _round_up(M, tm)
    if Mp != M:
        x = jnp.pad(x, ((0, Mp - M), (0, 0)))

    args = [x, w]
    in_specs = [pl.BlockSpec((tm, K), lambda i: (i, 0)),
                pl.BlockSpec((K, N), lambda i: (0, 0))]
    if pre is not None:
        args += [pre[0].reshape(1, K).astype(jnp.float32),
                 pre[1].reshape(1, K).astype(jnp.float32)]
        in_specs += [pl.BlockSpec((1, K), lambda i: (0, 0)),
                     pl.BlockSpec((1, K), lambda i: (0, 0))]
    if post is not None:
        args += [post[0].reshape(1, N).astype(jnp.float32),
                 post[1].reshape(1, N).astype(jnp.float32)]
        in_specs += [pl.BlockSpec((1, N), lambda i: (0, 0)),
                     pl.BlockSpec((1, N), lambda i: (0, 0))]

    has_pre = pre is not None
    has_post = post is not None

    def kernel(*refs):
        o_ref = refs[-1]
        idx = 0
        x_ref = refs[idx]; idx += 1
        w_ref = refs[idx]; idx += 1
        if has_pre:
            s1, b1 = refs[idx], refs[idx + 1]; idx += 2
            xv = jnp.maximum(x_ref[...].astype(jnp.float32) * s1[...] + b1[...], 0.0)
            xv = xv.astype(jnp.bfloat16)
        else:
            xv = x_ref[...].astype(jnp.bfloat16)
        h = jnp.dot(xv, w_ref[...].astype(jnp.bfloat16),
                    preferred_element_type=jnp.float32)
        if has_post:
            s2, b2 = refs[idx], refs[idx + 1]; idx += 2
            h = h * s2[...] + b2[...]
        if post_relu:
            h = jnp.maximum(h, 0.0)
        o_ref[...] = h.astype(o_ref.dtype)

    out = pl.pallas_call(
        kernel,
        out_shape=jax.ShapeDtypeStruct((Mp, N), out_dtype),
        grid=(Mp // tm,),
        in_specs=in_specs,
        out_specs=pl.BlockSpec((tm, N), lambda i: (i, 0)),
        compiler_params=_CPARAMS,
    )(*args)
    return out[:M] if Mp != M else out


def _max9_kernel(*refs):
    o_ref = refs[-1]
    acc = refs[0][...].astype(jnp.float32)
    for r in refs[1:-1]:
        acc = jnp.maximum(acc, r[...].astype(jnp.float32))
    o_ref[...] = acc.astype(o_ref.dtype)


def pallas_max9(views, out_dtype=jnp.bfloat16):
    """Elementwise max over 9 equal-shaped (M, C) views, tiled over rows."""
    M, C = views[0].shape
    tm = 256 if M >= 256 else _round_up(M, 8)
    Mp = _round_up(M, tm)
    if Mp != M:
        views = [jnp.pad(v, ((0, Mp - M), (0, 0))) for v in views]
    out = pl.pallas_call(
        _max9_kernel,
        out_shape=jax.ShapeDtypeStruct((Mp, C), out_dtype),
        grid=(Mp // tm,),
        in_specs=[pl.BlockSpec((tm, C), lambda i: (i, 0))] * 9,
        out_specs=pl.BlockSpec((tm, C), lambda i: (i, 0)),
        compiler_params=_CPARAMS,
    )(*views)
    return out[:M] if Mp != M else out


def _avg4_bnrelu_kernel(a_ref, b_ref, c_ref, d_ref, s_ref, t_ref, o_ref):
    s = s_ref[...]
    t = t_ref[...]

    def act(r):
        return jnp.maximum(r[...].astype(jnp.float32) * s + t, 0.0)

    o_ref[...] = ((act(a_ref) + act(b_ref) + act(c_ref) + act(d_ref)) * 0.25).astype(o_ref.dtype)


def pallas_avg4_bnrelu(views, scale, bias, out_dtype=jnp.bfloat16):
    """out = mean over 4 views of relu(x*scale+bias)  (fused transition BN-ReLU + 2x2 avgpool)."""
    M, C = views[0].shape
    tm = 256 if M >= 256 else _round_up(M, 8)
    Mp = _round_up(M, tm)
    if Mp != M:
        views = [jnp.pad(v, ((0, Mp - M), (0, 0))) for v in views]
    out = pl.pallas_call(
        _avg4_bnrelu_kernel,
        out_shape=jax.ShapeDtypeStruct((Mp, C), out_dtype),
        grid=(Mp // tm,),
        in_specs=[pl.BlockSpec((tm, C), lambda i: (i, 0))] * 4
                 + [pl.BlockSpec((1, C), lambda i: (0, 0))] * 2,
        out_specs=pl.BlockSpec((tm, C), lambda i: (i, 0)),
        compiler_params=_CPARAMS,
    )(*views, scale.reshape(1, C).astype(jnp.float32),
      bias.reshape(1, C).astype(jnp.float32))
    return out[:M] if Mp != M else out


def _gap_bnrelu_kernel(x_ref, s_ref, b_ref, o_ref):
    x = x_ref[...].astype(jnp.float32)                    # (B, HW, C)
    y = jnp.maximum(x * s_ref[...] + b_ref[...], 0.0)
    o_ref[...] = jnp.mean(y, axis=1)


def pallas_gap_bnrelu(x3d, scale, bias):
    """x3d: (B, H*W, C) -> (B, C): relu(x*scale+bias) then global spatial mean (norm5 fused)."""
    B, HW, C = x3d.shape
    return pl.pallas_call(
        _gap_bnrelu_kernel,
        out_shape=jax.ShapeDtypeStruct((B, C), jnp.float32),
        grid=(1,),
        in_specs=[pl.BlockSpec((B, HW, C), lambda i: (0, 0, 0)),
                  pl.BlockSpec((1, 1, C), lambda i: (0, 0, 0)),
                  pl.BlockSpec((1, 1, C), lambda i: (0, 0, 0))],
        out_specs=pl.BlockSpec((B, C), lambda i: (0, 0)),
        compiler_params=pltpu.CompilerParams(vmem_limit_bytes=32 * 1024 * 1024),
    )(x3d, scale.reshape(1, 1, C).astype(jnp.float32),
      bias.reshape(1, 1, C).astype(jnp.float32))


def _linear_relu_bn_kernel(x_ref, w_ref, b_ref, s_ref, t_ref, o_ref):
    h = jnp.dot(x_ref[...], w_ref[...], preferred_element_type=jnp.float32) + b_ref[...]
    h = jnp.maximum(h, 0.0)
    o_ref[...] = h * s_ref[...] + t_ref[...]


def pallas_linear_relu_bn(x, w, b, scale, shift):
    """Head hidden layer: Linear(+bias) -> ReLU -> BatchNorm1d (eval affine)."""
    M, K = x.shape
    N = w.shape[1]
    return pl.pallas_call(
        _linear_relu_bn_kernel,
        out_shape=jax.ShapeDtypeStruct((M, N), jnp.float32),
        grid=(1,),
        in_specs=[pl.BlockSpec((M, K), lambda i: (0, 0)),
                  pl.BlockSpec((K, N), lambda i: (0, 0)),
                  pl.BlockSpec((1, N), lambda i: (0, 0)),
                  pl.BlockSpec((1, N), lambda i: (0, 0)),
                  pl.BlockSpec((1, N), lambda i: (0, 0))],
        out_specs=pl.BlockSpec((M, N), lambda i: (0, 0)),
        compiler_params=pltpu.CompilerParams(vmem_limit_bytes=32 * 1024 * 1024),
    )(x, w, b.reshape(1, N), scale.reshape(1, N), shift.reshape(1, N))


# ------------------------------------------------------------------
# JAX glue: im2col / strided views feeding the Pallas kernels
# ------------------------------------------------------------------
def _extract_patches(x, kh, kw, stride, pad):
    # x: (B, H, W, C) NHWC -> (B, Ho, Wo, kh*kw, C), zero padded.
    B, H, W, C = x.shape
    xp = jnp.pad(x, ((0, 0), (pad, pad), (pad, pad), (0, 0)))
    Ho = (H + 2 * pad - kh) // stride + 1
    Wo = (W + 2 * pad - kw) // stride + 1
    cols = []
    for i in range(kh):
        for j in range(kw):
            cols.append(xp[:, i:i + stride * (Ho - 1) + 1:stride,
                           j:j + stride * (Wo - 1) + 1:stride, :])
    patches = jnp.stack(cols, axis=3)
    return patches, Ho, Wo
# TODO(synk): im2col still duplicates kh*kw activation data in HBM for the 3x3/7x7 convs; a fully
# in-kernel shifted-window tap accumulation (VMEM halo + acc scratch) is not implemented.


def maxpool_3x3_s2_p1(x):
    B, H, W, C = x.shape
    Ho = (H + 2 - 3) // 2 + 1
    Wo = (W + 2 - 3) // 2 + 1
    xp = jnp.pad(x, ((0, 0), (1, 1), (1, 1), (0, 0)), constant_values=-jnp.inf)
    views = []
    for i in range(3):
        for j in range(3):
            v = xp[:, i:i + 2 * (Ho - 1) + 1:2, j:j + 2 * (Wo - 1) + 1:2, :]
            views.append(v.reshape(B * Ho * Wo, C))
    y = pallas_max9(views, out_dtype=x.dtype)
    return y.reshape(B, Ho, Wo, C)


def transition_bnrelu_avgpool(x, scale, bias):
    # BN-ReLU fused into the 2x2/s2 average; the 1x1 conv is applied afterwards on the
    # pooled (4x smaller) tensor -- exact because the bias-free 1x1 conv and the average commute.
    B, H, W, C = x.shape
    Ho, Wo = H // 2, W // 2
    views = [x[:, i::2, j::2, :].reshape(B * Ho * Wo, C) for i in (0, 1) for j in (0, 1)]
    y = pallas_avg4_bnrelu(views, scale, bias, out_dtype=x.dtype)
    return y.reshape(B, Ho, Wo, C)


def bn_scale_bias(bn):
    gamma, beta, mean, var = bn
    scale = gamma * jax.lax.rsqrt(var + BN_EPS)
    bias = beta - mean * scale
    return scale, bias


# ------------------------------------------------------------------
# deterministic parameter init
# ------------------------------------------------------------------
def _conv_w(key, kh, kw, cin, cout):
    fan_in = kh * kw * cin
    w = jax.random.normal(key, (kh, kw, cin, cout), jnp.float32) * math.sqrt(2.0 / fan_in)
    return w.astype(jnp.bfloat16)


def _bn_params(key, c):
    k1, k2, k3, k4 = jax.random.split(key, 4)
    gamma = 1.0 + 0.1 * jax.random.normal(k1, (c,), jnp.float32)
    beta = 0.1 * jax.random.normal(k2, (c,), jnp.float32)
    mean = 0.1 * jax.random.normal(k3, (c,), jnp.float32)
    var = 0.5 + jax.random.uniform(k4, (c,), jnp.float32)
    return (gamma, beta, mean, var)


def init_backbone(key):
    keys = iter(jax.random.split(key, 512))
    params = {"conv0": _conv_w(next(keys), 7, 7, 3, INIT_FEATURES),
              "norm0": _bn_params(next(keys), INIT_FEATURES)}
    nf = INIT_FEATURES
    blocks = []
    for bi, nlayers in enumerate(BLOCK_CONFIG):
        layers = []
        for _ in range(nlayers):
            layers.append({
                "norm1": _bn_params(next(keys), nf),
                "conv1": _conv_w(next(keys), 1, 1, nf, BN_SIZE * GROWTH),
                "norm2": _bn_params(next(keys), BN_SIZE * GROWTH),
                "conv2": _conv_w(next(keys), 3, 3, BN_SIZE * GROWTH, GROWTH),
            })
            nf += GROWTH
        block = {"layers": layers}
        if bi != len(BLOCK_CONFIG) - 1:
            block["trans_norm"] = _bn_params(next(keys), nf)
            block["trans_conv"] = _conv_w(next(keys), 1, 1, nf, nf // 2)
            nf //= 2
        blocks.append(block)
    params["blocks"] = blocks
    params["norm5"] = _bn_params(next(keys), nf)
    params["num_features"] = nf
    return params


def init_head(key, num_features, hidden_layer_sizes, num_classes):
    keys = iter(jax.random.split(key, 64))
    hidden = []
    in_sz = num_features
    for size in hidden_layer_sizes:
        bound = math.sqrt(6.0 / in_sz)          # kaiming_uniform_, nonlinearity='relu'
        w = jax.random.uniform(next(keys), (in_sz, size), jnp.float32, -bound, bound)
        bb = 1.0 / math.sqrt(in_sz)
        b = jax.random.uniform(next(keys), (size,), jnp.float32, -bb, bb)
        bn = (jnp.ones((size,), jnp.float32), jnp.zeros((size,), jnp.float32),
              jnp.zeros((size,), jnp.float32), jnp.ones((size,), jnp.float32))
        hidden.append({"w": w, "b": b, "bn": bn})
        in_sz = size
    bb = 1.0 / math.sqrt(in_sz)
    w_out = jax.random.uniform(next(keys), (in_sz, num_classes), jnp.float32, -bb, bb)
    b_out = jax.random.uniform(next(keys), (num_classes,), jnp.float32, -bb, bb)
    return {"hidden": hidden, "w_out": w_out, "b_out": b_out}


# ------------------------------------------------------------------
# forward pass (mirrors DensNetWithHead.forward, eval semantics)
# ------------------------------------------------------------------
def densenet_with_head_forward(backbone, head, x_nchw):
    x = jnp.transpose(x_nchw, (0, 2, 3, 1)).astype(jnp.bfloat16)   # NCHW -> NHWC, bf16 activations
    B = x.shape[0]

    # --- stem: conv7x7/s2/p3 with fused norm0+ReLU epilogue, then 3x3/s2/p1 maxpool ---
    s0, b0 = bn_scale_bias(backbone["norm0"])
    patches, Ho, Wo = _extract_patches(x, 7, 7, 2, 3)
    a = patches.reshape(B * Ho * Wo, 7 * 7 * 3)
    y = pallas_fused_matmul(a, backbone["conv0"].reshape(7 * 7 * 3, INIT_FEATURES),
                            post=(s0, b0), post_relu=True)
    x = y.reshape(B, Ho, Wo, INIT_FEATURES)
    x = maxpool_3x3_s2_p1(x)

    # --- dense blocks ---
    for block in backbone["blocks"]:
        for layer in block["layers"]:
            Bc, H, W, Cin = x.shape
            s1, b1 = bn_scale_bias(layer["norm1"])
            s2, b2 = bn_scale_bias(layer["norm2"])
            Cb = layer["conv1"].shape[-1]
            G = layer["conv2"].shape[-1]
            # fused: BN1-ReLU -> conv1x1 -> BN2-ReLU  (one MXU kernel, bottleneck stays narrow)
            bott = pallas_fused_matmul(x.reshape(Bc * H * W, Cin),
                                       layer["conv1"].reshape(Cin, Cb),
                                       pre=(s1, b1), post=(s2, b2), post_relu=True)
            bott = bott.reshape(Bc, H, W, Cb)
            # 3x3 conv via im2col of the (already activated) bottleneck
            p, _, _ = _extract_patches(bott, 3, 3, 1, 1)
            h = pallas_fused_matmul(p.reshape(Bc * H * W, 9 * Cb),
                                    layer["conv2"].reshape(9 * Cb, G))
            x = jnp.concatenate([x, h.reshape(Bc, H, W, G)], axis=-1)
            # TODO(synk): in-place channel-slice writes (preallocated block buffer +
            # input_output_aliases) instead of concatenate would avoid O(L^2) rewrites.
        if "trans_conv" in block:
            st, bt = bn_scale_bias(block["trans_norm"])
            x = transition_bnrelu_avgpool(x, st, bt)               # fused BN-ReLU + 2x2 avgpool
            Bc, Hh, Ww, Cc = x.shape
            Co = block["trans_conv"].shape[-1]
            y = pallas_fused_matmul(x.reshape(Bc * Hh * Ww, Cc),
                                    block["trans_conv"].reshape(Cc, Co))
            x = y.reshape(Bc, Hh, Ww, Co)

    # --- final norm5 BN-ReLU fused with global average pool ---
    s5, b5 = bn_scale_bias(backbone["norm5"])
    Bc, H, W, C = x.shape
    feats = pallas_gap_bnrelu(x.reshape(Bc, H * W, C), s5, b5)     # (B, num_features) f32

    # --- custom head ---
    h = feats
    for layer in head["hidden"]:
        scale, shift = bn_scale_bias(layer["bn"])
        h = pallas_linear_relu_bn(h, layer["w"], layer["b"], scale, shift)
        # TODO(synk): nn.Dropout is identity in eval mode; training-mode RNG masking not implemented.
    out = pallas_fused_matmul(h, head["w_out"],
                              post=(jnp.ones_like(head["b_out"]), head["b_out"]),
                              out_dtype=jnp.float32)
    return out


if __name__ == "__main__":
    key = jax.random.PRNGKey(0)
    kb, khd, kx = jax.random.split(key, 3)

    hidden_layer_sizes = [64, 32]
    dropout_rate = 0.1   # eval mode -> identity
    num_classes = 10

    backbone = init_backbone(kb)
    head = init_head(khd, backbone["num_features"], hidden_layer_sizes, num_classes)

    # small NCHW input (PyTorch convention), 3 channels like densenet121
    x = jax.random.normal(kx, (2, 3, 32, 32), jnp.float32)

    fwd = jax.jit(functools.partial(densenet_with_head_forward, backbone, head))
    out = jax.block_until_ready(fwd(x))
    assert out.shape == (2, num_classes)
    assert bool(jnp.all(jnp.isfinite(out)))
    print("KERNEL_OK")
</pallas_src>

<mosaic_0001>
module attributes {stable_mosaic.version = 11 : i64} {
  func.func @kernel(%arg0: i32, %arg1: memref<256x147xbf16, #tpu.memory_space<vmem>>, %arg2: memref<147x16xbf16, #tpu.memory_space<vmem>>, %arg3: memref<1x16xf32, #tpu.memory_space<vmem>>, %arg4: memref<1x16xf32, #tpu.memory_space<vmem>>, %arg5: memref<256x16xbf16, #tpu.memory_space<vmem>>) attributes {dimension_semantics = [#tpu.dimension_semantics<parallel>], iteration_bounds = array<i64: 2>, scalar_prefetch = 0 : i64, scratch_operands = 0 : i64, tpu.core_type = #tpu.core_type<tc>, window_params = [{transform_indices = @transform_0, window_bounds = array<i64: 256, 147>}, {pipeline_mode = #tpu.pipeline_mode<synchronous>, transform_indices = @transform_1, window_bounds = array<i64: 147, 16>}, {pipeline_mode = #tpu.pipeline_mode<synchronous>, transform_indices = @transform_2, window_bounds = array<i64: 1, 16>}, {pipeline_mode = #tpu.pipeline_mode<synchronous>, transform_indices = @transform_3, window_bounds = array<i64: 1, 16>}, {transform_indices = @transform_4, window_bounds = array<i64: 256, 16>}]} {
    %c0 = arith.constant 0 : index
    %c0_0 = arith.constant 0 : index
    %0 = vector.load %arg1[%c0, %c0_0] : memref<256x147xbf16, #tpu.memory_space<vmem>>, vector<256x147xbf16>
    %c0_1 = arith.constant 0 : index
    %c0_2 = arith.constant 0 : index
    %1 = vector.load %arg2[%c0_1, %c0_2] : memref<147x16xbf16, #tpu.memory_space<vmem>>, vector<147x16xbf16>
    %cst = arith.constant dense<0.000000e+00> : vector<256x16xf32>
    %2 = tpu.matmul %0, %1, %cst {dimension_numbers = #tpu.dot_dimension_numbers<[1], [0], [0], [1], [0, 0, 1, 1], [], []>} : vector<256x147xbf16>, vector<147x16xbf16>, vector<256x16xf32> -> vector<256x16xf32>
    %c0_3 = arith.constant 0 : index
    %c0_4 = arith.constant 0 : index
    %3 = vector.load %arg3[%c0_3, %c0_4] : memref<1x16xf32, #tpu.memory_space<vmem>>, vector<1x16xf32>
    %4 = vector.broadcast %3 : vector<1x16xf32> to vector<256x16xf32>
    %5 = arith.mulf %2, %4 : vector<256x16xf32>
    %c0_5 = arith.constant 0 : index
    %c0_6 = arith.constant 0 : index
    %6 = vector.load %arg4[%c0_5, %c0_6] : memref<1x16xf32, #tpu.memory_space<vmem>>, vector<1x16xf32>
    %7 = vector.broadcast %6 : vector<1x16xf32> to vector<256x16xf32>
    %8 = arith.addf %5, %7 : vector<256x16xf32>
    %cst_7 = arith.constant 0.000000e+00 : f32
    %9 = vector.broadcast %cst_7 : f32 to vector<256x16xf32>
    %10 = arith.maximumf %8, %9 : vector<256x16xf32>
    %11 = arith.truncf %10 : vector<256x16xf32> to vector<256x16xbf16>
    %c0_8 = arith.constant 0 : index
    %c0_9 = arith.constant 0 : index
    %12 = vector.load %arg5[%c0_8, %c0_9] : memref<256x16xbf16, #tpu.memory_space<vmem>>, vector<256x16xbf16>
    tpu.vector_store %arg5[%c0_8, %c0_9], %11 {strides = array<i32>} : memref<256x16xbf16, #tpu.memory_space<vmem>>, vector<256x16xbf16>,
    return
  }
  func.func @transform_0(%arg0: i32) -> (i32, i32) {
    %c0_i32 = arith.constant 0 : i32
    %c0_i32_0 = arith.constant 0 : i32
    return %arg0, %c0_i32 : i32, i32
  }
  func.func @transform_1(%arg0: i32) -> (i32, i32) {
    %c0_i32 = arith.constant 0 : i32
    %c0_i32_0 = arith.constant 0 : i32
    %c0_i32_1 = arith.constant 0 : i32
    return %c0_i32, %c0_i32_0 : i32, i32
  }
  func.func @transform_2(%arg0: i32) -> (i32, i32) {
    %c0_i32 = arith.constant 0 : i32
    %c0_i32_0 = arith.constant 0 : i32
    %c0_i32_1 = arith.constant 0 : i32
    return %c0_i32, %c0_i32_0 : i32, i32
  }
  func.func @transform_3(%arg0: i32) -> (i32, i32) {
    %c0_i32 = arith.constant 0 : i32
    %c0_i32_0 = arith.constant 0 : i32
    %c0_i32_1 = arith.constant 0 : i32
    return %c0_i32, %c0_i32_0 : i32, i32
  }
  func.func @transform_4(%arg0: i32) -> (i32, i32) {
    %c0_i32 = arith.constant 0 : i32
    %c0_i32_0 = arith.constant 0 : i32
    return %arg0, %c0_i32 : i32, i32
  }
}

module attributes {stable_mosaic.version = 11 : i64} {
  func.func @_max9_kernel(%arg0: i32, %arg1: memref<128x16xbf16, #tpu.memory_space<vmem>>, %arg2: memref<128x16xbf16, #tpu.memory_space<vmem>>, %arg3: memref<128x16xbf16, #tpu.memory_space<vmem>>, %arg4: memref<128x16xbf16, #tpu.memory_space<vmem>>, %arg5: memref<128x16xbf16, #tpu.memory_space<vmem>>, %arg6: memref<128x16xbf16, #tpu.memory_space<vmem>>, %arg7: memref<128x16xbf16, #tpu.memory_space<vmem>>, %arg8: memref<128x16xbf16, #tpu.memory_space<vmem>>, %arg9: memref<128x16xbf16, #tpu.memory_space<vmem>>, %arg10: memref<128x16xbf16, #tpu.memory_space<vmem>>) attributes {dimension_semantics = [#tpu.dimension_semantics<parallel>], iteration_bounds = array<i64: 1>, scalar_prefetch = 0 : i64, scratch_operands = 0 : i64, tpu.core_type = #tpu.core_type<tc>, window_params = [{transform_indices = @transform_0, window_bounds = array<i64: 128, 16>}, {transform_indices = @transform_1, window_bounds = array<i64: 128, 16>}, {transform_indices = @transform_2, window_bounds = array<i64: 128, 16>}, {transform_indices = @transform_3, window_bounds = array<i64: 128, 16>}, {transform_indices = @transform_4, window_bounds = array<i64: 128, 16>}, {transform_indices = @transform_5, window_bounds = array<i64: 128, 16>}, {transform_indices = @transform_6, window_bounds = array<i64: 128, 16>}, {transform_indices = @transform_7, window_bounds = array<i64: 128, 16>}, {transform_indices = @transform_8, window_bounds = array<i64: 128, 16>}, {transform_indices = @transform_9, window_bounds = array<i64: 128, 16>}]} {
    %c0 = arith.constant 0 : index
    %c0_0 = arith.constant 0 : index
    %0 = vector.load %arg1[%c0, %c0_0] : memref<128x16xbf16, #tpu.memory_space<vmem>>, vector<128x16xbf16>
    %1 = arith.extf %0 : vector<128x16xbf16> to vector<128x16xf32>
    %c0_1 = arith.constant 0 : index
    %c0_2 = arith.constant 0 : index
    %2 = vector.load %arg2[%c0_1, %c0_2] : memref<128x16xbf16, #tpu.memory_space<vmem>>, vector<128x16xbf16>
    %3 = arith.extf %2 : vector<128x16xbf16> to vector<128x16xf32>
    %4 = arith.maximumf %1, %3 : vector<128x16xf32>
    %c0_3 = arith.constant 0 : index
    %c0_4 = arith.constant 0 : index
    %5 = vector.load %arg3[%c0_3, %c0_4] : memref<128x16xbf16, #tpu.memory_space<vmem>>, vector<128x16xbf16>
    %6 = arith.extf %5 : vector<128x16xbf16> to vector<128x16xf32>
    %7 = arith.maximumf %4, %6 : vector<128x16xf32>
    %c0_5 = arith.constant 0 : index
    %c0_6 = arith.constant 0 : index
    %8 = vector.load %arg4[%c0_5, %c0_6] : memref<128x16xbf16, #tpu.memory_space<vmem>>, vector<128x16xbf16>
    %9 = arith.extf %8 : vector<128x16xbf16> to vector<128x16xf32>
    %10 = arith.maximumf %7, %9 : vector<128x16xf32>
    %c0_7 = arith.constant 0 : index
    %c0_8 = arith.constant 0 : index
    %11 = vector.load %arg5[%c0_7, %c0_8] : memref<128x16xbf16, #tpu.memory_space<vmem>>, vector<128x16xbf16>
    %12 = arith.extf %11 : vector<128x16xbf16> to vector<128x16xf32>
    %13 = arith.maximumf %10, %12 : vector<128x16xf32>
    %c0_9 = arith.constant 0 : index
    %c0_10 = arith.constant 0 : index
    %14 = vector.load %arg6[%c0_9, %c0_10] : memref<128x16xbf16, #tpu.memory_space<vmem>>, vector<128x16xbf16>
    %15 = arith.extf %14 : vector<128x16xbf16> to vector<128x16xf32>
    %16 = arith.maximumf %13, %15 : vector<128x16xf32>
    %c0_11 = arith.constant 0 : index
    %c0_12 = arith.constant 0 : index
    %17 = vector.load %arg7[%c0_11, %c0_12] : memref<128x16xbf16, #tpu.memory_space<vmem>>, vector<128x16xbf16>
    %18 = arith.extf %17 : vector<128x16xbf16> to vector<128x16xf32>
    %19 = arith.maximumf %16, %18 : vector<128x16xf32>
    %c0_13 = arith.constant 0 : index
    %c0_14 = arith.constant 0 : index
    %20 = vector.load %arg8[%c0_13, %c0_14] : memref<128x16xbf16, #tpu.memory_space<vmem>>, vector<128x16xbf16>
    %21 = arith.extf %20 : vector<128x16xbf16> to vector<128x16xf32>
    %22 = arith.maximumf %19, %21 : vector<128x16xf32>
    %c0_15 = arith.constant 0 : index
    %c0_16 = arith.constant 0 : index
    %23 = vector.load %arg9[%c0_15, %c0_16] : memref<128x16xbf16, #tpu.memory_space<vmem>>, vector<128x16xbf16>
    %24 = arith.extf %23 : vector<128x16xbf16> to vector<128x16xf32>
    %25 = arith.maximumf %22, %24 : vector<128x16xf32>
    %26 = arith.truncf %25 : vector<128x16xf32> to vector<128x16xbf16>
    %c0_17 = arith.constant 0 : index
    %c0_18 = arith.constant 0 : index
    %27 = vector.load %arg10[%c0_17, %c0_18] : memref<128x16xbf16, #tpu.memory_space<vmem>>, vector<128x16xbf16>
    tpu.vector_store %arg10[%c0_17, %c0_18], %26 {strides = array<i32>} : memref<128x16xbf16, #tpu.memory_space<vmem>>, vector<128x16xbf16>,
    return
  }
  func.func @transform_0(%arg0: i32) -> (i32, i32) {
    %c0_i32 = arith.constant 0 : i32
    %c0_i32_0 = arith.constant 0 : i32
    return %arg0, %c0_i32 : i32, i32
  }
  func.func @transform_1(%arg0: i32) -> (i32, i32) {
    %c0_i32 = arith.constant 0 : i32
    %c0_i32_0 = arith.constant 0 : i32
    return %arg0, %c0_i32 : i32, i32
  }
  func.func @transform_2(%arg0: i32) -> (i32, i32) {
    %c0_i32 = arith.constant 0 : i32
    %c0_i32_0 = arith.constant 0 : i32
    return %arg0, %c0_i32 : i32, i32
  }
  func.func @transform_3(%arg0: i32) -> (i32, i32) {
    %c0_i32 = arith.constant 0 : i32
    %c0_i32_0 = arith.constant 0 : i32
    return %arg0, %c0_i32 : i32, i32
  }
  func.func @transform_4(%arg0: i32) -> (i32, i32) {
    %c0_i32 = arith.constant 0 : i32
    %c0_i32_0 = arith.constant 0 : i32
    return %arg0, %c0_i32 : i32, i32
  }
  func.func @transform_5(%arg0: i32) -> (i32, i32) {
    %c0_i32 = arith.constant 0 : i32
    %c0_i32_0 = arith.constant 0 : i32
    return %arg0, %c0_i32 : i32, i32
  }
  func.func @transform_6(%arg0: i32) -> (i32, i32) {
    %c0_i32 = arith.constant 0 : i32
    %c0_i32_0 = arith.constant 0 : i32
    return %arg0, %c0_i32 : i32, i32
  }
  func.func @transform_7(%arg0: i32) -> (i32, i32) {
    %c0_i32 = arith.constant 0 : i32
    %c0_i32_0 = arith.constant 0 : i32
    return %arg0, %c0_i32 : i32, i32
  }
  func.func @transform_8(%arg0: i32) -> (i32, i32) {
    %c0_i32 = arith.constant 0 : i32
    %c0_i32_0 = arith.constant 0 : i32
    return %arg0, %c0_i32 : i32, i32
  }
  func.func @transform_9(%arg0: i32) -> (i32, i32) {
    %c0_i32 = arith.constant 0 : i32
    %c0_i32_0 = arith.constant 0 : i32
    return %arg0, %c0_i32 : i32, i32
  }
}

module attributes {stable_mosaic.version = 11 : i64} {
  func.func @kernel(%arg0: i32, %arg1: memref<128x16xbf16, #tpu.memory_space<vmem>>, %arg2: memref<16x32xbf16, #tpu.memory_space<vmem>>, %arg3: memref<1x16xf32, #tpu.memory_space<vmem>>, %arg4: memref<1x16xf32, #tpu.memory_space<vmem>>, %arg5: memref<1x32xf32, #tpu.memory_space<vmem>>, %arg6: memref<1x32xf32, #tpu.memory_space<vmem>>, %arg7: memref<128x32xbf16, #tpu.memory_space<vmem>>) attributes {dimension_semantics = [#tpu.dimension_semantics<parallel>], iteration_bounds = array<i64: 1>, scalar_prefetch = 0 : i64, scratch_operands = 0 : i64, tpu.core_type = #tpu.core_type<tc>, window_params = [{transform_indices = @transform_0, window_bounds = array<i64: 128, 16>}, {pipeline_mode = #tpu.pipeline_mode<synchronous>, transform_indices = @transform_1, window_bounds = array<i64: 16, 32>}, {pipeline_mode = #tpu.pipeline_mode<synchronous>, transform_indices = @transform_2, window_bounds = array<i64: 1, 16>}, {pipeline_mode = #tpu.pipeline_mode<synchronous>, transform_indices = @transform_3, window_bounds = array<i64: 1, 16>}, {pipeline_mode = #tpu.pipeline_mode<synchronous>, transform_indices = @transform_4, window_bounds = array<i64: 1, 32>}, {pipeline_mode = #tpu.pipeline_mode<synchronous>, transform_indices = @transform_5, window_bounds = array<i64: 1, 32>}, {transform_indices = @transform_6, window_bounds = array<i64: 128, 32>}]} {
    %c0 = arith.constant 0 : index
    %c0_0 = arith.constant 0 : index
    %0 = vector.load %arg1[%c0, %c0_0] : memref<128x16xbf16, #tpu.memory_space<vmem>>, vector<128x16xbf16>
    %1 = arith.extf %0 : vector<128x16xbf16> to vector<128x16xf32>
    %c0_1 = arith.constant 0 : index
    %c0_2 = arith.constant 0 : index
    %2 = vector.load %arg3[%c0_1, %c0_2] : memref<1x16xf32, #tpu.memory_space<vmem>>, vector<1x16xf32>
    %3 = vector.broadcast %2 : vector<1x16xf32> to vector<128x16xf32>
    %4 = arith.mulf %1, %3 : vector<128x16xf32>
    %c0_3 = arith.constant 0 : index
    %c0_4 = arith.constant 0 : index
    %5 = vector.load %arg4[%c0_3, %c0_4] : memref<1x16xf32, #tpu.memory_space<vmem>>, vector<1x16xf32>
    %6 = vector.broadcast %5 : vector<1x16xf32> to vector<128x16xf32>
    %7 = arith.addf %4, %6 : vector<128x16xf32>
    %cst = arith.constant 0.000000e+00 : f32
    %8 = vector.broadcast %cst : f32 to vector<128x16xf32>
    %9 = arith.maximumf %7, %8 : vector<128x16xf32>
    %10 = arith.truncf %9 : vector<128x16xf32> to vector<128x16xbf16>
    %c0_5 = arith.constant 0 : index
    %c0_6 = arith.constant 0 : index
    %11 = vector.load %arg2[%c0_5, %c0_6] : memref<16x32xbf16, #tpu.memory_space<vmem>>, vector<16x32xbf16>
    %cst_7 = arith.constant dense<0.000000e+00> : vector<128x32xf32>
    %12 = tpu.matmul %10, %11, %cst_7 {dimension_numbers = #tpu.dot_dimension_numbers<[1], [0], [0], [1], [0, 0, 1, 1], [], []>} : vector<128x16xbf16>, vector<16x32xbf16>, vector<128x32xf32> -> vector<128x32xf32>
    %c0_8 = arith.constant 0 : index
    %c0_9 = arith.constant 0 : index
    %13 = vector.load %arg5[%c0_8, %c0_9] : memref<1x32xf32, #tpu.memory_space<vmem>>, vector<1x32xf32>
    %14 = vector.broadcast %13 : vector<1x32xf32> to vector<128x32xf32>
    %15 = arith.mulf %12, %14 : vector<128x32xf32>
    %c0_10 = arith.constant 0 : index
    %c0_11 = arith.constant 0 : index
    %16 = vector.load %arg6[%c0_10, %c0_11] : memref<1x32xf32, #tpu.memory_space<vmem>>, vector<1x32xf32>
    %17 = vector.broadcast %16 : vector<1x32xf32> to vector<128x32xf32>
    %18 = arith.addf %15, %17 : vector<128x32xf32>
    %cst_12 = arith.constant 0.000000e+00 : f32
    %19 = vector.broadcast %cst_12 : f32 to vector<128x32xf32>
    %20 = arith.maximumf %18, %19 : vector<128x32xf32>
    %21 = arith.truncf %20 : vector<128x32xf32> to vector<128x32xbf16>
    %c0_13 = arith.constant 0 : index
    %c0_14 = arith.constant 0 : index
    %22 = vector.load %arg7[%c0_13, %c0_14] : memref<128x32xbf16, #tpu.memory_space<vmem>>, vector<128x32xbf16>
    tpu.vector_store %arg7[%c0_13, %c0_14], %21 {strides = array<i32>} : memref<128x32xbf16, #tpu.memory_space<vmem>>, vector<128x32xbf16>,
    return
  }
  func.func @transform_0(%arg0: i32) -> (i32, i32) {
    %c0_i32 = arith.constant 0 : i32
    %c0_i32_0 = arith.constant 0 : i32
    return %arg0, %c0_i32 : i32, i32
  }
  func.func @transform_1(%arg0: i32) -> (i32, i32) {
    %c0_i32 = arith.constant 0 : i32
    %c0_i32_0 = arith.constant 0 : i32
    %c0_i32_1 = arith.constant 0 : i32
    return %c0_i32, %c0_i32_0 : i32, i32
  }
  func.func @transform_2(%arg0: i32) -> (i32, i32) {
    %c0_i32 = arith.constant 0 : i32
    %c0_i32_0 = arith.constant 0 : i32
    %c0_i32_1 = arith.constant 0 : i32
    return %c0_i32, %c0_i32_0 : i32, i32
  }
  func.func @transform_3(%arg0: i32) -> (i32, i32) {
    %c0_i32 = arith.constant 0 : i32
    %c0_i32_0 = arith.constant 0 : i32
    %c0_i32_1 = arith.constant 0 : i32
    return %c0_i32, %c0_i32_0 : i32, i32
  }
  func.func @transform_4(%arg0: i32) -> (i32, i32) {
    %c0_i32 = arith.constant 0 : i32
    %c0_i32_0 = arith.constant 0 : i32
    %c0_i32_1 = arith.constant 0 : i32
    return %c0_i32, %c0_i32_0 : i32, i32
  }
  func.func @transform_5(%arg0: i32) -> (i32, i32) {
    %c0_i32 = arith.constant 0 : i32
    %c0_i32_0 = arith.constant 0 : i32
    %c0_i32_1 = arith.constant 0 : i32
    return %c0_i32, %c0_i32_0 : i32, i32
  }
  func.func @transform_6(%arg0: i32) -> (i32, i32) {
    %c0_i32 = arith.constant 0 : i32
    %c0_i32_0 = arith.constant 0 : i32
    return %arg0, %c0_i32 : i32, i32
  }
}

module attributes {stable_mosaic.version = 11 : i64} {
  func.func @kernel(%arg0: i32, %arg1: memref<128x288xbf16, #tpu.memory_space<vmem>>, %arg2: memref<288x8xbf16, #tpu.memory_space<vmem>>, %arg3: memref<128x8xbf16, #tpu.memory_space<vmem>>) attributes {dimension_semantics = [#tpu.dimension_semantics<parallel>], iteration_bounds = array<i64: 1>, scalar_prefetch = 0 : i64, scratch_operands = 0 : i64, tpu.core_type = #tpu.core_type<tc>, window_params = [{transform_indices = @transform_0, window_bounds = array<i64: 128, 288>}, {pipeline_mode = #tpu.pipeline_mode<synchronous>, transform_indices = @transform_1, window_bounds = array<i64: 288, 8>}, {transform_indices = @transform_2, window_bounds = array<i64: 128, 8>}]} {
    %c0 = arith.constant 0 : index
    %c0_0 = arith.constant 0 : index
    %0 = vector.load %arg1[%c0, %c0_0] : memref<128x288xbf16, #tpu.memory_space<vmem>>, vector<128x288xbf16>
    %c0_1 = arith.constant 0 : index
    %c0_2 = arith.constant 0 : index
    %1 = vector.load %arg2[%c0_1, %c0_2] : memref<288x8xbf16, #tpu.memory_space<vmem>>, vector<288x8xbf16>
    %cst = arith.constant dense<0.000000e+00> : vector<128x8xf32>
    %2 = tpu.matmul %0, %1, %cst {dimension_numbers = #tpu.dot_dimension_numbers<[1], [0], [0], [1], [0, 0, 1, 1], [], []>} : vector<128x288xbf16>, vector<288x8xbf16>, vector<128x8xf32> -> vector<128x8xf32>
    %3 = arith.truncf %2 : vector<128x8xf32> to vector<128x8xbf16>
    %c0_3 = arith.constant 0 : index
    %c0_4 = arith.constant 0 : index
    %4 = vector.load %arg3[%c0_3, %c0_4] : memref<128x8xbf16, #tpu.memory_space<vmem>>, vector<128x8xbf16>
    tpu.vector_store %arg3[%c0_3, %c0_4], %3 {strides = array<i32>} : memref<128x8xbf16, #tpu.memory_space<vmem>>, vector<128x8xbf16>,
    return
  }
  func.func @transform_0(%arg0: i32) -> (i32, i32) {
    %c0_i32 = arith.constant 0 : i32
    %c0_i32_0 = arith.constant 0 : i32
    return %arg0, %c0_i32 : i32, i32
  }
  func.func @transform_1(%arg0: i32) -> (i32, i32) {
    %c0_i32 = arith.constant 0 : i32
    %c0_i32_0 = arith.constant 0 : i32
    %c0_i32_1 = arith.constant 0 : i32
    return %c0_i32, %c0_i32_0 : i32, i32
  }
  func.func @transform_2(%arg0: i32) -> (i32, i32) {
    %c0_i32 = arith.constant 0 : i32
    %c0_i32_0 = arith.constant 0 : i32
    return %arg0, %c0_i32 : i32, i32
  }
}

module attributes {stable_mosaic.version = 11 : i64} {
  func.func @kernel(%arg0: i32, %arg1: memref<128x24xbf16, #tpu.memory_space<vmem>>, %arg2: memref<24x32xbf16, #tpu.memory_space<vmem>>, %arg3: memref<1x24xf32, #tpu.memory_space<vmem>>, %arg4: memref<1x24xf32, #tpu.memory_space<vmem>>, %arg5: memref<1x32xf32, #tpu.memory_space<vmem>>, %arg6: memref<1x32xf32, #tpu.memory_space<vmem>>, %arg7: memref<128x32xbf16, #tpu.memory_space<vmem>>) attributes {dimension_semantics = [#tpu.dimension_semantics<parallel>], iteration_bounds = array<i64: 1>, scalar_prefetch = 0 : i64, scratch_operands = 0 : i64, tpu.core_type = #tpu.core_type<tc>, window_params = [{transform_indices = @transform_0, window_bounds = array<i64: 128, 24>}, {pipeline_mode = #tpu.pipeline_mode<synchronous>, transform_indices = @transform_1, window_bounds = array<i64: 24, 32>}, {pipeline_mode = #tpu.pipeline_mode<synchronous>, transform_indices = @transform_2, window_bounds = array<i64: 1, 24>}, {pipeline_mode = #tpu.pipeline_mode<synchronous>, transform_indices = @transform_3, window_bounds = array<i64: 1, 24>}, {pipeline_mode = #tpu.pipeline_mode<synchronous>, transform_indices = @transform_4, window_bounds = array<i64: 1, 32>}, {pipeline_mode = #tpu.pipeline_mode<synchronous>, transform_indices = @transform_5, window_bounds = array<i64: 1, 32>}, {transform_indices = @transform_6, window_bounds = array<i64: 128, 32>}]} {
    %c0 = arith.constant 0 : index
    %c0_0 = arith.constant 0 : index
    %0 = vector.load %arg1[%c0, %c0_0] : memref<128x24xbf16, #tpu.memory_space<vmem>>, vector<128x24xbf16>
    %1 = arith.extf %0 : vector<128x24xbf16> to vector<128x24xf32>
    %c0_1 = arith.constant 0 : index
    %c0_2 = arith.constant 0 : index
    %2 = vector.load %arg3[%c0_1, %c0_2] : memref<1x24xf32, #tpu.memory_space<vmem>>, vector<1x24xf32>
    %3 = vector.broadcast %2 : vector<1x24xf32> to vector<128x24xf32>
    %4 = arith.mulf %1, %3 : vector<128x24xf32>
    %c0_3 = arith.constant 0 : index
    %c0_4 = arith.constant 0 : index
    %5 = vector.load %arg4[%c0_3, %c0_4] : memref<1x24xf32, #tpu.memory_space<vmem>>, vector<1x24xf32>
    %6 = vector.broadcast %5 : vector<1x24xf32> to vector<128x24xf32>
    %7 = arith.addf %4, %6 : vector<128x24xf32>
    %cst = arith.constant 0.000000e+00 : f32
    %8 = vector.broadcast %cst : f32 to vector<128x24xf32>
    %9 = arith.maximumf %7, %8 : vector<128x24xf32>
    %10 = arith.truncf %9 : vector<128x24xf32> to vector<128x24xbf16>
    %c0_5 = arith.constant 0 : index
    %c0_6 = arith.constant 0 : index
    %11 = vector.load %arg2[%c0_5, %c0_6] : memref<24x32xbf16, #tpu.memory_space<vmem>>, vector<24x32xbf16>
    %cst_7 = arith.constant dense<0.000000e+00> : vector<128x32xf32>
    %12 = tpu.matmul %10, %11, %cst_7 {dimension_numbers = #tpu.dot_dimension_numbers<[1], [0], [0], [1], [0, 0, 1, 1], [], []>} : vector<128x24xbf16>, vector<24x32xbf16>, vector<128x32xf32> -> vector<128x32xf32>
    %c0_8 = arith.constant 0 : index
    %c0_9 = arith.constant 0 : index
    %13 = vector.load %arg5[%c0_8, %c0_9] : memref<1x32xf32, #tpu.memory_space<vmem>>, vector<1x32xf32>
    %14 = vector.broadcast %13 : vector<1x32xf32> to vector<128x32xf32>
    %15 = arith.mulf %12, %14 : vector<128x32xf32>
    %c0_10 = arith.constant 0 : index
    %c0_11 = arith.constant 0 : index
    %16 = vector.load %arg6[%c0_10, %c0_11] : memref<1x32xf32, #tpu.memory_space<vmem>>, vector<1x32xf32>
    %17 = vector.broadcast %16 : vector<1x32xf32> to vector<128x32xf32>
    %18 = arith.addf %15, %17 : vector<128x32xf32>
    %cst_12 = arith.constant 0.000000e+00 : f32
    %19 = vector.broadcast %cst_12 : f32 to vector<128x32xf32>
    %20 = arith.maximumf %18, %19 : vector<128x32xf32>
    %21 = arith.truncf %20 : vector<128x32xf32> to vector<128x32xbf16>
    %c0_13 = arith.constant 0 : index
    %c0_14 = arith.constant 0 : index
    %22 = vector.load %arg7[%c0_13, %c0_14] : memref<128x32xbf16, #tpu.memory_space<vmem>>, vector<128x32xbf16>
    tpu.vector_store %arg7[%c0_13, %c0_14], %21 {strides = array<i32>} : memref<128x32xbf16, #tpu.memory_space<vmem>>, vector<128x32xbf16>,
    return
  }
  func.func @transform_0(%arg0: i32) -> (i32, i32) {
    %c0_i32 = arith.constant 0 : i32
    %c0_i32_0 = arith.constant 0 : i32
    return %arg0, %c0_i32 : i32, i32
  }
  func.func @transform_1(%arg0: i32) -> (i32, i32) {
    %c0_i32 = arith.constant 0 : i32
    %c0_i32_0 = arith.constant 0 : i32
    %c0_i32_1 = arith.constant 0 : i32
    return %c0_i32, %c0_i32_0 : i32, i32
  }
  func.func @transform_2(%arg0: i32) -> (i32, i32) {
    %c0_i32 = arith.constant 0 : i32
    %c0_i32_0 = arith.constant 0 : i32
    %c0_i32_1 = arith.constant 0 : i32
    return %c0_i32, %c0_i32_0 : i32, i32
  }
  func.func @transform_3(%arg0: i32) -> (i32, i32) {
    %c0_i32 = arith.constant 0 : i32
    %c0_i32_0 = arith.constant 0 : i32
    %c0_i32_1 = arith.constant 0 : i32
    return %c0_i32, %c0_i32_0 : i32, i32
  }
  func.func @transform_4(%arg0: i32) -> (i32, i32) {
    %c0_i32 = arith.constant 0 : i32
    %c0_i32_0 = arith.constant 0 : i32
    %c0_i32_1 = arith.constant 0 : i32
    return %c0_i32, %c0_i32_0 : i32, i32
  }
  func.func @transform_5(%arg0: i32) -> (i32, i32) {
    %c0_i32 = arith.constant 0 : i32
    %c0_i32_0 = arith.constant 0 : i32
    %c0_i32_1 = arith.constant 0 : i32
    return %c0_i32, %c0_i32_0 : i32, i32
  }
  func.func @transform_6(%arg0: i32) -> (i32, i32) {
    %c0_i32 = arith.constant 0 : i32
    %c0_i32_0 = arith.constant 0 : i32
    return %arg0, %c0_i32 : i32, i32
  }
}

module attributes {stable_mosaic.version = 11 : i64} {
  func.func @_avg4_bnrelu_kernel(%arg0: i32, %arg1: memref<32x32xbf16, #tpu.memory_space<vmem>>, %arg2: memref<32x32xbf16, #tpu.memory_space<vmem>>, %arg3: memref<32x32xbf16, #tpu.memory_space<vmem>>, %arg4: memref<32x32xbf16, #tpu.memory_space<vmem>>, %arg5: memref<1x32xf32, #tpu.memory_space<vmem>>, %arg6: memref<1x32xf32, #tpu.memory_space<vmem>>, %arg7: memref<32x32xbf16, #tpu.memory_space<vmem>>) attributes {dimension_semantics = [#tpu.dimension_semantics<parallel>], iteration_bounds = array<i64: 1>, scalar_prefetch = 0 : i64, scratch_operands = 0 : i64, tpu.core_type = #tpu.core_type<tc>, window_params = [{transform_indices = @transform_0, window_bounds = array<i64: 32, 32>}, {transform_indices = @transform_1, window_bounds = array<i64: 32, 32>}, {transform_indices = @transform_2, window_bounds = array<i64: 32, 32>}, {transform_indices = @transform_3, window_bounds = array<i64: 32, 32>}, {pipeline_mode = #tpu.pipeline_mode<synchronous>, transform_indices = @transform_4, window_bounds = array<i64: 1, 32>}, {pipeline_mode = #tpu.pipeline_mode<synchronous>, transform_indices = @transform_5, window_bounds = array<i64: 1, 32>}, {transform_indices = @transform_6, window_bounds = array<i64: 32, 32>}]} {
    %c0 = arith.constant 0 : index
    %c0_0 = arith.constant 0 : index
    %0 = vector.load %arg5[%c0, %c0_0] : memref<1x32xf32, #tpu.memory_space<vmem>>, vector<1x32xf32>
    %c0_1 = arith.constant 0 : index
    %c0_2 = arith.constant 0 : index
    %1 = vector.load %arg6[%c0_1, %c0_2] : memref<1x32xf32, #tpu.memory_space<vmem>>, vector<1x32xf32>
    %c0_3 = arith.constant 0 : index
    %c0_4 = arith.constant 0 : index
    %2 = vector.load %arg1[%c0_3, %c0_4] : memref<32x32xbf16, #tpu.memory_space<vmem>>, vector<32x32xbf16>
    %3 = arith.extf %2 : vector<32x32xbf16> to vector<32x32xf32>
    %4 = vector.broadcast %0 : vector<1x32xf32> to vector<32x32xf32>
    %5 = arith.mulf %3, %4 : vector<32x32xf32>
    %6 = vector.broadcast %1 : vector<1x32xf32> to vector<32x32xf32>
    %7 = arith.addf %5, %6 : vector<32x32xf32>
    %cst = arith.constant 0.000000e+00 : f32
    %8 = vector.broadcast %cst : f32 to vector<32x32xf32>
    %9 = arith.maximumf %7, %8 : vector<32x32xf32>
    %c0_5 = arith.constant 0 : index
    %c0_6 = arith.constant 0 : index
    %10 = vector.load %arg2[%c0_5, %c0_6] : memref<32x32xbf16, #tpu.memory_space<vmem>>, vector<32x32xbf16>
    %11 = arith.extf %10 : vector<32x32xbf16> to vector<32x32xf32>
    %12 = vector.broadcast %0 : vector<1x32xf32> to vector<32x32xf32>
    %13 = arith.mulf %11, %12 : vector<32x32xf32>
    %14 = vector.broadcast %1 : vector<1x32xf32> to vector<32x32xf32>
    %15 = arith.addf %13, %14 : vector<32x32xf32>
    %cst_7 = arith.constant 0.000000e+00 : f32
    %16 = vector.broadcast %cst_7 : f32 to vector<32x32xf32>
    %17 = arith.maximumf %15, %16 : vector<32x32xf32>
    %18 = arith.addf %9, %17 : vector<32x32xf32>
    %c0_8 = arith.constant 0 : index
    %c0_9 = arith.constant 0 : index
    %19 = vector.load %arg3[%c0_8, %c0_9] : memref<32x32xbf16, #tpu.memory_space<vmem>>, vector<32x32xbf16>
    %20 = arith.extf %19 : vector<32x32xbf16> to vector<32x32xf32>
    %21 = vector.broadcast %0 : vector<1x32xf32> to vector<32x32xf32>
    %22 = arith.mulf %20, %21 : vector<32x32xf32>
    %23 = vector.broadcast %1 : vector<1x32xf32> to vector<32x32xf32>
    %24 = arith.addf %22, %23 : vector<32x32xf32>
    %cst_10 = arith.constant 0.000000e+00 : f32
    %25 = vector.broadcast %cst_10 : f32 to vector<32x32xf32>
    %26 = arith.maximumf %24, %25 : vector<32x32xf32>
    %27 = arith.addf %18, %26 : vector<32x32xf32>
    %c0_11 = arith.constant 0 : index
    %c0_12 = arith.constant 0 : index
    %28 = vector.load %arg4[%c0_11, %c0_12] : memref<32x32xbf16, #tpu.memory_space<vmem>>, vector<32x32xbf16>
    %29 = arith.extf %28 : vector<32x32xbf16> to vector<32x32xf32>
    %30 = vector.broadcast %0 : vector<1x32xf32> to vector<32x32xf32>
    %31 = arith.mulf %29, %30 : vector<32x32xf32>
    %32 = vector.broadcast %1 : vector<1x32xf32> to vector<32x32xf32>
    %33 = arith.addf %31, %32 : vector<32x32xf32>
    %cst_13 = arith.constant 0.000000e+00 : f32
    %34 = vector.broadcast %cst_13 : f32 to vector<32x32xf32>
    %35 = arith.maximumf %33, %34 : vector<32x32xf32>
    %36 = arith.addf %27, %35 : vector<32x32xf32>
    %cst_14 = arith.constant 2.500000e-01 : f32
    %37 = vector.broadcast %cst_14 : f32 to vector<32x32xf32>
    %38 = arith.mulf %36, %37 : vector<32x32xf32>
    %39 = arith.truncf %38 : vector<32x32xf32> to vector<32x32xbf16>
    %c0_15 = arith.constant 0 : index
    %c0_16 = arith.constant 0 : index
    %40 = vector.load %arg7[%c0_15, %c0_16] : memref<32x32xbf16, #tpu.memory_space<vmem>>, vector<32x32xbf16>
    tpu.vector_store %arg7[%c0_15, %c0_16], %39 {strides = array<i32>} : memref<32x32xbf16, #tpu.memory_space<vmem>>, vector<32x32xbf16>,
    return
  }
  func.func @transform_0(%arg0: i32) -> (i32, i32) {
    %c0_i32 = arith.constant 0 : i32
    %c0_i32_0 = arith.constant 0 : i32
    return %arg0, %c0_i32 : i32, i32
  }
  func.func @transform_1(%arg0: i32) -> (i32, i32) {
    %c0_i32 = arith.constant 0 : i32
    %c0_i32_0 = arith.constant 0 : i32
    return %arg0, %c0_i32 : i32, i32
  }
  func.func @transform_2(%arg0: i32) -> (i32, i32) {
    %c0_i32 = arith.constant 0 : i32
    %c0_i32_0 = arith.constant 0 : i32
    return %arg0, %c0_i32 : i32, i32
  }
  func.func @transform_3(%arg0: i32) -> (i32, i32) {
    %c0_i32 = arith.constant 0 : i32
    %c0_i32_0 = arith.constant 0 : i32
    return %arg0, %c0_i32 : i32, i32
  }
  func.func @transform_4(%arg0: i32) -> (i32, i32) {
    %c0_i32 = arith.constant 0 : i32
    %c0_i32_0 = arith.constant 0 : i32
    %c0_i32_1 = arith.constant 0 : i32
    return %c0_i32, %c0_i32_0 : i32, i32
  }
  func.func @transform_5(%arg0: i32) -> (i32, i32) {
    %c0_i32 = arith.constant 0 : i32
    %c0_i32_0 = arith.constant 0 : i32
    %c0_i32_1 = arith.constant 0 : i32
    return %c0_i32, %c0_i32_0 : i32, i32
  }
  func.func @transform_6(%arg0: i32) -> (i32, i32) {
    %c0_i32 = arith.constant 0 : i32
    %c0_i32_0 = arith.constant 0 : i32
    return %arg0, %c0_i32 : i32, i32
  }
}

module attributes {stable_mosaic.version = 11 : i64} {
  func.func @kernel(%arg0: i32, %arg1: memref<32x32xbf16, #tpu.memory_space<vmem>>, %arg2: memref<32x16xbf16, #tpu.memory_space<vmem>>, %arg3: memref<32x16xbf16, #tpu.memory_space<vmem>>) attributes {dimension_semantics = [#tpu.dimension_semantics<parallel>], iteration_bounds = array<i64: 1>, scalar_prefetch = 0 : i64, scratch_operands = 0 : i64, tpu.core_type = #tpu.core_type<tc>, window_params = [{transform_indices = @transform_0, window_bounds = array<i64: 32, 32>}, {pipeline_mode = #tpu.pipeline_mode<synchronous>, transform_indices = @transform_1, window_bounds = array<i64: 32, 16>}, {transform_indices = @transform_2, window_bounds = array<i64: 32, 16>}]} {
    %c0 = arith.constant 0 : index
    %c0_0 = arith.constant 0 : index
    %0 = vector.load %arg1[%c0, %c0_0] : memref<32x32xbf16, #tpu.memory_space<vmem>>, vector<32x32xbf16>
    %c0_1 = arith.constant 0 : index
    %c0_2 = arith.constant 0 : index
    %1 = vector.load %arg2[%c0_1, %c0_2] : memref<32x16xbf16, #tpu.memory_space<vmem>>, vector<32x16xbf16>
    %cst = arith.constant dense<0.000000e+00> : vector<32x16xf32>
    %2 = tpu.matmul %0, %1, %cst {dimension_numbers = #tpu.dot_dimension_numbers<[1], [0], [0], [1], [0, 0, 1, 1], [], []>} : vector<32x32xbf16>, vector<32x16xbf16>, vector<32x16xf32> -> vector<32x16xf32>
    %3 = arith.truncf %2 : vector<32x16xf32> to vector<32x16xbf16>
    %c0_3 = arith.constant 0 : index
    %c0_4 = arith.constant 0 : index
    %4 = vector.load %arg3[%c0_3, %c0_4] : memref<32x16xbf16, #tpu.memory_space<vmem>>, vector<32x16xbf16>
    tpu.vector_store %arg3[%c0_3, %c0_4], %3 {strides = array<i32>} : memref<32x16xbf16, #tpu.memory_space<vmem>>, vector<32x16xbf16>,
    return
  }
  func.func @transform_0(%arg0: i32) -> (i32, i32) {
    %c0_i32 = arith.constant 0 : i32
    %c0_i32_0 = arith.constant 0 : i32
    return %arg0, %c0_i32 : i32, i32
  }
  func.func @transform_1(%arg0: i32) -> (i32, i32) {
    %c0_i32 = arith.constant 0 : i32
    %c0_i32_0 = arith.constant 0 : i32
    %c0_i32_1 = arith.constant 0 : i32
    return %c0_i32, %c0_i32_0 : i32, i32
  }
  func.func @transform_2(%arg0: i32) -> (i32, i32) {
    %c0_i32 = arith.constant 0 : i32
    %c0_i32_0 = arith.constant 0 : i32
    return %arg0, %c0_i32 : i32, i32
  }
}

module attributes {stable_mosaic.version = 11 : i64} {
  func.func @kernel(%arg0: i32, %arg1: memref<32x16xbf16, #tpu.memory_space<vmem>>, %arg2: memref<16x32xbf16, #tpu.memory_space<vmem>>, %arg3: memref<1x16xf32, #tpu.memory_space<vmem>>, %arg4: memref<1x16xf32, #tpu.memory_space<vmem>>, %arg5: memref<1x32xf32, #tpu.memory_space<vmem>>, %arg6: memref<1x32xf32, #tpu.memory_space<vmem>>, %arg7: memref<32x32xbf16, #tpu.memory_space<vmem>>) attributes {dimension_semantics = [#tpu.dimension_semantics<parallel>], iteration_bounds = array<i64: 1>, scalar_prefetch = 0 : i64, scratch_operands = 0 : i64, tpu.core_type = #tpu.core_type<tc>, window_params = [{transform_indices = @transform_0, window_bounds = array<i64: 32, 16>}, {pipeline_mode = #tpu.pipeline_mode<synchronous>, transform_indices = @transform_1, window_bounds = array<i64: 16, 32>}, {pipeline_mode = #tpu.pipeline_mode<synchronous>, transform_indices = @transform_2, window_bounds = array<i64: 1, 16>}, {pipeline_mode = #tpu.pipeline_mode<synchronous>, transform_indices = @transform_3, window_bounds = array<i64: 1, 16>}, {pipeline_mode = #tpu.pipeline_mode<synchronous>, transform_indices = @transform_4, window_bounds = array<i64: 1, 32>}, {pipeline_mode = #tpu.pipeline_mode<synchronous>, transform_indices = @transform_5, window_bounds = array<i64: 1, 32>}, {transform_indices = @transform_6, window_bounds = array<i64: 32, 32>}]} {
    %c0 = arith.constant 0 : index
    %c0_0 = arith.constant 0 : index
    %0 = vector.load %arg1[%c0, %c0_0] : memref<32x16xbf16, #tpu.memory_space<vmem>>, vector<32x16xbf16>
    %1 = arith.extf %0 : vector<32x16xbf16> to vector<32x16xf32>
    %c0_1 = arith.constant 0 : index
    %c0_2 = arith.constant 0 : index
    %2 = vector.load %arg3[%c0_1, %c0_2] : memref<1x16xf32, #tpu.memory_space<vmem>>, vector<1x16xf32>
    %3 = vector.broadcast %2 : vector<1x16xf32> to vector<32x16xf32>
    %4 = arith.mulf %1, %3 : vector<32x16xf32>
    %c0_3 = arith.constant 0 : index
    %c0_4 = arith.constant 0 : index
    %5 = vector.load %arg4[%c0_3, %c0_4] : memref<1x16xf32, #tpu.memory_space<vmem>>, vector<1x16xf32>
    %6 = vector.broadcast %5 : vector<1x16xf32> to vector<32x16xf32>
    %7 = arith.addf %4, %6 : vector<32x16xf32>
    %cst = arith.constant 0.000000e+00 : f32
    %8 = vector.broadcast %cst : f32 to vector<32x16xf32>
    %9 = arith.maximumf %7, %8 : vector<32x16xf32>
    %10 = arith.truncf %9 : vector<32x16xf32> to vector<32x16xbf16>
    %c0_5 = arith.constant 0 : index
    %c0_6 = arith.constant 0 : index
    %11 = vector.load %arg2[%c0_5, %c0_6] : memref<16x32xbf16, #tpu.memory_space<vmem>>, vector<16x32xbf16>
    %cst_7 = arith.constant dense<0.000000e+00> : vector<32x32xf32>
    %12 = tpu.matmul %10, %11, %cst_7 {dimension_numbers = #tpu.dot_dimension_numbers<[1], [0], [0], [1], [0, 0, 1, 1], [], []>} : vector<32x16xbf16>, vector<16x32xbf16>, vector<32x32xf32> -> vector<32x32xf32>
    %c0_8 = arith.constant 0 : index
    %c0_9 = arith.constant 0 : index
    %13 = vector.load %arg5[%c0_8, %c0_9] : memref<1x32xf32, #tpu.memory_space<vmem>>, vector<1x32xf32>
    %14 = vector.broadcast %13 : vector<1x32xf32> to vector<32x32xf32>
    %15 = arith.mulf %12, %14 : vector<32x32xf32>
    %c0_10 = arith.constant 0 : index
    %c0_11 = arith.constant 0 : index
    %16 = vector.load %arg6[%c0_10, %c0_11] : memref<1x32xf32, #tpu.memory_space<vmem>>, vector<1x32xf32>
    %17 = vector.broadcast %16 : vector<1x32xf32> to vector<32x32xf32>
    %18 = arith.addf %15, %17 : vector<32x32xf32>
    %cst_12 = arith.constant 0.000000e+00 : f32
    %19 = vector.broadcast %cst_12 : f32 to vector<32x32xf32>
    %20 = arith.maximumf %18, %19 : vector<32x32xf32>
    %21 = arith.truncf %20 : vector<32x32xf32> to vector<32x32xbf16>
    %c0_13 = arith.constant 0 : index
    %c0_14 = arith.constant 0 : index
    %22 = vector.load %arg7[%c0_13, %c0_14] : memref<32x32xbf16, #tpu.memory_space<vmem>>, vector<32x32xbf16>
    tpu.vector_store %arg7[%c0_13, %c0_14], %21 {strides = array<i32>} : memref<32x32xbf16, #tpu.memory_space<vmem>>, vector<32x32xbf16>,
    return
  }
  func.func @transform_0(%arg0: i32) -> (i32, i32) {
    %c0_i32 = arith.constant 0 : i32
    %c0_i32_0 = arith.constant 0 : i32
    return %arg0, %c0_i32 : i32, i32
  }
  func.func @transform_1(%arg0: i32) -> (i32, i32) {
    %c0_i32 = arith.constant 0 : i32
    %c0_i32_0 = arith.constant 0 : i32
    %c0_i32_1 = arith.constant 0 : i32
    return %c0_i32, %c0_i32_0 : i32, i32
  }
  func.func @transform_2(%arg0: i32) -> (i32, i32) {
    %c0_i32 = arith.constant 0 : i32
    %c0_i32_0 = arith.constant 0 : i32
    %c0_i32_1 = arith.constant 0 : i32
    return %c0_i32, %c0_i32_0 : i32, i32
  }
  func.func @transform_3(%arg0: i32) -> (i32, i32) {
    %c0_i32 = arith.constant 0 : i32
    %c0_i32_0 = arith.constant 0 : i32
    %c0_i32_1 = arith.constant 0 : i32
    return %c0_i32, %c0_i32_0 : i32, i32
  }
  func.func @transform_4(%arg0: i32) -> (i32, i32) {
    %c0_i32 = arith.constant 0 : i32
    %c0_i32_0 = arith.constant 0 : i32
    %c0_i32_1 = arith.constant 0 : i32
    return %c0_i32, %c0_i32_0 : i32, i32
  }
  func.func @transform_5(%arg0: i32) -> (i32, i32) {
    %c0_i32 = arith.constant 0 : i32
    %c0_i32_0 = arith.constant 0 : i32
    %c0_i32_1 = arith.constant 0 : i32
    return %c0_i32, %c0_i32_0 : i32, i32
  }
  func.func @transform_6(%arg0: i32) -> (i32, i32) {
    %c0_i32 = arith.constant 0 : i32
    %c0_i32_0 = arith.constant 0 : i32
    return %arg0, %c0_i32 : i32, i32
  }
}

module attributes {stable_mosaic.version = 11 : i64} {
  func.func @kernel(%arg0: i32, %arg1: memref<32x288xbf16, #tpu.memory_space<vmem>>, %arg2: memref<288x8xbf16, #tpu.memory_space<vmem>>, %arg3: memref<32x8xbf16, #tpu.memory_space<vmem>>) attributes {dimension_semantics = [#tpu.dimension_semantics<parallel>], iteration_bounds = array<i64: 1>, scalar_prefetch = 0 : i64, scratch_operands = 0 : i64, tpu.core_type = #tpu.core_type<tc>, window_params = [{transform_indices = @transform_0, window_bounds = array<i64: 32, 288>}, {pipeline_mode = #tpu.pipeline_mode<synchronous>, transform_indices = @transform_1, window_bounds = array<i64: 288, 8>}, {transform_indices = @transform_2, window_bounds = array<i64: 32, 8>}]} {
    %c0 = arith.constant 0 : index
    %c0_0 = arith.constant 0 : index
    %0 = vector.load %arg1[%c0, %c0_0] : memref<32x288xbf16, #tpu.memory_space<vmem>>, vector<32x288xbf16>
    %c0_1 = arith.constant 0 : index
    %c0_2 = arith.constant 0 : index
    %1 = vector.load %arg2[%c0_1, %c0_2] : memref<288x8xbf16, #tpu.memory_space<vmem>>, vector<288x8xbf16>
    %cst = arith.constant dense<0.000000e+00> : vector<32x8xf32>
    %2 = tpu.matmul %0, %1, %cst {dimension_numbers = #tpu.dot_dimension_numbers<[1], [0], [0], [1], [0, 0, 1, 1], [], []>} : vector<32x288xbf16>, vector<288x8xbf16>, vector<32x8xf32> -> vector<32x8xf32>
    %3 = arith.truncf %2 : vector<32x8xf32> to vector<32x8xbf16>
    %c0_3 = arith.constant 0 : index
    %c0_4 = arith.constant 0 : index
    %4 = vector.load %arg3[%c0_3, %c0_4] : memref<32x8xbf16, #tpu.memory_space<vmem>>, vector<32x8xbf16>
    tpu.vector_store %arg3[%c0_3, %c0_4], %3 {strides = array<i32>} : memref<32x8xbf16, #tpu.memory_space<vmem>>, vector<32x8xbf16>,
    return
  }
  func.func @transform_0(%arg0: i32) -> (i32, i32) {
    %c0_i32 = arith.constant 0 : i32
    %c0_i32_0 = arith.constant 0 : i32
    return %arg0, %c0_i32 : i32, i32
  }
  func.func @transform_1(%arg0: i32) -> (i32, i32) {
    %c0_i32 = arith.constant 0 : i32
    %c0_i32_0 = arith.constant 0 : i32
    %c0_i32_1 = arith.constant 0 : i32
    return %c0_i32, %c0_i32_0 : i32, i32
  }
  func.func @transform_2(%arg0: i32) -> (i32, i32) {
    %c0_i32 = arith.constant 0 : i32
    %c0_i32_0 = arith.constant 0 : i32
    return %arg0, %c0_i32 : i32, i32
  }
}

module attributes {stable_mosaic.version = 11 : i64} {
  func.func @kernel(%arg0: i32, %arg1: memref<32x24xbf16, #tpu.memory_space<vmem>>, %arg2: memref<24x32xbf16, #tpu.memory_space<vmem>>, %arg3: memref<1x24xf32, #tpu.memory_space<vmem>>, %arg4: memref<1x24xf32, #tpu.memory_space<vmem>>, %arg5: memref<1x32xf32, #tpu.memory_space<vmem>>, %arg6: memref<1x32xf32, #tpu.memory_space<vmem>>, %arg7: memref<32x32xbf16, #tpu.memory_space<vmem>>) attributes {dimension_semantics = [#tpu.dimension_semantics<parallel>], iteration_bounds = array<i64: 1>, scalar_prefetch = 0 : i64, scratch_operands = 0 : i64, tpu.core_type = #tpu.core_type<tc>, window_params = [{transform_indices = @transform_0, window_bounds = array<i64: 32, 24>}, {pipeline_mode = #tpu.pipeline_mode<synchronous>, transform_indices = @transform_1, window_bounds = array<i64: 24, 32>}, {pipeline_mode = #tpu.pipeline_mode<synchronous>, transform_indices = @transform_2, window_bounds = array<i64: 1, 24>}, {pipeline_mode = #tpu.pipeline_mode<synchronous>, transform_indices = @transform_3, window_bounds = array<i64: 1, 24>}, {pipeline_mode = #tpu.pipeline_mode<synchronous>, transform_indices = @transform_4, window_bounds = array<i64: 1, 32>}, {pipeline_mode = #tpu.pipeline_mode<synchronous>, transform_indices = @transform_5, window_bounds = array<i64: 1, 32>}, {transform_indices = @transform_6, window_bounds = array<i64: 32, 32>}]} {
    %c0 = arith.constant 0 : index
    %c0_0 = arith.constant 0 : index
    %0 = vector.load %arg1[%c0, %c0_0] : memref<32x24xbf16, #tpu.memory_space<vmem>>, vector<32x24xbf16>
    %1 = arith.extf %0 : vector<32x24xbf16> to vector<32x24xf32>
    %c0_1 = arith.constant 0 : index
    %c0_2 = arith.constant 0 : index
    %2 = vector.load %arg3[%c0_1, %c0_2] : memref<1x24xf32, #tpu.memory_space<vmem>>, vector<1x24xf32>
    %3 = vector.broadcast %2 : vector<1x24xf32> to vector<32x24xf32>
    %4 = arith.mulf %1, %3 : vector<32x24xf32>
    %c0_3 = arith.constant 0 : index
    %c0_4 = arith.constant 0 : index
    %5 = vector.load %arg4[%c0_3, %c0_4] : memref<1x24xf32, #tpu.memory_space<vmem>>, vector<1x24xf32>
    %6 = vector.broadcast %5 : vector<1x24xf32> to vector<32x24xf32>
    %7 = arith.addf %4, %6 : vector<32x24xf32>
    %cst = arith.constant 0.000000e+00 : f32
    %8 = vector.broadcast %cst : f32 to vector<32x24xf32>
    %9 = arith.maximumf %7, %8 : vector<32x24xf32>
    %10 = arith.truncf %9 : vector<32x24xf32> to vector<32x24xbf16>
    %c0_5 = arith.constant 0 : index
    %c0_6 = arith.constant 0 : index
    %11 = vector.load %arg2[%c0_5, %c0_6] : memref<24x32xbf16, #tpu.memory_space<vmem>>, vector<24x32xbf16>
    %cst_7 = arith.constant dense<0.000000e+00> : vector<32x32xf32>
    %12 = tpu.matmul %10, %11, %cst_7 {dimension_numbers = #tpu.dot_dimension_numbers<[1], [0], [0], [1], [0, 0, 1, 1], [], []>} : vector<32x24xbf16>, vector<24x32xbf16>, vector<32x32xf32> -> vector<32x32xf32>
    %c0_8 = arith.constant 0 : index
    %c0_9 = arith.constant 0 : index
    %13 = vector.load %arg5[%c0_8, %c0_9] : memref<1x32xf32, #tpu.memory_space<vmem>>, vector<1x32xf32>
    %14 = vector.broadcast %13 : vector<1x32xf32> to vector<32x32xf32>
    %15 = arith.mulf %12, %14 : vector<32x32xf32>
    %c0_10 = arith.constant 0 : index
    %c0_11 = arith.constant 0 : index
    %16 = vector.load %arg6[%c0_10, %c0_11] : memref<1x32xf32, #tpu.memory_space<vmem>>, vector<1x32xf32>
    %17 = vector.broadcast %16 : vector<1x32xf32> to vector<32x32xf32>
    %18 = arith.addf %15, %17 : vector<32x32xf32>
    %cst_12 = arith.constant 0.000000e+00 : f32
    %19 = vector.broadcast %cst_12 : f32 to vector<32x32xf32>
    %20 = arith.maximumf %18, %19 : vector<32x32xf32>
    %21 = arith.truncf %20 : vector<32x32xf32> to vector<32x32xbf16>
    %c0_13 = arith.constant 0 : index
    %c0_14 = arith.constant 0 : index
    %22 = vector.load %arg7[%c0_13, %c0_14] : memref<32x32xbf16, #tpu.memory_space<vmem>>, vector<32x32xbf16>
    tpu.vector_store %arg7[%c0_13, %c0_14], %21 {strides = array<i32>} : memref<32x32xbf16, #tpu.memory_space<vmem>>, vector<32x32xbf16>,
    return
  }
  func.func @transform_0(%arg0: i32) -> (i32, i32) {
    %c0_i32 = arith.constant 0 : i32
    %c0_i32_0 = arith.constant 0 : i32
    return %arg0, %c0_i32 : i32, i32
  }
  func.func @transform_1(%arg0: i32) -> (i32, i32) {
    %c0_i32 = arith.constant 0 : i32
    %c0_i32_0 = arith.constant 0 : i32
    %c0_i32_1 = arith.constant 0 : i32
    return %c0_i32, %c0_i32_0 : i32, i32
  }
  func.func @transform_2(%arg0: i32) -> (i32, i32) {
    %c0_i32 = arith.constant 0 : i32
    %c0_i32_0 = arith.constant 0 : i32
    %c0_i32_1 = arith.constant 0 : i32
    return %c0_i32, %c0_i32_0 : i32, i32
  }
  func.func @transform_3(%arg0: i32) -> (i32, i32) {
    %c0_i32 = arith.constant 0 : i32
    %c0_i32_0 = arith.constant 0 : i32
    %c0_i32_1 = arith.constant 0 : i32
    return %c0_i32, %c0_i32_0 : i32, i32
  }
  func.func @transform_4(%arg0: i32) -> (i32, i32) {
    %c0_i32 = arith.constant 0 : i32
    %c0_i32_0 = arith.constant 0 : i32
    %c0_i32_1 = arith.constant 0 : i32
    return %c0_i32, %c0_i32_0 : i32, i32
  }
  func.func @transform_5(%arg0: i32) -> (i32, i32) {
    %c0_i32 = arith.constant 0 : i32
    %c0_i32_0 = arith.constant 0 : i32
    %c0_i32_1 = arith.constant 0 : i32
    return %c0_i32, %c0_i32_0 : i32, i32
  }
  func.func @transform_6(%arg0: i32) -> (i32, i32) {
    %c0_i32 = arith.constant 0 : i32
    %c0_i32_0 = arith.constant 0 : i32
    return %arg0, %c0_i32 : i32, i32
  }
}

module attributes {stable_mosaic.version = 11 : i64} {
  func.func @_avg4_bnrelu_kernel(%arg0: i32, %arg1: memref<8x32xbf16, #tpu.memory_space<vmem>>, %arg2: memref<8x32xbf16, #tpu.memory_space<vmem>>, %arg3: memref<8x32xbf16, #tpu.memory_space<vmem>>, %arg4: memref<8x32xbf16, #tpu.memory_space<vmem>>, %arg5: memref<1x32xf32, #tpu.memory_space<vmem>>, %arg6: memref<1x32xf32, #tpu.memory_space<vmem>>, %arg7: memref<8x32xbf16, #tpu.memory_space<vmem>>) attributes {dimension_semantics = [#tpu.dimension_semantics<parallel>], iteration_bounds = array<i64: 1>, scalar_prefetch = 0 : i64, scratch_operands = 0 : i64, tpu.core_type = #tpu.core_type<tc>, window_params = [{transform_indices = @transform_0, window_bounds = array<i64: 8, 32>}, {transform_indices = @transform_1, window_bounds = array<i64: 8, 32>}, {transform_indices = @transform_2, window_bounds = array<i64: 8, 32>}, {transform_indices = @transform_3, window_bounds = array<i64: 8, 32>}, {pipeline_mode = #tpu.pipeline_mode<synchronous>, transform_indices = @transform_4, window_bounds = array<i64: 1, 32>}, {pipeline_mode = #tpu.pipeline_mode<synchronous>, transform_indices = @transform_5, window_bounds = array<i64: 1, 32>}, {transform_indices = @transform_6, window_bounds = array<i64: 8, 32>}]} {
    %c0 = arith.constant 0 : index
    %c0_0 = arith.constant 0 : index
    %0 = vector.load %arg5[%c0, %c0_0] : memref<1x32xf32, #tpu.memory_space<vmem>>, vector<1x32xf32>
    %c0_1 = arith.constant 0 : index
    %c0_2 = arith.constant 0 : index
    %1 = vector.load %arg6[%c0_1, %c0_2] : memref<1x32xf32, #tpu.memory_space<vmem>>, vector<1x32xf32>
    %c0_3 = arith.constant 0 : index
    %c0_4 = arith.constant 0 : index
    %2 = vector.load %arg1[%c0_3, %c0_4] : memref<8x32xbf16, #tpu.memory_space<vmem>>, vector<8x32xbf16>
    %3 = arith.extf %2 : vector<8x32xbf16> to vector<8x32xf32>
    %4 = vector.broadcast %0 : vector<1x32xf32> to vector<8x32xf32>
    %5 = arith.mulf %3, %4 : vector<8x32xf32>
    %6 = vector.broadcast %1 : vector<1x32xf32> to vector<8x32xf32>
    %7 = arith.addf %5, %6 : vector<8x32xf32>
    %cst = arith.constant 0.000000e+00 : f32
    %8 = vector.broadcast %cst : f32 to vector<8x32xf32>
    %9 = arith.maximumf %7, %8 : vector<8x32xf32>
    %c0_5 = arith.constant 0 : index
    %c0_6 = arith.constant 0 : index
    %10 = vector.load %arg2[%c0_5, %c0_6] : memref<8x32xbf16, #tpu.memory_space<vmem>>, vector<8x32xbf16>
    %11 = arith.extf %10 : vector<8x32xbf16> to vector<8x32xf32>
    %12 = vector.broadcast %0 : vector<1x32xf32> to vector<8x32xf32>
    %13 = arith.mulf %11, %12 : vector<8x32xf32>
    %14 = vector.broadcast %1 : vector<1x32xf32> to vector<8x32xf32>
    %15 = arith.addf %13, %14 : vector<8x32xf32>
    %cst_7 = arith.constant 0.000000e+00 : f32
    %16 = vector.broadcast %cst_7 : f32 to vector<8x32xf32>
    %17 = arith.maximumf %15, %16 : vector<8x32xf32>
    %18 = arith.addf %9, %17 : vector<8x32xf32>
    %c0_8 = arith.constant 0 : index
    %c0_9 = arith.constant 0 : index
    %19 = vector.load %arg3[%c0_8, %c0_9] : memref<8x32xbf16, #tpu.memory_space<vmem>>, vector<8x32xbf16>
    %20 = arith.extf %19 : vector<8x32xbf16> to vector<8x32xf32>
    %21 = vector.broadcast %0 : vector<1x32xf32> to vector<8x32xf32>
    %22 = arith.mulf %20, %21 : vector<8x32xf32>
    %23 = vector.broadcast %1 : vector<1x32xf32> to vector<8x32xf32>
    %24 = arith.addf %22, %23 : vector<8x32xf32>
    %cst_10 = arith.constant 0.000000e+00 : f32
    %25 = vector.broadcast %cst_10 : f32 to vector<8x32xf32>
    %26 = arith.maximumf %24, %25 : vector<8x32xf32>
    %27 = arith.addf %18, %26 : vector<8x32xf32>
    %c0_11 = arith.constant 0 : index
    %c0_12 = arith.constant 0 : index
    %28 = vector.load %arg4[%c0_11, %c0_12] : memref<8x32xbf16, #tpu.memory_space<vmem>>, vector<8x32xbf16>
    %29 = arith.extf %28 : vector<8x32xbf16> to vector<8x32xf32>
    %30 = vector.broadcast %0 : vector<1x32xf32> to vector<8x32xf32>
    %31 = arith.mulf %29, %30 : vector<8x32xf32>
    %32 = vector.broadcast %1 : vector<1x32xf32> to vector<8x32xf32>
    %33 = arith.addf %31, %32 : vector<8x32xf32>
    %cst_13 = arith.constant 0.000000e+00 : f32
    %34 = vector.broadcast %cst_13 : f32 to vector<8x32xf32>
    %35 = arith.maximumf %33, %34 : vector<8x32xf32>
    %36 = arith.addf %27, %35 : vector<8x32xf32>
    %cst_14 = arith.constant 2.500000e-01 : f32
    %37 = vector.broadcast %cst_14 : f32 to vector<8x32xf32>
    %38 = arith.mulf %36, %37 : vector<8x32xf32>
    %39 = arith.truncf %38 : vector<8x32xf32> to vector<8x32xbf16>
    %c0_15 = arith.constant 0 : index
    %c0_16 = arith.constant 0 : index
    %40 = vector.load %arg7[%c0_15, %c0_16] : memref<8x32xbf16, #tpu.memory_space<vmem>>, vector<8x32xbf16>
    tpu.vector_store %arg7[%c0_15, %c0_16], %39 {strides = array<i32>} : memref<8x32xbf16, #tpu.memory_space<vmem>>, vector<8x32xbf16>,
    return
  }
  func.func @transform_0(%arg0: i32) -> (i32, i32) {
    %c0_i32 = arith.constant 0 : i32
    %c0_i32_0 = arith.constant 0 : i32
    return %arg0, %c0_i32 : i32, i32
  }
  func.func @transform_1(%arg0: i32) -> (i32, i32) {
    %c0_i32 = arith.constant 0 : i32
    %c0_i32_0 = arith.constant 0 : i32
    return %arg0, %c0_i32 : i32, i32
  }
  func.func @transform_2(%arg0: i32) -> (i32, i32) {
    %c0_i32 = arith.constant 0 : i32
    %c0_i32_0 = arith.constant 0 : i32
    return %arg0, %c0_i32 : i32, i32
  }
  func.func @transform_3(%arg0: i32) -> (i32, i32) {
    %c0_i32 = arith.constant 0 : i32
    %c0_i32_0 = arith.constant 0 : i32
    return %arg0, %c0_i32 : i32, i32
  }
  func.func @transform_4(%arg0: i32) -> (i32, i32) {
    %c0_i32 = arith.constant 0 : i32
    %c0_i32_0 = arith.constant 0 : i32
    %c0_i32_1 = arith.constant 0 : i32
    return %c0_i32, %c0_i32_0 : i32, i32
  }
  func.func @transform_5(%arg0: i32) -> (i32, i32) {
    %c0_i32 = arith.constant 0 : i32
    %c0_i32_0 = arith.constant 0 : i32
    %c0_i32_1 = arith.constant 0 : i32
    return %c0_i32, %c0_i32_0 : i32, i32
  }
  func.func @transform_6(%arg0: i32) -> (i32, i32) {
    %c0_i32 = arith.constant 0 : i32
    %c0_i32_0 = arith.constant 0 : i32
    return %arg0, %c0_i32 : i32, i32
  }
}

module attributes {stable_mosaic.version = 11 : i64} {
  func.func @kernel(%arg0: i32, %arg1: memref<8x32xbf16, #tpu.memory_space<vmem>>, %arg2: memref<32x16xbf16, #tpu.memory_space<vmem>>, %arg3: memref<8x16xbf16, #tpu.memory_space<vmem>>) attributes {dimension_semantics = [#tpu.dimension_semantics<parallel>], iteration_bounds = array<i64: 1>, scalar_prefetch = 0 : i64, scratch_operands = 0 : i64, tpu.core_type = #tpu.core_type<tc>, window_params = [{transform_indices = @transform_0, window_bounds = array<i64: 8, 32>}, {pipeline_mode = #tpu.pipeline_mode<synchronous>, transform_indices = @transform_1, window_bounds = array<i64: 32, 16>}, {transform_indices = @transform_2, window_bounds = array<i64: 8, 16>}]} {
    %c0 = arith.constant 0 : index
    %c0_0 = arith.constant 0 : index
    %0 = vector.load %arg1[%c0, %c0_0] : memref<8x32xbf16, #tpu.memory_space<vmem>>, vector<8x32xbf16>
    %c0_1 = arith.constant 0 : index
    %c0_2 = arith.constant 0 : index
    %1 = vector.load %arg2[%c0_1, %c0_2] : memref<32x16xbf16, #tpu.memory_space<vmem>>, vector<32x16xbf16>
    %cst = arith.constant dense<0.000000e+00> : vector<8x16xf32>
    %2 = tpu.matmul %0, %1, %cst {dimension_numbers = #tpu.dot_dimension_numbers<[1], [0], [0], [1], [0, 0, 1, 1], [], []>} : vector<8x32xbf16>, vector<32x16xbf16>, vector<8x16xf32> -> vector<8x16xf32>
    %3 = arith.truncf %2 : vector<8x16xf32> to vector<8x16xbf16>
    %c0_3 = arith.constant 0 : index
    %c0_4 = arith.constant 0 : index
    %4 = vector.load %arg3[%c0_3, %c0_4] : memref<8x16xbf16, #tpu.memory_space<vmem>>, vector<8x16xbf16>
    tpu.vector_store %arg3[%c0_3, %c0_4], %3 {strides = array<i32>} : memref<8x16xbf16, #tpu.memory_space<vmem>>, vector<8x16xbf16>,
    return
  }
  func.func @transform_0(%arg0: i32) -> (i32, i32) {
    %c0_i32 = arith.constant 0 : i32
    %c0_i32_0 = arith.constant 0 : i32
    return %arg0, %c0_i32 : i32, i32
  }
  func.func @transform_1(%arg0: i32) -> (i32, i32) {
    %c0_i32 = arith.constant 0 : i32
    %c0_i32_0 = arith.constant 0 : i32
    %c0_i32_1 = arith.constant 0 : i32
    return %c0_i32, %c0_i32_0 : i32, i32
  }
  func.func @transform_2(%arg0: i32) -> (i32, i32) {
    %c0_i32 = arith.constant 0 : i32
    %c0_i32_0 = arith.constant 0 : i32
    return %arg0, %c0_i32 : i32, i32
  }
}

module attributes {stable_mosaic.version = 11 : i64} {
  func.func @kernel(%arg0: i32, %arg1: memref<8x16xbf16, #tpu.memory_space<vmem>>, %arg2: memref<16x32xbf16, #tpu.memory_space<vmem>>, %arg3: memref<1x16xf32, #tpu.memory_space<vmem>>, %arg4: memref<1x16xf32, #tpu.memory_space<vmem>>, %arg5: memref<1x32xf32, #tpu.memory_space<vmem>>, %arg6: memref<1x32xf32, #tpu.memory_space<vmem>>, %arg7: memref<8x32xbf16, #tpu.memory_space<vmem>>) attributes {dimension_semantics = [#tpu.dimension_semantics<parallel>], iteration_bounds = array<i64: 1>, scalar_prefetch = 0 : i64, scratch_operands = 0 : i64, tpu.core_type = #tpu.core_type<tc>, window_params = [{transform_indices = @transform_0, window_bounds = array<i64: 8, 16>}, {pipeline_mode = #tpu.pipeline_mode<synchronous>, transform_indices = @transform_1, window_bounds = array<i64: 16, 32>}, {pipeline_mode = #tpu.pipeline_mode<synchronous>, transform_indices = @transform_2, window_bounds = array<i64: 1, 16>}, {pipeline_mode = #tpu.pipeline_mode<synchronous>, transform_indices = @transform_3, window_bounds = array<i64: 1, 16>}, {pipeline_mode = #tpu.pipeline_mode<synchronous>, transform_indices = @transform_4, window_bounds = array<i64: 1, 32>}, {pipeline_mode = #tpu.pipeline_mode<synchronous>, transform_indices = @transform_5, window_bounds = array<i64: 1, 32>}, {transform_indices = @transform_6, window_bounds = array<i64: 8, 32>}]} {
    %c0 = arith.constant 0 : index
    %c0_0 = arith.constant 0 : index
    %0 = vector.load %arg1[%c0, %c0_0] : memref<8x16xbf16, #tpu.memory_space<vmem>>, vector<8x16xbf16>
    %1 = arith.extf %0 : vector<8x16xbf16> to vector<8x16xf32>
    %c0_1 = arith.constant 0 : index
    %c0_2 = arith.constant 0 : index
    %2 = vector.load %arg3[%c0_1, %c0_2] : memref<1x16xf32, #tpu.memory_space<vmem>>, vector<1x16xf32>
    %3 = vector.broadcast %2 : vector<1x16xf32> to vector<8x16xf32>
    %4 = arith.mulf %1, %3 : vector<8x16xf32>
    %c0_3 = arith.constant 0 : index
    %c0_4 = arith.constant 0 : index
    %5 = vector.load %arg4[%c0_3, %c0_4] : memref<1x16xf32, #tpu.memory_space<vmem>>, vector<1x16xf32>
    %6 = vector.broadcast %5 : vector<1x16xf32> to vector<8x16xf32>
    %7 = arith.addf %4, %6 : vector<8x16xf32>
    %cst = arith.constant 0.000000e+00 : f32
    %8 = vector.broadcast %cst : f32 to vector<8x16xf32>
    %9 = arith.maximumf %7, %8 : vector<8x16xf32>
    %10 = arith.truncf %9 : vector<8x16xf32> to vector<8x16xbf16>
    %c0_5 = arith.constant 0 : index
    %c0_6 = arith.constant 0 : index
    %11 = vector.load %arg2[%c0_5, %c0_6] : memref<16x32xbf16, #tpu.memory_space<vmem>>, vector<16x32xbf16>
    %cst_7 = arith.constant dense<0.000000e+00> : vector<8x32xf32>
    %12 = tpu.matmul %10, %11, %cst_7 {dimension_numbers = #tpu.dot_dimension_numbers<[1], [0], [0], [1], [0, 0, 1, 1], [], []>} : vector<8x16xbf16>, vector<16x32xbf16>, vector<8x32xf32> -> vector<8x32xf32>
    %c0_8 = arith.constant 0 : index
    %c0_9 = arith.constant 0 : index
    %13 = vector.load %arg5[%c0_8, %c0_9] : memref<1x32xf32, #tpu.memory_space<vmem>>, vector<1x32xf32>
    %14 = vector.broadcast %13 : vector<1x32xf32> to vector<8x32xf32>
    %15 = arith.mulf %12, %14 : vector<8x32xf32>
    %c0_10 = arith.constant 0 : index
    %c0_11 = arith.constant 0 : index
    %16 = vector.load %arg6[%c0_10, %c0_11] : memref<1x32xf32, #tpu.memory_space<vmem>>, vector<1x32xf32>
    %17 = vector.broadcast %16 : vector<1x32xf32> to vector<8x32xf32>
    %18 = arith.addf %15, %17 : vector<8x32xf32>
    %cst_12 = arith.constant 0.000000e+00 : f32
    %19 = vector.broadcast %cst_12 : f32 to vector<8x32xf32>
    %20 = arith.maximumf %18, %19 : vector<8x32xf32>
    %21 = arith.truncf %20 : vector<8x32xf32> to vector<8x32xbf16>
    %c0_13 = arith.constant 0 : index
    %c0_14 = arith.constant 0 : index
    %22 = vector.load %arg7[%c0_13, %c0_14] : memref<8x32xbf16, #tpu.memory_space<vmem>>, vector<8x32xbf16>
    tpu.vector_store %arg7[%c0_13, %c0_14], %21 {strides = array<i32>} : memref<8x32xbf16, #tpu.memory_space<vmem>>, vector<8x32xbf16>,
    return
  }
  func.func @transform_0(%arg0: i32) -> (i32, i32) {
    %c0_i32 = arith.constant 0 : i32
    %c0_i32_0 = arith.constant 0 : i32
    return %arg0, %c0_i32 : i32, i32
  }
  func.func @transform_1(%arg0: i32) -> (i32, i32) {
    %c0_i32 = arith.constant 0 : i32
    %c0_i32_0 = arith.constant 0 : i32
    %c0_i32_1 = arith.constant 0 : i32
    return %c0_i32, %c0_i32_0 : i32, i32
  }
  func.func @transform_2(%arg0: i32) -> (i32, i32) {
    %c0_i32 = arith.constant 0 : i32
    %c0_i32_0 = arith.constant 0 : i32
    %c0_i32_1 = arith.constant 0 : i32
    return %c0_i32, %c0_i32_0 : i32, i32
  }
  func.func @transform_3(%arg0: i32) -> (i32, i32) {
    %c0_i32 = arith.constant 0 : i32
    %c0_i32_0 = arith.constant 0 : i32
    %c0_i32_1 = arith.constant 0 : i32
    return %c0_i32, %c0_i32_0 : i32, i32
  }
  func.func @transform_4(%arg0: i32) -> (i32, i32) {
    %c0_i32 = arith.constant 0 : i32
    %c0_i32_0 = arith.constant 0 : i32
    %c0_i32_1 = arith.constant 0 : i32
    return %c0_i32, %c0_i32_0 : i32, i32
  }
  func.func @transform_5(%arg0: i32) -> (i32, i32) {
    %c0_i32 = arith.constant 0 : i32
    %c0_i32_0 = arith.constant 0 : i32
    %c0_i32_1 = arith.constant 0 : i32
    return %c0_i32, %c0_i32_0 : i32, i32
  }
  func.func @transform_6(%arg0: i32) -> (i32, i32) {
    %c0_i32 = arith.constant 0 : i32
    %c0_i32_0 = arith.constant 0 : i32
    return %arg0, %c0_i32 : i32, i32
  }
}

module attributes {stable_mosaic.version = 11 : i64} {
  func.func @kernel(%arg0: i32, %arg1: memref<8x288xbf16, #tpu.memory_space<vmem>>, %arg2: memref<288x8xbf16, #tpu.memory_space<vmem>>, %arg3: memref<8x8xbf16, #tpu.memory_space<vmem>>) attributes {dimension_semantics = [#tpu.dimension_semantics<parallel>], iteration_bounds = array<i64: 1>, scalar_prefetch = 0 : i64, scratch_operands = 0 : i64, tpu.core_type = #tpu.core_type<tc>, window_params = [{transform_indices = @transform_0, window_bounds = array<i64: 8, 288>}, {pipeline_mode = #tpu.pipeline_mode<synchronous>, transform_indices = @transform_1, window_bounds = array<i64: 288, 8>}, {transform_indices = @transform_2, window_bounds = array<i64: 8, 8>}]} {
    %c0 = arith.constant 0 : index
    %c0_0 = arith.constant 0 : index
    %0 = vector.load %arg1[%c0, %c0_0] : memref<8x288xbf16, #tpu.memory_space<vmem>>, vector<8x288xbf16>
    %c0_1 = arith.constant 0 : index
    %c0_2 = arith.constant 0 : index
    %1 = vector.load %arg2[%c0_1, %c0_2] : memref<288x8xbf16, #tpu.memory_space<vmem>>, vector<288x8xbf16>
    %cst = arith.constant dense<0.000000e+00> : vector<8x8xf32>
    %2 = tpu.matmul %0, %1, %cst {dimension_numbers = #tpu.dot_dimension_numbers<[1], [0], [0], [1], [0, 0, 1, 1], [], []>} : vector<8x288xbf16>, vector<288x8xbf16>, vector<8x8xf32> -> vector<8x8xf32>
    %3 = arith.truncf %2 : vector<8x8xf32> to vector<8x8xbf16>
    %c0_3 = arith.constant 0 : index
    %c0_4 = arith.constant 0 : index
    %4 = vector.load %arg3[%c0_3, %c0_4] : memref<8x8xbf16, #tpu.memory_space<vmem>>, vector<8x8xbf16>
    tpu.vector_store %arg3[%c0_3, %c0_4], %3 {strides = array<i32>} : memref<8x8xbf16, #tpu.memory_space<vmem>>, vector<8x8xbf16>,
    return
  }
  func.func @transform_0(%arg0: i32) -> (i32, i32) {
    %c0_i32 = arith.constant 0 : i32
    %c0_i32_0 = arith.constant 0 : i32
    return %arg0, %c0_i32 : i32, i32
  }
  func.func @transform_1(%arg0: i32) -> (i32, i32) {
    %c0_i32 = arith.constant 0 : i32
    %c0_i32_0 = arith.constant 0 : i32
    %c0_i32_1 = arith.constant 0 : i32
    return %c0_i32, %c0_i32_0 : i32, i32
  }
  func.func @transform_2(%arg0: i32) -> (i32, i32) {
    %c0_i32 = arith.constant 0 : i32
    %c0_i32_0 = arith.constant 0 : i32
    return %arg0, %c0_i32 : i32, i32
  }
}

module attributes {stable_mosaic.version = 11 : i64} {
  func.func @kernel(%arg0: i32, %arg1: memref<8x24xbf16, #tpu.memory_space<vmem>>, %arg2: memref<24x32xbf16, #tpu.memory_space<vmem>>, %arg3: memref<1x24xf32, #tpu.memory_space<vmem>>, %arg4: memref<1x24xf32, #tpu.memory_space<vmem>>, %arg5: memref<1x32xf32, #tpu.memory_space<vmem>>, %arg6: memref<1x32xf32, #tpu.memory_space<vmem>>, %arg7: memref<8x32xbf16, #tpu.memory_space<vmem>>) attributes {dimension_semantics = [#tpu.dimension_semantics<parallel>], iteration_bounds = array<i64: 1>, scalar_prefetch = 0 : i64, scratch_operands = 0 : i64, tpu.core_type = #tpu.core_type<tc>, window_params = [{transform_indices = @transform_0, window_bounds = array<i64: 8, 24>}, {pipeline_mode = #tpu.pipeline_mode<synchronous>, transform_indices = @transform_1, window_bounds = array<i64: 24, 32>}, {pipeline_mode = #tpu.pipeline_mode<synchronous>, transform_indices = @transform_2, window_bounds = array<i64: 1, 24>}, {pipeline_mode = #tpu.pipeline_mode<synchronous>, transform_indices = @transform_3, window_bounds = array<i64: 1, 24>}, {pipeline_mode = #tpu.pipeline_mode<synchronous>, transform_indices = @transform_4, window_bounds = array<i64: 1, 32>}, {pipeline_mode = #tpu.pipeline_mode<synchronous>, transform_indices = @transform_5, window_bounds = array<i64: 1, 32>}, {transform_indices = @transform_6, window_bounds = array<i64: 8, 32>}]} {
    %c0 = arith.constant 0 : index
    %c0_0 = arith.constant 0 : index
    %0 = vector.load %arg1[%c0, %c0_0] : memref<8x24xbf16, #tpu.memory_space<vmem>>, vector<8x24xbf16>
    %1 = arith.extf %0 : vector<8x24xbf16> to vector<8x24xf32>
    %c0_1 = arith.constant 0 : index
    %c0_2 = arith.constant 0 : index
    %2 = vector.load %arg3[%c0_1, %c0_2] : memref<1x24xf32, #tpu.memory_space<vmem>>, vector<1x24xf32>
    %3 = vector.broadcast %2 : vector<1x24xf32> to vector<8x24xf32>
    %4 = arith.mulf %1, %3 : vector<8x24xf32>
    %c0_3 = arith.constant 0 : index
    %c0_4 = arith.constant 0 : index
    %5 = vector.load %arg4[%c0_3, %c0_4] : memref<1x24xf32, #tpu.memory_space<vmem>>, vector<1x24xf32>
    %6 = vector.broadcast %5 : vector<1x24xf32> to vector<8x24xf32>
    %7 = arith.addf %4, %6 : vector<8x24xf32>
    %cst = arith.constant 0.000000e+00 : f32
    %8 = vector.broadcast %cst : f32 to vector<8x24xf32>
    %9 = arith.maximumf %7, %8 : vector<8x24xf32>
    %10 = arith.truncf %9 : vector<8x24xf32> to vector<8x24xbf16>
    %c0_5 = arith.constant 0 : index
    %c0_6 = arith.constant 0 : index
    %11 = vector.load %arg2[%c0_5, %c0_6] : memref<24x32xbf16, #tpu.memory_space<vmem>>, vector<24x32xbf16>
    %cst_7 = arith.constant dense<0.000000e+00> : vector<8x32xf32>
    %12 = tpu.matmul %10, %11, %cst_7 {dimension_numbers = #tpu.dot_dimension_numbers<[1], [0], [0], [1], [0, 0, 1, 1], [], []>} : vector<8x24xbf16>, vector<24x32xbf16>, vector<8x32xf32> -> vector<8x32xf32>
    %c0_8 = arith.constant 0 : index
    %c0_9 = arith.constant 0 : index
    %13 = vector.load %arg5[%c0_8, %c0_9] : memref<1x32xf32, #tpu.memory_space<vmem>>, vector<1x32xf32>
    %14 = vector.broadcast %13 : vector<1x32xf32> to vector<8x32xf32>
    %15 = arith.mulf %12, %14 : vector<8x32xf32>
    %c0_10 = arith.constant 0 : index
    %c0_11 = arith.constant 0 : index
    %16 = vector.load %arg6[%c0_10, %c0_11] : memref<1x32xf32, #tpu.memory_space<vmem>>, vector<1x32xf32>
    %17 = vector.broadcast %16 : vector<1x32xf32> to vector<8x32xf32>
    %18 = arith.addf %15, %17 : vector<8x32xf32>
    %cst_12 = arith.constant 0.000000e+00 : f32
    %19 = vector.broadcast %cst_12 : f32 to vector<8x32xf32>
    %20 = arith.maximumf %18, %19 : vector<8x32xf32>
    %21 = arith.truncf %20 : vector<8x32xf32> to vector<8x32xbf16>
    %c0_13 = arith.constant 0 : index
    %c0_14 = arith.constant 0 : index
    %22 = vector.load %arg7[%c0_13, %c0_14] : memref<8x32xbf16, #tpu.memory_space<vmem>>, vector<8x32xbf16>
    tpu.vector_store %arg7[%c0_13, %c0_14], %21 {strides = array<i32>} : memref<8x32xbf16, #tpu.memory_space<vmem>>, vector<8x32xbf16>,
    return
  }
  func.func @transform_0(%arg0: i32) -> (i32, i32) {
    %c0_i32 = arith.constant 0 : i32
    %c0_i32_0 = arith.constant 0 : i32
    return %arg0, %c0_i32 : i32, i32
  }
  func.func @transform_1(%arg0: i32) -> (i32, i32) {
    %c0_i32 = arith.constant 0 : i32
    %c0_i32_0 = arith.constant 0 : i32
    %c0_i32_1 = arith.constant 0 : i32
    return %c0_i32, %c0_i32_0 : i32, i32
  }
  func.func @transform_2(%arg0: i32) -> (i32, i32) {
    %c0_i32 = arith.constant 0 : i32
    %c0_i32_0 = arith.constant 0 : i32
    %c0_i32_1 = arith.constant 0 : i32
    return %c0_i32, %c0_i32_0 : i32, i32
  }
  func.func @transform_3(%arg0: i32) -> (i32, i32) {
    %c0_i32 = arith.constant 0 : i32
    %c0_i32_0 = arith.constant 0 : i32
    %c0_i32_1 = arith.constant 0 : i32
    return %c0_i32, %c0_i32_0 : i32, i32
  }
  func.func @transform_4(%arg0: i32) -> (i32, i32) {
    %c0_i32 = arith.constant 0 : i32
    %c0_i32_0 = arith.constant 0 : i32
    %c0_i32_1 = arith.constant 0 : i32
    return %c0_i32, %c0_i32_0 : i32, i32
  }
  func.func @transform_5(%arg0: i32) -> (i32, i32) {
    %c0_i32 = arith.constant 0 : i32
    %c0_i32_0 = arith.constant 0 : i32
    %c0_i32_1 = arith.constant 0 : i32
    return %c0_i32, %c0_i32_0 : i32, i32
  }
  func.func @transform_6(%arg0: i32) -> (i32, i32) {
    %c0_i32 = arith.constant 0 : i32
    %c0_i32_0 = arith.constant 0 : i32
    return %arg0, %c0_i32 : i32, i32
  }
}

module attributes {stable_mosaic.version = 11 : i64} {
  func.func @_gap_bnrelu_kernel(%arg0: i32, %arg1: memref<2x1x32xbf16, #tpu.memory_space<vmem>>, %arg2: memref<1x1x32xf32, #tpu.memory_space<vmem>>, %arg3: memref<1x1x32xf32, #tpu.memory_space<vmem>>, %arg4: memref<2x32xf32, #tpu.memory_space<vmem>>) attributes {dimension_semantics = [#tpu.dimension_semantics<arbitrary>], iteration_bounds = array<i64: 1>, scalar_prefetch = 0 : i64, scratch_operands = 0 : i64, tpu.core_type = #tpu.core_type<tc>, window_params = [{pipeline_mode = #tpu.pipeline_mode<synchronous>, transform_indices = @transform_0, window_bounds = array<i64: 2, 1, 32>}, {pipeline_mode = #tpu.pipeline_mode<synchronous>, transform_indices = @transform_1, window_bounds = array<i64: 1, 1, 32>}, {pipeline_mode = #tpu.pipeline_mode<synchronous>, transform_indices = @transform_2, window_bounds = array<i64: 1, 1, 32>}, {pipeline_mode = #tpu.pipeline_mode<synchronous>, transform_indices = @transform_3, window_bounds = array<i64: 2, 32>}]} {
    %c0 = arith.constant 0 : index
    %c0_0 = arith.constant 0 : index
    %c0_1 = arith.constant 0 : index
    %0 = vector.load %arg1[%c0, %c0_0, %c0_1] : memref<2x1x32xbf16, #tpu.memory_space<vmem>>, vector<2x1x32xbf16>
    %1 = arith.extf %0 : vector<2x1x32xbf16> to vector<2x1x32xf32>
    %c0_2 = arith.constant 0 : index
    %c0_3 = arith.constant 0 : index
    %c0_4 = arith.constant 0 : index
    %2 = vector.load %arg2[%c0_2, %c0_3, %c0_4] : memref<1x1x32xf32, #tpu.memory_space<vmem>>, vector<1x1x32xf32>
    %3 = vector.broadcast %2 : vector<1x1x32xf32> to vector<2x1x32xf32>
    %4 = arith.mulf %1, %3 : vector<2x1x32xf32>
    %c0_5 = arith.constant 0 : index
    %c0_6 = arith.constant 0 : index
    %c0_7 = arith.constant 0 : index
    %5 = vector.load %arg3[%c0_5, %c0_6, %c0_7] : memref<1x1x32xf32, #tpu.memory_space<vmem>>, vector<1x1x32xf32>
    %6 = vector.broadcast %5 : vector<1x1x32xf32> to vector<2x1x32xf32>
    %7 = arith.addf %4, %6 : vector<2x1x32xf32>
    %cst = arith.constant 0.000000e+00 : f32
    %8 = vector.broadcast %cst : f32 to vector<2x1x32xf32>
    %9 = arith.maximumf %7, %8 : vector<2x1x32xf32>
    %cst_8 = arith.constant dense<0.000000e+00> : vector<2x32xf32>
    %10 = vector.multi_reduction <add>, %9, %cst_8 [1] : vector<2x1x32xf32> to vector<2x32xf32>
    %cst_9 = arith.constant 1.000000e+00 : f32
    %11 = vector.broadcast %cst_9 : f32 to vector<2x32xf32>
    %12 = arith.divf %10, %11 : vector<2x32xf32>
    %c0_10 = arith.constant 0 : index
    %c0_11 = arith.constant 0 : index
    %13 = vector.load %arg4[%c0_10, %c0_11] : memref<2x32xf32, #tpu.memory_space<vmem>>, vector<2x32xf32>
    tpu.vector_store %arg4[%c0_10, %c0_11], %12 {strides = array<i32>} : memref<2x32xf32, #tpu.memory_space<vmem>>, vector<2x32xf32>,
    return
  }
  func.func @transform_0(%arg0: i32) -> (i32, i32, i32) {
    %c0_i32 = arith.constant 0 : i32
    %c0_i32_0 = arith.constant 0 : i32
    %c0_i32_1 = arith.constant 0 : i32
    %c0_i32_2 = arith.constant 0 : i32
    return %c0_i32, %c0_i32_0, %c0_i32_1 : i32, i32, i32
  }
  func.func @transform_1(%arg0: i32) -> (i32, i32, i32) {
    %c0_i32 = arith.constant 0 : i32
    %c0_i32_0 = arith.constant 0 : i32
    %c0_i32_1 = arith.constant 0 : i32
    %c0_i32_2 = arith.constant 0 : i32
    return %c0_i32, %c0_i32_0, %c0_i32_1 : i32, i32, i32
  }
  func.func @transform_2(%arg0: i32) -> (i32, i32, i32) {
    %c0_i32 = arith.constant 0 : i32
    %c0_i32_0 = arith.constant 0 : i32
    %c0_i32_1 = arith.constant 0 : i32
    %c0_i32_2 = arith.constant 0 : i32
    return %c0_i32, %c0_i32_0, %c0_i32_1 : i32, i32, i32
  }
  func.func @transform_3(%arg0: i32) -> (i32, i32) {
    %c0_i32 = arith.constant 0 : i32
    %c0_i32_0 = arith.constant 0 : i32
    %c0_i32_1 = arith.constant 0 : i32
    return %c0_i32, %c0_i32_0 : i32, i32
  }
}

module attributes {stable_mosaic.version = 11 : i64} {
  func.func @_linear_relu_bn_kernel(%arg0: i32, %arg1: memref<2x32xf32, #tpu.memory_space<vmem>>, %arg2: memref<32x64xf32, #tpu.memory_space<vmem>>, %arg3: memref<1x64xf32, #tpu.memory_space<vmem>>, %arg4: memref<1x64xf32, #tpu.memory_space<vmem>>, %arg5: memref<1x64xf32, #tpu.memory_space<vmem>>, %arg6: memref<2x64xf32, #tpu.memory_space<vmem>>) attributes {dimension_semantics = [#tpu.dimension_semantics<arbitrary>], iteration_bounds = array<i64: 1>, scalar_prefetch = 0 : i64, scratch_operands = 0 : i64, tpu.core_type = #tpu.core_type<tc>, window_params = [{pipeline_mode = #tpu.pipeline_mode<synchronous>, transform_indices = @transform_0, window_bounds = array<i64: 2, 32>}, {pipeline_mode = #tpu.pipeline_mode<synchronous>, transform_indices = @transform_1, window_bounds = array<i64: 32, 64>}, {pipeline_mode = #tpu.pipeline_mode<synchronous>, transform_indices = @transform_2, window_bounds = array<i64: 1, 64>}, {pipeline_mode = #tpu.pipeline_mode<synchronous>, transform_indices = @transform_3, window_bounds = array<i64: 1, 64>}, {pipeline_mode = #tpu.pipeline_mode<synchronous>, transform_indices = @transform_4, window_bounds = array<i64: 1, 64>}, {pipeline_mode = #tpu.pipeline_mode<synchronous>, transform_indices = @transform_5, window_bounds = array<i64: 2, 64>}]} {
    %c0 = arith.constant 0 : index
    %c0_0 = arith.constant 0 : index
    %0 = vector.load %arg1[%c0, %c0_0] : memref<2x32xf32, #tpu.memory_space<vmem>>, vector<2x32xf32>
    %c0_1 = arith.constant 0 : index
    %c0_2 = arith.constant 0 : index
    %1 = vector.load %arg2[%c0_1, %c0_2] : memref<32x64xf32, #tpu.memory_space<vmem>>, vector<32x64xf32>
    %cst = arith.constant dense<0.000000e+00> : vector<2x64xf32>
    %2 = tpu.matmul %0, %1, %cst {dimension_numbers = #tpu.dot_dimension_numbers<[1], [0], [0], [1], [0, 0, 1, 1], [], []>} : vector<2x32xf32>, vector<32x64xf32>, vector<2x64xf32> -> vector<2x64xf32>
    %c0_3 = arith.constant 0 : index
    %c0_4 = arith.constant 0 : index
    %3 = vector.load %arg3[%c0_3, %c0_4] : memref<1x64xf32, #tpu.memory_space<vmem>>, vector<1x64xf32>
    %4 = vector.broadcast %3 : vector<1x64xf32> to vector<2x64xf32>
    %5 = arith.addf %2, %4 : vector<2x64xf32>
    %cst_5 = arith.constant 0.000000e+00 : f32
    %6 = vector.broadcast %cst_5 : f32 to vector<2x64xf32>
    %7 = arith.maximumf %5, %6 : vector<2x64xf32>
    %c0_6 = arith.constant 0 : index
    %c0_7 = arith.constant 0 : index
    %8 = vector.load %arg4[%c0_6, %c0_7] : memref<1x64xf32, #tpu.memory_space<vmem>>, vector<1x64xf32>
    %9 = vector.broadcast %8 : vector<1x64xf32> to vector<2x64xf32>
    %10 = arith.mulf %7, %9 : vector<2x64xf32>
    %c0_8 = arith.constant 0 : index
    %c0_9 = arith.constant 0 : index
    %11 = vector.load %arg5[%c0_8, %c0_9] : memref<1x64xf32, #tpu.memory_space<vmem>>, vector<1x64xf32>
    %12 = vector.broadcast %11 : vector<1x64xf32> to vector<2x64xf32>
    %13 = arith.addf %10, %12 : vector<2x64xf32>
    %c0_10 = arith.constant 0 : index
    %c0_11 = arith.constant 0 : index
    %14 = vector.load %arg6[%c0_10, %c0_11] : memref<2x64xf32, #tpu.memory_space<vmem>>, vector<2x64xf32>
    tpu.vector_store %arg6[%c0_10, %c0_11], %13 {strides = array<i32>} : memref<2x64xf32, #tpu.memory_space<vmem>>, vector<2x64xf32>,
    return
  }
  func.func @transform_0(%arg0: i32) -> (i32, i32) {
    %c0_i32 = arith.constant 0 : i32
    %c0_i32_0 = arith.constant 0 : i32
    %c0_i32_1 = arith.constant 0 : i32
    return %c0_i32, %c0_i32_0 : i32, i32
  }
  func.func @transform_1(%arg0: i32) -> (i32, i32) {
    %c0_i32 = arith.constant 0 : i32
    %c0_i32_0 = arith.constant 0 : i32
    %c0_i32_1 = arith.constant 0 : i32
    return %c0_i32, %c0_i32_0 : i32, i32
  }
  func.func @transform_2(%arg0: i32) -> (i32, i32) {
    %c0_i32 = arith.constant 0 : i32
    %c0_i32_0 = arith.constant 0 : i32
    %c0_i32_1 = arith.constant 0 : i32
    return %c0_i32, %c0_i32_0 : i32, i32
  }
  func.func @transform_3(%arg0: i32) -> (i32, i32) {
    %c0_i32 = arith.constant 0 : i32
    %c0_i32_0 = arith.constant 0 : i32
    %c0_i32_1 = arith.constant 0 : i32
    return %c0_i32, %c0_i32_0 : i32, i32
  }
  func.func @transform_4(%arg0: i32) -> (i32, i32) {
    %c0_i32 = arith.constant 0 : i32
    %c0_i32_0 = arith.constant 0 : i32
    %c0_i32_1 = arith.constant 0 : i32
    return %c0_i32, %c0_i32_0 : i32, i32
  }
  func.func @transform_5(%arg0: i32) -> (i32, i32) {
    %c0_i32 = arith.constant 0 : i32
    %c0_i32_0 = arith.constant 0 : i32
    %c0_i32_1 = arith.constant 0 : i32
    return %c0_i32, %c0_i32_0 : i32, i32
  }
}

module attributes {stable_mosaic.version = 11 : i64} {
  func.func @_linear_relu_bn_kernel(%arg0: i32, %arg1: memref<2x64xf32, #tpu.memory_space<vmem>>, %arg2: memref<64x32xf32, #tpu.memory_space<vmem>>, %arg3: memref<1x32xf32, #tpu.memory_space<vmem>>, %arg4: memref<1x32xf32, #tpu.memory_space<vmem>>, %arg5: memref<1x32xf32, #tpu.memory_space<vmem>>, %arg6: memref<2x32xf32, #tpu.memory_space<vmem>>) attributes {dimension_semantics = [#tpu.dimension_semantics<arbitrary>], iteration_bounds = array<i64: 1>, scalar_prefetch = 0 : i64, scratch_operands = 0 : i64, tpu.core_type = #tpu.core_type<tc>, window_params = [{pipeline_mode = #tpu.pipeline_mode<synchronous>, transform_indices = @transform_0, window_bounds = array<i64: 2, 64>}, {pipeline_mode = #tpu.pipeline_mode<synchronous>, transform_indices = @transform_1, window_bounds = array<i64: 64, 32>}, {pipeline_mode = #tpu.pipeline_mode<synchronous>, transform_indices = @transform_2, window_bounds = array<i64: 1, 32>}, {pipeline_mode = #tpu.pipeline_mode<synchronous>, transform_indices = @transform_3, window_bounds = array<i64: 1, 32>}, {pipeline_mode = #tpu.pipeline_mode<synchronous>, transform_indices = @transform_4, window_bounds = array<i64: 1, 32>}, {pipeline_mode = #tpu.pipeline_mode<synchronous>, transform_indices = @transform_5, window_bounds = array<i64: 2, 32>}]} {
    %c0 = arith.constant 0 : index
    %c0_0 = arith.constant 0 : index
    %0 = vector.load %arg1[%c0, %c0_0] : memref<2x64xf32, #tpu.memory_space<vmem>>, vector<2x64xf32>
    %c0_1 = arith.constant 0 : index
    %c0_2 = arith.constant 0 : index
    %1 = vector.load %arg2[%c0_1, %c0_2] : memref<64x32xf32, #tpu.memory_space<vmem>>, vector<64x32xf32>
    %cst = arith.constant dense<0.000000e+00> : vector<2x32xf32>
    %2 = tpu.matmul %0, %1, %cst {dimension_numbers = #tpu.dot_dimension_numbers<[1], [0], [0], [1], [0, 0, 1, 1], [], []>} : vector<2x64xf32>, vector<64x32xf32>, vector<2x32xf32> -> vector<2x32xf32>
    %c0_3 = arith.constant 0 : index
    %c0_4 = arith.constant 0 : index
    %3 = vector.load %arg3[%c0_3, %c0_4] : memref<1x32xf32, #tpu.memory_space<vmem>>, vector<1x32xf32>
    %4 = vector.broadcast %3 : vector<1x32xf32> to vector<2x32xf32>
    %5 = arith.addf %2, %4 : vector<2x32xf32>
    %cst_5 = arith.constant 0.000000e+00 : f32
    %6 = vector.broadcast %cst_5 : f32 to vector<2x32xf32>
    %7 = arith.maximumf %5, %6 : vector<2x32xf32>
    %c0_6 = arith.constant 0 : index
    %c0_7 = arith.constant 0 : index
    %8 = vector.load %arg4[%c0_6, %c0_7] : memref<1x32xf32, #tpu.memory_space<vmem>>, vector<1x32xf32>
    %9 = vector.broadcast %8 : vector<1x32xf32> to vector<2x32xf32>
    %10 = arith.mulf %7, %9 : vector<2x32xf32>
    %c0_8 = arith.constant 0 : index
    %c0_9 = arith.constant 0 : index
    %11 = vector.load %arg5[%c0_8, %c0_9] : memref<1x32xf32, #tpu.memory_space<vmem>>, vector<1x32xf32>
    %12 = vector.broadcast %11 : vector<1x32xf32> to vector<2x32xf32>
    %13 = arith.addf %10, %12 : vector<2x32xf32>
    %c0_10 = arith.constant 0 : index
    %c0_11 = arith.constant 0 : index
    %14 = vector.load %arg6[%c0_10, %c0_11] : memref<2x32xf32, #tpu.memory_space<vmem>>, vector<2x32xf32>
    tpu.vector_store %arg6[%c0_10, %c0_11], %13 {strides = array<i32>} : memref<2x32xf32, #tpu.memory_space<vmem>>, vector<2x32xf32>,
    return
  }
  func.func @transform_0(%arg0: i32) -> (i32, i32) {
    %c0_i32 = arith.constant 0 : i32
    %c0_i32_0 = arith.constant 0 : i32
    %c0_i32_1 = arith.constant 0 : i32
    return %c0_i32, %c0_i32_0 : i32, i32
  }
  func.func @transform_1(%arg0: i32) -> (i32, i32) {
    %c0_i32 = arith.constant 0 : i32
    %c0_i32_0 = arith.constant 0 : i32
    %c0_i32_1 = arith.constant 0 : i32
    return %c0_i32, %c0_i32_0 : i32, i32
  }
  func.func @transform_2(%arg0: i32) -> (i32, i32) {
    %c0_i32 = arith.constant 0 : i32
    %c0_i32_0 = arith.constant 0 : i32
    %c0_i32_1 = arith.constant 0 : i32
    return %c0_i32, %c0_i32_0 : i32, i32
  }
  func.func @transform_3(%arg0: i32) -> (i32, i32) {
    %c0_i32 = arith.constant 0 : i32
    %c0_i32_0 = arith.constant 0 : i32
    %c0_i32_1 = arith.constant 0 : i32
    return %c0_i32, %c0_i32_0 : i32, i32
  }
  func.func @transform_4(%arg0: i32) -> (i32, i32) {
    %c0_i32 = arith.constant 0 : i32
    %c0_i32_0 = arith.constant 0 : i32
    %c0_i32_1 = arith.constant 0 : i32
    return %c0_i32, %c0_i32_0 : i32, i32
  }
  func.func @transform_5(%arg0: i32) -> (i32, i32) {
    %c0_i32 = arith.constant 0 : i32
    %c0_i32_0 = arith.constant 0 : i32
    %c0_i32_1 = arith.constant 0 : i32
    return %c0_i32, %c0_i32_0 : i32, i32
  }
}

module attributes {stable_mosaic.version = 11 : i64} {
  func.func @kernel(%arg0: i32, %arg1: memref<8x32xf32, #tpu.memory_space<vmem>>, %arg2: memref<32x10xf32, #tpu.memory_space<vmem>>, %arg3: memref<1x10xf32, #tpu.memory_space<vmem>>, %arg4: memref<1x10xf32, #tpu.memory_space<vmem>>, %arg5: memref<8x10xf32, #tpu.memory_space<vmem>>) attributes {dimension_semantics = [#tpu.dimension_semantics<parallel>], iteration_bounds = array<i64: 1>, scalar_prefetch = 0 : i64, scratch_operands = 0 : i64, tpu.core_type = #tpu.core_type<tc>, window_params = [{transform_indices = @transform_0, window_bounds = array<i64: 8, 32>}, {pipeline_mode = #tpu.pipeline_mode<synchronous>, transform_indices = @transform_1, window_bounds = array<i64: 32, 10>}, {pipeline_mode = #tpu.pipeline_mode<synchronous>, transform_indices = @transform_2, window_bounds = array<i64: 1, 10>}, {pipeline_mode = #tpu.pipeline_mode<synchronous>, transform_indices = @transform_3, window_bounds = array<i64: 1, 10>}, {transform_indices = @transform_4, window_bounds = array<i64: 8, 10>}]} {
    %c0 = arith.constant 0 : index
    %c0_0 = arith.constant 0 : index
    %0 = vector.load %arg1[%c0, %c0_0] : memref<8x32xf32, #tpu.memory_space<vmem>>, vector<8x32xf32>
    %1 = arith.truncf %0 : vector<8x32xf32> to vector<8x32xbf16>
    %c0_1 = arith.constant 0 : index
    %c0_2 = arith.constant 0 : index
    %2 = vector.load %arg2[%c0_1, %c0_2] : memref<32x10xf32, #tpu.memory_space<vmem>>, vector<32x10xf32>
    %3 = arith.truncf %2 : vector<32x10xf32> to vector<32x10xbf16>
    %cst = arith.constant dense<0.000000e+00> : vector<8x10xf32>
    %4 = tpu.matmul %1, %3, %cst {dimension_numbers = #tpu.dot_dimension_numbers<[1], [0], [0], [1], [0, 0, 1, 1], [], []>} : vector<8x32xbf16>, vector<32x10xbf16>, vector<8x10xf32> -> vector<8x10xf32>
    %c0_3 = arith.constant 0 : index
    %c0_4 = arith.constant 0 : index
    %5 = vector.load %arg3[%c0_3, %c0_4] : memref<1x10xf32, #tpu.memory_space<vmem>>, vector<1x10xf32>
    %6 = vector.broadcast %5 : vector<1x10xf32> to vector<8x10xf32>
    %7 = arith.mulf %4, %6 : vector<8x10xf32>
    %c0_5 = arith.constant 0 : index
    %c0_6 = arith.constant 0 : index
    %8 = vector.load %arg4[%c0_5, %c0_6] : memref<1x10xf32, #tpu.memory_space<vmem>>, vector<1x10xf32>
    %9 = vector.broadcast %8 : vector<1x10xf32> to vector<8x10xf32>
    %10 = arith.addf %7, %9 : vector<8x10xf32>
    %c0_7 = arith.constant 0 : index
    %c0_8 = arith.constant 0 : index
    %11 = vector.load %arg5[%c0_7, %c0_8] : memref<8x10xf32, #tpu.memory_space<vmem>>, vector<8x10xf32>
    tpu.vector_store %arg5[%c0_7, %c0_8], %10 {strides = array<i32>} : memref<8x10xf32, #tpu.memory_space<vmem>>, vector<8x10xf32>,
    return
  }
  func.func @transform_0(%arg0: i32) -> (i32, i32) {
    %c0_i32 = arith.constant 0 : i32
    %c0_i32_0 = arith.constant 0 : i32
    return %arg0, %c0_i32 : i32, i32
  }
  func.func @transform_1(%arg0: i32) -> (i32, i32) {
    %c0_i32 = arith.constant 0 : i32
    %c0_i32_0 = arith.constant 0 : i32
    %c0_i32_1 = arith.constant 0 : i32
    return %c0_i32, %c0_i32_0 : i32, i32
  }
  func.func @transform_2(%arg0: i32) -> (i32, i32) {
    %c0_i32 = arith.constant 0 : i32
    %c0_i32_0 = arith.constant 0 : i32
    %c0_i32_1 = arith.constant 0 : i32
    return %c0_i32, %c0_i32_0 : i32, i32
  }
  func.func @transform_3(%arg0: i32) -> (i32, i32) {
    %c0_i32 = arith.constant 0 : i32
    %c0_i32_0 = arith.constant 0 : i32
    %c0_i32_1 = arith.constant 0 : i32
    return %c0_i32, %c0_i32_0 : i32, i32
  }
  func.func @transform_4(%arg0: i32) -> (i32, i32) {
    %c0_i32 = arith.constant 0 : i32
    %c0_i32_0 = arith.constant 0 : i32
    return %arg0, %c0_i32 : i32, i32
  }
}

</mosaic_0001>

<bundles_post_ra>
// kernel: densenet_with_head_forward.28
= control target key start
LH: loop header
LB: loop body
LE: loop exit
PB: predicated region body
PF: predicated region fallthrough
CT: control target
= control target key end

     0   :  { %s1261_s15 = smov 0   ;;  %s1502_s0 = inlined_call_operand.vmem [shape: bf16[512,147], index: 0, kind: input, shape index: {}]   ;;  %s1503_s1 = inlined_call_operand.vmem [shape: bf16[147,16], index: 1, kind: input, shape index: {}]   ;;  %s1504_s2 = inlined_call_operand.vmem [shape: f32[1,16], index: 2, kind: input, shape index: {}]   ;;  %s1505_s3 = inlined_call_operand.vmem [shape: f32[1,16], index: 3, kind: input, shape index: {}]   ;;  %s1506_s4 = inlined_call_operand.vmem [shape: bf16[512,16], index: 4, kind: output, shape index: {}]  }
   0x1 LB: > { %s1001_s16 = sadd.s32 4294967295, %s1232_s15   ;;  %p1005_p0 = scmp.ge.s32.totalorder %s1232_s15, 1  ;;  %s1232_s15 = sphi %s1261_s15, %s14_s15  }
   0x2   : > { %p164_p1 = scmp.lt.s32.totalorder %s1232_s15, 3 }
   0x4   : > { %p165_p2 = pnand %p1005_p0, %p164_p1 }
   0x5   : > { %v1168_v0 = vld [vmem:[%s1503_s1] sm:$0xff] (!%p165_p2)   ;;  %v1234_v1 = vmov (!%p165_p2), 0   ;;  %v1169_v2 = vld [vmem:[%s1503_s1 + $0x8] sm:$0xff] (!%p165_p2)   ;;  %v1170_v3 = vld [vmem:[%s1503_s1 + $0x10] sm:$0xff] (!%p165_p2)   ;;  %s1006_s23 = sshll.u32 (!%p165_p2), %s1001_s16, 5  ;;  %vm457_vm0 = vcmask (!%p165_p2), 154624  }
   0x6   : > { %168 = sbr.rel (%p165_p2) target bundleno = 325 (0x145), region = 36  ;;  %513 = vmatprep.subr.bf16.mxu0 (!%p165_p2), %v1234_v1  ;;  %1138 = vmatprep.subr.bf16.mxu1 (!%p165_p2), %v1234_v1  ;;  %p192_p3 = scmp.lt.s32.totalorder (!%p165_p2), %s1006_s23, 63  ;;  %v1171_v4 = vld [vmem:[%s1503_s1 + $0x18] sm:$0xff] (!%p165_p2)   ;;  %v1172_v5 = vld [vmem:[%s1503_s1 + $0x20] sm:$0xff] (!%p165_p2)   ;;  %v1173_v8 = vld [vmem:[%s1503_s1 + $0x28] sm:$0xff] (!%p165_p2)   ;;  %vm506_vm1 = vcmask (!%p165_p2), 1040384  }
   0x7   : > { %514 = vmatpush1.bf16.msra.mxu0 (!%p165_p2), %v1168_v0  ;;  %1148 = vmatpush1.bf16.msra.mxu1 (!%p165_p2), %v1168_v0  ;;  %v1174_v9 = vld [vmem:[%s1503_s1 + $0x30] sm:$0xff] (!%p165_p2)   ;;  %v1175_v10 = vld [vmem:[%s1503_s1 + $0x38] sm:$0xff] (!%p165_p2)   ;;  %vm507_vm2 = vcmask (!%p165_p2), 1041408   ;;  %v1235_v11 = vmov (!%p165_p2), 65535   ;;  %v1176_v13 = vld [vmem:[%s1503_s1 + $0x40] sm:$0xff] (!%p165_p2)   ;;  %vm912_vm3 = vcmask (!%p165_p2), 125952  }
   0x8   : > { %515 = vmatprep.subr.bf16.mxu0 (!%p165_p2), %v1234_v1  ;;  %1139 = vmatprep.subr.bf16.mxu1 (!%p165_p2), %v1234_v1  ;;  %v508_v12 = vsel (!%p165_p2), %vm506_vm1, 4294967295, %v1235_v11  ;;  %v1177_v14 = vld [vmem:[%s1503_s1 + $0x48] ss:$0 sps:$4 sm:$0x33] (!%p165_p2)   ;;  %v1358_v47 = vld [vmem:[%s1504_s2] ss:$0 sm:$0xff] (!%p165_p2) }
   0x9   : > { %v509_v15 = vsel (!%p165_p2), %vm507_vm2, %v508_v12, 0  ;;  %v1363_v49 = vld [vmem:[%s1505_s3] ss:$0 sm:$0xff] (!%p165_p2) }
   0xa   : > { %v511_v16 = vand.u32 (!%p165_p2), %v1177_v14, %v509_v15 }
   0xb   : > { %516 = vmatpush1.bf16.msra.mxu0 (!%p165_p2), %v1169_v2  ;;  %1149 = vmatpush1.bf16.msra.mxu1 (!%p165_p2), %v1169_v2 }
   0xc   : > { %517 = vmatprep.subr.bf16.mxu0 (!%p165_p2), %v1234_v1  ;;  %1140 = vmatprep.subr.bf16.mxu1 (!%p165_p2), %v1234_v1 }
   0xd   : > { %s1508_s23 = smov (!%p192_p3, %s1006_s23), 63 }
   0xe   : > { %s1105_s26 = sshll.u32 %s1508_s23, 3  ;;  %s1010_s21 = sshll.u32 %s1508_s23, 2 }
   0xf   : > { %518 = vmatpush1.bf16.msra.mxu0 %v1170_v3  ;;  %1150 = vmatpush1.bf16.msra.mxu1 %v1170_v3  ;;  %s1287_s29 = scalar_lea.vmem %s1502_s0, %s1105_s26  ;;  %s1377_s23 = scalar_lea.vmem %s1506_s4, %s1010_s21 }
  0x10   : > { %519 = vmatprep.subr.bf16.mxu0 %v1234_v1  ;;  %1141 = vmatprep.subr.bf16.mxu1 %v1234_v1  ;;  %v1180_v6 = vld [vmem:[%s1287_s29 + $0x4] ss:$8 sps:$4 sm:$0xff]   ;;  %v1178_v17 = vld [vmem:[%s1287_s29] ss:$8 sps:$4 sm:$0xff]   ;;  %v1184_v19 = vld [vmem:[%s1287_s29 + $0x14] ss:$8 sps:$4 sm:$0xff]  }
  0x11   : > { %v1183_v7 = vld [vmem:[%s1287_s29 + $0x84] ss:$8 sps:$4 sm:$0xff]   ;;  %1053 = vmatprep.mubr.msk.bf16.mxu0 %vm457_vm0, %v1180_v6  ;;  %v1181_v18 = vld [vmem:[%s1287_s29 + $0x80] ss:$8 sps:$4 sm:$0xff]   ;;  %v1186_v20 = vld [vmem:[%s1287_s29 + $0x94] ss:$8 sps:$4 sm:$0xff]  }
  0x12   : > { %1061 = vmatprep.mubr.msk.bf16.mxu1 %vm457_vm0, %v1183_v7  ;;  %v1188_v21 = vld [vmem:[%s1287_s29 + $0x10] ss:$8 sps:$4 sm:$0xff]   ;;  %v1190_v23 = vld [vmem:[%s1287_s29 + $0x24] ss:$8 sps:$4 sm:$0xff]   ;;  %v1194_v25 = vld [vmem:[%s1287_s29 + $0x20] ss:$8 sps:$4 sm:$0xff]  }
  0x13   : > { %520 = vmatpush1.bf16.msra.mxu0 %v1171_v4  ;;  %1151 = vmatpush1.bf16.msra.mxu1 %v1171_v4  ;;  %v1189_v22 = vld [vmem:[%s1287_s29 + $0x90] ss:$8 sps:$4 sm:$0xff]   ;;  %v1192_v24 = vld [vmem:[%s1287_s29 + $0xa4] ss:$8 sps:$4 sm:$0xff]   ;;  %v1195_v26 = vld [vmem:[%s1287_s29 + $0xa0] ss:$8 sps:$4 sm:$0xff]  }
  0x14   : > { %521 = vmatprep.subr.bf16.mxu0 %v1234_v1  ;;  %1142 = vmatprep.subr.bf16.mxu1 %v1234_v1  ;;  %v1196_v27 = vld [vmem:[%s1287_s29 + $0x34] ss:$8 sps:$4 sm:$0xff]   ;;  %v1200_v29 = vld [vmem:[%s1287_s29 + $0x30] ss:$8 sps:$4 sm:$0xff]   ;;  %v1202_v31 = vld [vmem:[%s1287_s29 + $0x44] ss:$8 sps:$4 sm:$0xff]  }
  0x15   : > { %v1198_v28 = vld [vmem:[%s1287_s29 + $0xb4] ss:$8 sps:$4 sm:$0xff]   ;;  %v1201_v30 = vld [vmem:[%s1287_s29 + $0xb0] ss:$8 sps:$4 sm:$0xff]   ;;  %v1204_v32 = vld [vmem:[%s1287_s29 + $0xc4] ss:$8 sps:$4 sm:$0xff]  }
  0x16   : > { %v1206_v33 = vld [vmem:[%s1287_s29 + $0x40] ss:$8 sps:$4 sm:$0xff]   ;;  %v1208_v35 = vld [vmem:[%s1287_s29 + $0x54] ss:$8 sps:$4 sm:$0xff]   ;;  %v1212_v37 = vld [vmem:[%s1287_s29 + $0x50] ss:$8 sps:$4 sm:$0xff]  }
  0x17   : > { %522 = vmatpush1.bf16.msra.mxu0 %v1172_v5  ;;  %1152 = vmatpush1.bf16.msra.mxu1 %v1172_v5  ;;  %v1207_v34 = vld [vmem:[%s1287_s29 + $0xc0] ss:$8 sps:$4 sm:$0xff]   ;;  %v1210_v36 = vld [vmem:[%s1287_s29 + $0xd4] ss:$8 sps:$4 sm:$0xff]   ;;  %v1213_v38 = vld [vmem:[%s1287_s29 + $0xd0] ss:$8 sps:$4 sm:$0xff]  }
  0x18   : > { %523 = vmatprep.subr.bf16.mxu0 %v1234_v1  ;;  %1143 = vmatprep.subr.bf16.mxu1 %v1234_v1  ;;  %v1214_v39 = vld [vmem:[%s1287_s29 + $0x64] ss:$8 sps:$4 sm:$0xff]   ;;  %v1218_v41 = vld [vmem:[%s1287_s29 + $0x60] ss:$8 sps:$4 sm:$0xff]   ;;  %v1220_v43 = vld [vmem:[%s1287_s29 + $0x74] ss:$8 sps:$4 sm:$0xff]  }
  0x19   : > { %v1216_v40 = vld [vmem:[%s1287_s29 + $0xe4] ss:$8 sps:$4 sm:$0xff]   ;;  %v1219_v42 = vld [vmem:[%s1287_s29 + $0xe0] ss:$8 sps:$4 sm:$0xff]   ;;  %v1222_v44 = vld [vmem:[%s1287_s29 + $0xf4] ss:$8 sps:$4 sm:$0xff]  }
  0x1a   : > { %v1224_v45 = vld [vmem:[%s1287_s29 + $0x70] ss:$8 sps:$4 sm:$0xff]  }
  0x1b   : > { %524 = vmatpush1.bf16.msra.mxu0 %v1173_v8  ;;  %1153 = vmatpush1.bf16.msra.mxu1 %v1173_v8  ;;  %v1225_v46 = vld [vmem:[%s1287_s29 + $0xf0] ss:$8 sps:$4 sm:$0xff]  }
  0x1c   : > { %525 = vmatprep.subr.bf16.mxu0 %v1234_v1  ;;  %1144 = vmatprep.subr.bf16.mxu1 %v1234_v1 }
  0x1f   : > { %526 = vmatpush1.bf16.msra.mxu0 %v1174_v9  ;;  %1154 = vmatpush1.bf16.msra.mxu1 %v1174_v9 }
  0x20   : > { %527 = vmatprep.subr.bf16.mxu0 %v1234_v1  ;;  %1145 = vmatprep.subr.bf16.mxu1 %v1234_v1 }
  0x23   : > { %528 = vmatpush1.bf16.msra.mxu0 %v1175_v10  ;;  %1155 = vmatpush1.bf16.msra.mxu1 %v1175_v10 }
  0x24   : > { %529 = vmatprep.subr.bf16.mxu0 %v1234_v1  ;;  %1146 = vmatprep.subr.bf16.mxu1 %v1234_v1 }
  0x27   : > { %530 = vmatpush1.bf16.msra.mxu0 %v1176_v13  ;;  %1156 = vmatpush1.bf16.msra.mxu1 %v1176_v13 }
  0x28   : > { %531 = vmatprep.subr.bf16.mxu0 %v1234_v1  ;;  %1147 = vmatprep.subr.bf16.mxu1 %v1234_v1 }
  0x2b   : > { %532 = vmatpush1.bf16.msra.mxu0 %v511_v16  ;;  %1157 = vmatpush1.bf16.msra.mxu1 %v511_v16 }
  0x2e   : > { %546 = vmatmul.mubr.bf16.vlgmr.msra.gmra.mrb[0].mxu0 %v1178_v17  ;;  %610 = vmatmul.mubr.bf16.vlgmr.msra.gmra.mrb[0].mxu1 %v1181_v18 }
  0x2f   : > { %1054 = vmatprep.mubr.msk.bf16.mxu0 %vm457_vm0, %v1184_v19  ;;  %1062 = vmatprep.mubr.msk.bf16.mxu1 %vm457_vm0, %v1186_v20 }
  0x36   : > { %554 = vmatmul.mubr.bf16.gmra.mrb[4].mxu0 %v1188_v21  ;;  %618 = vmatmul.mubr.bf16.gmra.mrb[4].mxu1 %v1189_v22 }
  0x37   : > { %1055 = vmatprep.mubr.msk.bf16.mxu0 %vm457_vm0, %v1190_v23  ;;  %1063 = vmatprep.mubr.msk.bf16.mxu1 %vm457_vm0, %v1192_v24 }
  0x3e   : > { %562 = vmatmul.mubr.bf16.gmra.mrb[8].mxu0 %v1194_v25  ;;  %626 = vmatmul.mubr.bf16.gmra.mrb[8].mxu1 %v1195_v26 }
  0x3f   : > { %1056 = vmatprep.mubr.msk.bf16.mxu0 %vm457_vm0, %v1196_v27  ;;  %1064 = vmatprep.mubr.msk.bf16.mxu1 %vm457_vm0, %v1198_v28 }
  0x46   : > { %570 = vmatmul.mubr.bf16.gmra.mrb[12].mxu0 %v1200_v29  ;;  %634 = vmatmul.mubr.bf16.gmra.mrb[12].mxu1 %v1201_v30 }
  0x47   : > { %1057 = vmatprep.mubr.msk.bf16.mxu0 %vm457_vm0, %v1202_v31  ;;  %1065 = vmatprep.mubr.msk.bf16.mxu1 %vm457_vm0, %v1204_v32 }
  0x4e   : > { %578 = vmatmul.mubr.bf16.gmra.mrb[16].mxu0 %v1206_v33  ;;  %642 = vmatmul.mubr.bf16.gmra.mrb[16].mxu1 %v1207_v34 }
  0x4f   : > { %1058 = vmatprep.mubr.msk.bf16.mxu0 %vm457_vm0, %v1208_v35  ;;  %1066 = vmatprep.mubr.msk.bf16.mxu1 %vm457_vm0, %v1210_v36 }
  0x56   : > { %586 = vmatmul.mubr.bf16.gmra.mrb[20].mxu0 %v1212_v37  ;;  %650 = vmatmul.mubr.bf16.gmra.mrb[20].mxu1 %v1213_v38 }
  0x57   : > { %1059 = vmatprep.mubr.msk.bf16.mxu0 %vm457_vm0, %v1214_v39  ;;  %1067 = vmatprep.mubr.msk.bf16.mxu1 %vm457_vm0, %v1216_v40 }
  0x5e   : > { %594 = vmatmul.mubr.bf16.gmra.mrb[24].mxu0 %v1218_v41  ;;  %658 = vmatmul.mubr.bf16.gmra.mrb[24].mxu1 %v1219_v42 }
  0x5f   : > { %1060 = vmatprep.mubr.msk.bf16.mxu0 %vm457_vm0, %v1220_v43  ;;  %1068 = vmatprep.mubr.msk.bf16.mxu1 %vm457_vm0, %v1222_v44 }
  0x66   : > { %602 = vmatmul.mubr.bf16.gmra.mrb[28].mxu0 %v1224_v45  ;;  %666 = vmatmul.mubr.bf16.gmra.mrb[28].mxu1 %v1225_v46 }
 0x101   : > { %v547_v48 = vpop.f32.mrb[0].mxu0  ;;  %v611_v50 = vpop.f32.mrb[0].mxu1 }
 0x102   : > { %v681_v51 = vmul.f32 %v1358_v47, %v547_v48  ;;  %v697_v52 = vmul.f32 %v1358_v47, %v611_v50  ;;  %v549_v53 = vpop.f32.mrb[1].mxu0  ;;  %v613_v54 = vpop.f32.mrb[1].mxu1 }
 0x103   : > { %v550_v55 = vpop.f32.mrb[2].mxu0  ;;  %v614_v56 = vpop.f32.mrb[2].mxu1 }
 0x104   : > { %v720_v57 = vadd.f32 %v1363_v49, %v681_v51  ;;  %v736_v58 = vadd.f32 %v1363_v49, %v697_v52  ;;  %v682_v59 = vmul.f32 %v1358_v47, %v550_v55  ;;  %v698_v60 = vmul.f32 %v1358_v47, %v614_v56  ;;  %v552_v61 = vpop.f32.mrb[3].mxu0  ;;  %v616_v62 = vpop.f32.mrb[3].mxu1 }
 0x106   : > { %v752_v63 = vmax.f32 %v720_v57, 0.0  ;;  %v768_v0 = vmax.f32 %v736_v58, 0.0  ;;  %v721_v1 = vadd.f32 %v1363_v49, %v682_v59  ;;  %v737_v2 = vadd.f32 %v1363_v49, %v698_v60 }
 0x108   : > { %v1106_v3 = vpack.c.bf16 %v752_v63, %v752_v63  ;;  %v1122_v4 = vpack.c.bf16 %v768_v0, %v768_v0  ;;  %v753_v5 = vmax.f32 %v721_v1, 0.0  ;;  %v769_v6 = vmax.f32 %v737_v2, 0.0 }
 0x109   : > { %v555_v7 = vpop.f32.mrb[4].mxu0  ;;  %v619_v8 = vpop.f32.mrb[4].mxu1 }
 0x10a   : > { %913 = vst.msk [vmem:[%s1377_s23] sm:$0xf] %vm912_vm3, %v1106_v3  ;;  %929 = vst.msk [vmem:[%s1377_s23 + $0x40] sm:$0xf] %vm912_vm3, %v1122_v4  ;;  %v1107_v9 = vpack.c.bf16 %v753_v5, %v753_v5  ;;  %v1123_v10 = vpack.c.bf16 %v769_v6, %v769_v6  ;;  %v683_v11 = vmul.f32 %v1358_v47, %v555_v7  ;;  %v557_v13 = vpop.f32.mrb[5].mxu0  ;;  %v621_v14 = vpop.f32.mrb[5].mxu1 }
 0x10b   : > { %v699_v12 = vmul.f32 %v1358_v47, %v619_v8  ;;  %v558_v15 = vpop.f32.mrb[6].mxu0  ;;  %v622_v16 = vpop.f32.mrb[6].mxu1 }
 0x10c   : > { %914 = vst.msk [vmem:[%s1377_s23 + $0x4] sm:$0xf] %vm912_vm3, %v1107_v9  ;;  %930 = vst.msk [vmem:[%s1377_s23 + $0x44] sm:$0xf] %vm912_vm3, %v1123_v10  ;;  %v722_v17 = vadd.f32 %v1363_v49, %v683_v11  ;;  %v684_v19 = vmul.f32 %v1358_v47, %v558_v15  ;;  %v700_v20 = vmul.f32 %v1358_v47, %v622_v16  ;;  %v560_v21 = vpop.f32.mrb[7].mxu0  ;;  %v624_v22 = vpop.f32.mrb[7].mxu1 }
 0x10d   : > { %v738_v18 = vadd.f32 %v1363_v49, %v699_v12 }
 0x10e   : > { %v754_v23 = vmax.f32 %v722_v17, 0.0  ;;  %v723_v25 = vadd.f32 %v1363_v49, %v684_v19  ;;  %v739_v26 = vadd.f32 %v1363_v49, %v700_v20 }
 0x10f   : > { %v770_v24 = vmax.f32 %v738_v18, 0.0 }
 0x110   : > { %v1108_v27 = vpack.c.bf16 %v754_v23, %v754_v23  ;;  %v755_v29 = vmax.f32 %v723_v25, 0.0  ;;  %v771_v30 = vmax.f32 %v739_v26, 0.0 }
 0x111   : > { %v1124_v28 = vpack.c.bf16 %v770_v24, %v770_v24  ;;  %v563_v31 = vpop.f32.mrb[8].mxu0  ;;  %v627_v32 = vpop.f32.mrb[8].mxu1 }
 0x112   : > { %915 = vst.msk [vmem:[%s1377_s23 + $0x8] sm:$0xf] %vm912_vm3, %v1108_v27  ;;  %v1109_v33 = vpack.c.bf16 %v755_v29, %v755_v29  ;;  %v1125_v34 = vpack.c.bf16 %v771_v30, %v771_v30  ;;  %v685_v35 = vmul.f32 %v1358_v47, %v563_v31  ;;  %v701_v36 = vmul.f32 %v1358_v47, %v627_v32  ;;  %v565_v37 = vpop.f32.mrb[9].mxu0  ;;  %v629_v38 = vpop.f32.mrb[9].mxu1 }
 0x113   : > { %931 = vst.msk [vmem:[%s1377_s23 + $0x48] sm:$0xf] %vm912_vm3, %v1124_v28  ;;  %v566_v39 = vpop.f32.mrb[10].mxu0  ;;  %v630_v40 = vpop.f32.mrb[10].mxu1 }
 0x114   : > { %916 = vst.msk [vmem:[%s1377_s23 + $0xc] sm:$0xf] %vm912_vm3, %v1109_v33  ;;  %932 = vst.msk [vmem:[%s1377_s23 + $0x4c] sm:$0xf] %vm912_vm3, %v1125_v34  ;;  %v724_v41 = vadd.f32 %v1363_v49, %v685_v35  ;;  %v740_v42 = vadd.f32 %v1363_v49, %v701_v36  ;;  %v686_v43 = vmul.f32 %v1358_v47, %v566_v39  ;;  %v568_v45 = vpop.f32.mrb[11].mxu0  ;;  %v632_v46 = vpop.f32.mrb[11].mxu1 }
 0x115   : > { %v702_v44 = vmul.f32 %v1358_v47, %v630_v40 }
 0x116   : > { %v756_v48 = vmax.f32 %v724_v41, 0.0  ;;  %v772_v50 = vmax.f32 %v740_v42, 0.0  ;;  %v725_v51 = vadd.f32 %v1363_v49, %v686_v43 }
 0x117   : > { %v741_v52 = vadd.f32 %v1363_v49, %v702_v44 }
 0x118   : > { %v1110_v53 = vpack.c.bf16 %v756_v48, %v756_v48  ;;  %v1126_v54 = vpack.c.bf16 %v772_v50, %v772_v50  ;;  %v757_v55 = vmax.f32 %v725_v51, 0.0 }
 0x119   : > { %v773_v56 = vmax.f32 %v741_v52, 0.0  ;;  %v571_v57 = vpop.f32.mrb[12].mxu0  ;;  %v635_v58 = vpop.f32.mrb[12].mxu1 }
 0x11a   : > { %917 = vst.msk [vmem:[%s1377_s23 + $0x10] sm:$0xf] %vm912_vm3, %v1110_v53  ;;  %933 = vst.msk [vmem:[%s1377_s23 + $0x50] sm:$0xf] %vm912_vm3, %v1126_v54  ;;  %v1111_v59 = vpack.c.bf16 %v757_v55, %v757_v55  ;;  %v687_v61 = vmul.f32 %v1358_v47, %v571_v57  ;;  %v703_v62 = vmul.f32 %v1358_v47, %v635_v58  ;;  %v573_v63 = vpop.f32.mrb[13].mxu0  ;;  %v637_v0 = vpop.f32.mrb[13].mxu1 }
 0x11b   : > { %v1127_v60 = vpack.c.bf16 %v773_v56, %v773_v56  ;;  %v574_v1 = vpop.f32.mrb[14].mxu0  ;;  %v638_v2 = vpop.f32.mrb[14].mxu1 }
 0x11c   : > { %918 = vst.msk [vmem:[%s1377_s23 + $0x14] sm:$0xf] %vm912_vm3, %v1111_v59  ;;  %v726_v3 = vadd.f32 %v1363_v49, %v687_v61  ;;  %v742_v4 = vadd.f32 %v1363_v49, %v703_v62  ;;  %v688_v5 = vmul.f32 %v1358_v47, %v574_v1  ;;  %v704_v6 = vmul.f32 %v1358_v47, %v638_v2  ;;  %v576_v7 = vpop.f32.mrb[15].mxu0  ;;  %v640_v8 = vpop.f32.mrb[15].mxu1 }
 0x11d   : > { %934 = vst.msk [vmem:[%s1377_s23 + $0x54] sm:$0xf] %vm912_vm3, %v1127_v60 }
 0x11e   : > { %v758_v9 = vmax.f32 %v726_v3, 0.0  ;;  %v774_v10 = vmax.f32 %v742_v4, 0.0  ;;  %v727_v11 = vadd.f32 %v1363_v49, %v688_v5  ;;  %v743_v12 = vadd.f32 %v1363_v49, %v704_v6 }
 0x120   : > { %v1112_v13 = vpack.c.bf16 %v758_v9, %v758_v9  ;;  %v1128_v14 = vpack.c.bf16 %v774_v10, %v774_v10  ;;  %v759_v15 = vmax.f32 %v727_v11, 0.0  ;;  %v775_v16 = vmax.f32 %v743_v12, 0.0 }
 0x121   : > { %v579_v17 = vpop.f32.mrb[16].mxu0  ;;  %v643_v18 = vpop.f32.mrb[16].mxu1 }
 0x122   : > { %919 = vst.msk [vmem:[%s1377_s23 + $0x18] sm:$0xf] %vm912_vm3, %v1112_v13  ;;  %935 = vst.msk [vmem:[%s1377_s23 + $0x58] sm:$0xf] %vm912_vm3, %v1128_v14  ;;  %v1113_v19 = vpack.c.bf16 %v759_v15, %v759_v15  ;;  %v1129_v20 = vpack.c.bf16 %v775_v16, %v775_v16  ;;  %v689_v21 = vmul.f32 %v1358_v47, %v579_v17  ;;  %v581_v23 = vpop.f32.mrb[17].mxu0  ;;  %v645_v24 = vpop.f32.mrb[17].mxu1 }
 0x123   : > { %v705_v22 = vmul.f32 %v1358_v47, %v643_v18  ;;  %v582_v25 = vpop.f32.mrb[18].mxu0  ;;  %v646_v26 = vpop.f32.mrb[18].mxu1 }
 0x124   : > { %920 = vst.msk [vmem:[%s1377_s23 + $0x1c] sm:$0xf] %vm912_vm3, %v1113_v19  ;;  %936 = vst.msk [vmem:[%s1377_s23 + $0x5c] sm:$0xf] %vm912_vm3, %v1129_v20  ;;  %v728_v27 = vadd.f32 %v1363_v49, %v689_v21  ;;  %v690_v29 = vmul.f32 %v1358_v47, %v582_v25  ;;  %v706_v30 = vmul.f32 %v1358_v47, %v646_v26  ;;  %v584_v31 = vpop.f32.mrb[19].mxu0  ;;  %v648_v32 = vpop.f32.mrb[19].mxu1 }
 0x125   : > { %v744_v28 = vadd.f32 %v1363_v49, %v705_v22 }
 0x126   : > { %v760_v33 = vmax.f32 %v728_v27, 0.0  ;;  %v729_v35 = vadd.f32 %v1363_v49, %v690_v29  ;;  %v745_v36 = vadd.f32 %v1363_v49, %v706_v30 }
 0x127   : > { %v776_v34 = vmax.f32 %v744_v28, 0.0 }
 0x128   : > { %v1114_v37 = vpack.c.bf16 %v760_v33, %v760_v33  ;;  %v761_v39 = vmax.f32 %v729_v35, 0.0  ;;  %v777_v40 = vmax.f32 %v745_v36, 0.0 }
 0x129   : > { %v1130_v38 = vpack.c.bf16 %v776_v34, %v776_v34  ;;  %v587_v41 = vpop.f32.mrb[20].mxu0  ;;  %v651_v42 = vpop.f32.mrb[20].mxu1 }
 0x12a   : > { %921 = vst.msk [vmem:[%s1377_s23 + $0x20] sm:$0xf] %vm912_vm3, %v1114_v37  ;;  %v1115_v43 = vpack.c.bf16 %v761_v39, %v761_v39  ;;  %v1131_v44 = vpack.c.bf16 %v777_v40, %v777_v40  ;;  %v691_v45 = vmul.f32 %v1358_v47, %v587_v41  ;;  %v707_v46 = vmul.f32 %v1358_v47, %v651_v42  ;;  %v589_v48 = vpop.f32.mrb[21].mxu0  ;;  %v653_v50 = vpop.f32.mrb[21].mxu1 }
 0x12b   : > { %937 = vst.msk [vmem:[%s1377_s23 + $0x60] sm:$0xf] %vm912_vm3, %v1130_v38  ;;  %v590_v51 = vpop.f32.mrb[22].mxu0  ;;  %v654_v52 = vpop.f32.mrb[22].mxu1 }
 0x12c   : > { %922 = vst.msk [vmem:[%s1377_s23 + $0x24] sm:$0xf] %vm912_vm3, %v1115_v43  ;;  %938 = vst.msk [vmem:[%s1377_s23 + $0x64] sm:$0xf] %vm912_vm3, %v1131_v44  ;;  %v730_v53 = vadd.f32 %v1363_v49, %v691_v45  ;;  %v746_v54 = vadd.f32 %v1363_v49, %v707_v46  ;;  %v692_v55 = vmul.f32 %v1358_v47, %v590_v51  ;;  %v592_v57 = vpop.f32.mrb[23].mxu0  ;;  %v656_v58 = vpop.f32.mrb[23].mxu1 }
 0x12d   : > { %v708_v56 = vmul.f32 %v1358_v47, %v654_v52 }
 0x12e   : > { %v762_v59 = vmax.f32 %v730_v53, 0.0  ;;  %v778_v60 = vmax.f32 %v746_v54, 0.0  ;;  %v731_v61 = vadd.f32 %v1363_v49, %v692_v55 }
 0x12f   : > { %v747_v62 = vadd.f32 %v1363_v49, %v708_v56 }
 0x130   : > { %v1116_v63 = vpack.c.bf16 %v762_v59, %v762_v59  ;;  %v1132_v0 = vpack.c.bf16 %v778_v60, %v778_v60  ;;  %v763_v1 = vmax.f32 %v731_v61, 0.0 }
 0x131   : > { %v779_v2 = vmax.f32 %v747_v62, 0.0  ;;  %v595_v3 = vpop.f32.mrb[24].mxu0  ;;  %v659_v4 = vpop.f32.mrb[24].mxu1 }
 0x132   : > { %923 = vst.msk [vmem:[%s1377_s23 + $0x28] sm:$0xf] %vm912_vm3, %v1116_v63  ;;  %939 = vst.msk [vmem:[%s1377_s23 + $0x68] sm:$0xf] %vm912_vm3, %v1132_v0  ;;  %v1117_v5 = vpack.c.bf16 %v763_v1, %v763_v1  ;;  %v693_v7 = vmul.f32 %v1358_v47, %v595_v3  ;;  %v709_v8 = vmul.f32 %v1358_v47, %v659_v4  ;;  %v597_v9 = vpop.f32.mrb[25].mxu0  ;;  %v661_v10 = vpop.f32.mrb[25].mxu1 }
 0x133   : > { %v1133_v6 = vpack.c.bf16 %v779_v2, %v779_v2  ;;  %v598_v11 = vpop.f32.mrb[26].mxu0  ;;  %v662_v12 = vpop.f32.mrb[26].mxu1 }
 0x134   : > { %924 = vst.msk [vmem:[%s1377_s23 + $0x2c] sm:$0xf] %vm912_vm3, %v1117_v5  ;;  %v732_v13 = vadd.f32 %v1363_v49, %v693_v7  ;;  %v748_v14 = vadd.f32 %v1363_v49, %v709_v8  ;;  %v694_v15 = vmul.f32 %v1358_v47, %v598_v11  ;;  %v710_v16 = vmul.f32 %v1358_v47, %v662_v12  ;;  %v600_v17 = vpop.f32.mrb[27].mxu0  ;;  %v664_v18 = vpop.f32.mrb[27].mxu1 }
 0x135   : > { %940 = vst.msk [vmem:[%s1377_s23 + $0x6c] sm:$0xf] %vm912_vm3, %v1133_v6 }
 0x136   : > { %v764_v19 = vmax.f32 %v732_v13, 0.0  ;;  %v780_v20 = vmax.f32 %v748_v14, 0.0  ;;  %v733_v21 = vadd.f32 %v1363_v49, %v694_v15  ;;  %v749_v22 = vadd.f32 %v1363_v49, %v710_v16 }
 0x138   : > { %v1118_v23 = vpack.c.bf16 %v764_v19, %v764_v19  ;;  %v1134_v24 = vpack.c.bf16 %v780_v20, %v780_v20  ;;  %v765_v25 = vmax.f32 %v733_v21, 0.0  ;;  %v781_v26 = vmax.f32 %v749_v22, 0.0 }
 0x139   : > { %v603_v27 = vpop.f32.mrb[28].mxu0  ;;  %v667_v28 = vpop.f32.mrb[28].mxu1 }
 0x13a   : > { %925 = vst.msk [vmem:[%s1377_s23 + $0x30] sm:$0xf] %vm912_vm3, %v1118_v23  ;;  %941 = vst.msk [vmem:[%s1377_s23 + $0x70] sm:$0xf] %vm912_vm3, %v1134_v24  ;;  %v1119_v29 = vpack.c.bf16 %v765_v25, %v765_v25  ;;  %v1135_v30 = vpack.c.bf16 %v781_v26, %v781_v26  ;;  %v695_v31 = vmul.f32 %v1358_v47, %v603_v27  ;;  %v605_v33 = vpop.f32.mrb[29].mxu0  ;;  %v669_v34 = vpop.f32.mrb[29].mxu1 }
 0x13b   : > { %v711_v32 = vmul.f32 %v1358_v47, %v667_v28  ;;  %v606_v35 = vpop.f32.mrb[30].mxu0  ;;  %v670_v36 = vpop.f32.mrb[30].mxu1 }
 0x13c   : > { %926 = vst.msk [vmem:[%s1377_s23 + $0x34] sm:$0xf] %vm912_vm3, %v1119_v29  ;;  %942 = vst.msk [vmem:[%s1377_s23 + $0x74] sm:$0xf] %vm912_vm3, %v1135_v30  ;;  %v734_v37 = vadd.f32 %v1363_v49, %v695_v31  ;;  %v696_v39 = vmul.f32 %v1358_v47, %v606_v35  ;;  %v712_v40 = vmul.f32 %v1358_v47, %v670_v36  ;;  %v608_v41 = vpop.f32.mrb[31].mxu0  ;;  %v672_v42 = vpop.f32.mrb[31].mxu1 }
 0x13d   : > { %v750_v38 = vadd.f32 %v1363_v49, %v711_v32 }
 0x13e   : > { %v766_v43 = vmax.f32 %v734_v37, 0.0  ;;  %v735_v45 = vadd.f32 %v1363_v49, %v696_v39  ;;  %v751_v46 = vadd.f32 %v1363_v49, %v712_v40 }
 0x13f   : > { %v782_v44 = vmax.f32 %v750_v38, 0.0 }
 0x140   : > { %v1120_v48 = vpack.c.bf16 %v766_v43, %v766_v43  ;;  %v767_v51 = vmax.f32 %v735_v45, 0.0  ;;  %v783_v52 = vmax.f32 %v751_v46, 0.0 }
 0x141   : > { %v1136_v50 = vpack.c.bf16 %v782_v44, %v782_v44 }
 0x142   : > { %927 = vst.msk [vmem:[%s1377_s23 + $0x38] sm:$0xf] %vm912_vm3, %v1120_v48  ;;  %v1121_v53 = vpack.c.bf16 %v767_v51, %v767_v51  ;;  %v1137_v54 = vpack.c.bf16 %v783_v52, %v783_v52 }
 0x143   : > { %943 = vst.msk [vmem:[%s1377_s23 + $0x78] sm:$0xf] %vm912_vm3, %v1136_v50 }
 0x144   : > { %928 = vst.msk [vmem:[%s1377_s23 + $0x3c] sm:$0xf] %vm912_vm3, %v1121_v53  ;;  %944 = vst.msk [vmem:[%s1377_s23 + $0x7c] sm:$0xf] %vm912_vm3, %v1137_v54 }
 0x145 PF: > { %s14_s15 = sadd.s32 1, %s1232_s15  }
 0x146   : > { %p11_p4 = scmp.ge.s32.totalorder %s14_s15, 4  }
 0x148   :  { %13 = sbr.rel (!%p11_p4) target bundleno = 1 (0x1), region = 66 }

// kernel: densenet_with_head_forward.30
= control target key start
LH: loop header
LB: loop body
LE: loop exit
PB: predicated region body
PF: predicated region fallthrough
CT: control target
= control target key end

     0   :  { %vm134_vm0 = vcmask 130048   ;;  %vm382_vm1 = vcmask 257024   ;;  %s735_s1 = inlined_call_operand.vmem [shape: bf16[16,32], index: 1, kind: input, shape index: {}]   ;;  %s736_s0 = inlined_call_operand.vmem [shape: bf16[128,16], index: 0, kind: input, shape index: {}]   ;;  %s737_s2 = inlined_call_operand.vmem [shape: f32[1,16], index: 2, kind: input, shape index: {}]   ;;  %s738_s3 = inlined_call_operand.vmem [shape: f32[1,16], index: 3, kind: input, shape index: {}]   ;;  %s739_s4 = inlined_call_operand.vmem [shape: f32[1,32], index: 4, kind: input, shape index: {}]   ;;  %s740_s5 = inlined_call_operand.vmem [shape: f32[1,32], index: 5, kind: input, shape index: {}]   ;;  %s741_s6 = inlined_call_operand.vmem [shape: bf16[128,32], index: 6, kind: output, shape index: {}]  }
   0x1   :  { %v516_v0 = vld [vmem:[%s735_s1] sm:$0xff]   ;;  %v480_v6 = vld [vmem:[%s736_s0 + $0x8] sm:$0xff]   ;;  %v481_v29 = vld [vmem:[%s736_s0 + $0x10] sm:$0xff]  }
   0x2   :  { %v449_v1 = vld [vmem:[%s736_s0] sm:$0xff]   ;;  %496 = vmatprep.subr.bf16.mxu0 %v516_v0  ;;  %514 = vmatprep.subr.bf16.mxu1 %v516_v0  ;;  %v484_v7 = vld [vmem:[%s736_s0 + $0x28] sm:$0xff]   ;;  %v454_v11 = vunpack.c.l.bf16 %v480_v6  ;;  %v455_v12 = vunpack.c.h.bf16 %v480_v6  ;;  %v485_v34 = vld [vmem:[%s736_s0 + $0x30] sm:$0xff]   ;;  %v458_v43 = vunpack.c.l.bf16 %v481_v29  ;;  %v459_v47 = vunpack.c.h.bf16 %v481_v29 }
   0x3   :  { %v561_v2 = vld [vmem:[%s737_s2] ss:$0 sm:$0xff]  ;;  %v450_v3 = vunpack.c.l.bf16 %v449_v1  ;;  %v451_v4 = vunpack.c.h.bf16 %v449_v1  ;;  %497 = vmatpush3.bf16.msra.mxu0 %v516_v0  ;;  %515 = vmatpush3.bf16.msra.mxu1 %v516_v0  ;;  %v470_v15 = vunpack.c.l.bf16 %v484_v7  ;;  %v471_v16 = vunpack.c.h.bf16 %v484_v7  ;;  %v482_v39 = vld [vmem:[%s736_s0 + $0x18] sm:$0xff]  }
   0x4   :  { %v483_v5 = vld [vmem:[%s736_s0 + $0x20] sm:$0xff]   ;;  %v65_v19 = vmul.f32 %v454_v11, %v561_v2  ;;  %v66_v20 = vmul.f32 %v455_v12, %v561_v2  ;;  %v486_v44 = vld [vmem:[%s736_s0 + $0x38] sm:$0xff]   ;;  %v474_v48 = vunpack.c.l.bf16 %v485_v34  ;;  %v67_v50 = vmul.f32 %v458_v43, %v561_v2 }
   0x5   :  { %v575_v8 = vld [vmem:[%s738_s3] ss:$0 sm:$0xff]  ;;  %v466_v9 = vunpack.c.l.bf16 %v483_v5  ;;  %v467_v10 = vunpack.c.h.bf16 %v483_v5  ;;  %v63_v13 = vmul.f32 %v450_v3, %v561_v2  ;;  %v64_v14 = vmul.f32 %v451_v4, %v561_v2 }
   0x6   :  { %v73_v23 = vmul.f32 %v470_v15, %v561_v2  ;;  %v74_v24 = vmul.f32 %v471_v16, %v561_v2  ;;  %v88_v27 = vadd.f32 %v575_v8, %v65_v19  ;;  %v89_v28 = vadd.f32 %v575_v8, %v66_v20  ;;  %v632_v20 = vld [vmem:[%s739_s4] ss:$0 sm:$0xff] }
   0x7   :  { %v71_v17 = vmul.f32 %v466_v9, %v561_v2  ;;  %v72_v18 = vmul.f32 %v467_v10, %v561_v2  ;;  %v86_v21 = vadd.f32 %v575_v8, %v63_v13  ;;  %v87_v22 = vadd.f32 %v575_v8, %v64_v14 }
   0x8   :  { %v96_v32 = vadd.f32 %v575_v8, %v73_v23  ;;  %v97_v33 = vadd.f32 %v575_v8, %v74_v24  ;;  %v104_v37 = vmax.f32 %v88_v27, 0.0  ;;  %v105_v38 = vmax.f32 %v89_v28, 0.0 }
   0x9   :  { %v94_v25 = vadd.f32 %v575_v8, %v71_v17  ;;  %v95_v26 = vadd.f32 %v575_v8, %v72_v18  ;;  %v102_v30 = vmax.f32 %v86_v21, 0.0  ;;  %v103_v31 = vmax.f32 %v87_v22, 0.0  ;;  %v637_v21 = vld [vmem:[%s740_s5] ss:$0 sm:$0xff] }
   0xa   :  { %v112_v41 = vmax.f32 %v96_v32, 0.0  ;;  %v113_v42 = vmax.f32 %v97_v33, 0.0  ;;  %v119_v46 = vpack.c.bf16 %v105_v38, %v104_v37  ;;  %v475_v51 = vunpack.c.h.bf16 %v485_v34 }
   0xb   :  { %v110_v35 = vmax.f32 %v94_v25, 0.0  ;;  %v111_v36 = vmax.f32 %v95_v26, 0.0  ;;  %v118_v40 = vpack.c.bf16 %v103_v31, %v102_v30  ;;  %v462_v52 = vunpack.c.l.bf16 %v482_v39 }
   0xc   :  { %v123_v49 = vpack.c.bf16 %v113_v42, %v112_v41  ;;  %v68_v53 = vmul.f32 %v459_v47, %v561_v2  ;;  %v75_v54 = vmul.f32 %v474_v48, %v561_v2  ;;  %v463_v55 = vunpack.c.h.bf16 %v482_v39 }
   0xd   :  { %v122_v45 = vpack.c.bf16 %v111_v36, %v110_v35  ;;  %498 = vmatprep.mubr.msk.bf16.mxu0 %vm134_vm0, %v118_v40  ;;  %v478_v56 = vunpack.c.l.bf16 %v486_v44  ;;  %v90_v57 = vadd.f32 %v575_v8, %v67_v50  ;;  %v76_v58 = vmul.f32 %v475_v51, %v561_v2 }
   0xe   :  { %499 = vmatmul.mubr.msk.bf16.vlgmr.msra.gmra.mrb[0].mxu0 %vm134_vm0, %v119_v46  ;;  %v69_v59 = vmul.f32 %v462_v52, %v561_v2  ;;  %v479_v60 = vunpack.c.h.bf16 %v486_v44  ;;  %v91_v61 = vadd.f32 %v575_v8, %v68_v53  ;;  %v98_v62 = vadd.f32 %v575_v8, %v75_v54 }
   0xf   :  { %506 = vmatprep.mubr.msk.bf16.mxu1 %vm134_vm0, %v122_v45  ;;  %v70_v63 = vmul.f32 %v463_v55, %v561_v2  ;;  %v77_v0 = vmul.f32 %v478_v56, %v561_v2  ;;  %v106_v1 = vmax.f32 %v90_v57, 0.0  ;;  %v99_v3 = vadd.f32 %v575_v8, %v76_v58 }
  0x10   :  { %507 = vmatmul.mubr.msk.bf16.vlgmr.msra.gmra.mrb[0].mxu1 %vm134_vm0, %v123_v49  ;;  %v92_v4 = vadd.f32 %v575_v8, %v69_v59  ;;  %v78_v5 = vmul.f32 %v479_v60, %v561_v2  ;;  %v107_v6 = vmax.f32 %v91_v61, 0.0  ;;  %v114_v7 = vmax.f32 %v98_v62, 0.0 }
  0x11   :  { %v93_v9 = vadd.f32 %v575_v8, %v70_v63  ;;  %v100_v10 = vadd.f32 %v575_v8, %v77_v0  ;;  %v115_v11 = vmax.f32 %v99_v3, 0.0 }
  0x12   :  { %v108_v12 = vmax.f32 %v92_v4, 0.0  ;;  %v101_v13 = vadd.f32 %v575_v8, %v78_v5  ;;  %v120_v14 = vpack.c.bf16 %v107_v6, %v106_v1 }
  0x13   :  { %v109_v15 = vmax.f32 %v93_v9, 0.0  ;;  %v116_v16 = vmax.f32 %v100_v10, 0.0  ;;  %v124_v17 = vpack.c.bf16 %v115_v11, %v114_v7 }
  0x14   :  { %v117_v18 = vmax.f32 %v101_v13, 0.0  ;;  %502 = vmatprep.mubr.msk.bf16.mxu0 %vm134_vm0, %v120_v14 }
  0x15   :  { %v121_v19 = vpack.c.bf16 %v109_v15, %v108_v12  ;;  %510 = vmatprep.mubr.msk.bf16.mxu1 %vm134_vm0, %v124_v17 }
  0x16   :  { %v125_v2 = vpack.c.bf16 %v117_v18, %v116_v16 }
  0x17   :  { %503 = vmatmul.mubr.msk.bf16.gmra.mrb[4].mxu0 %vm134_vm0, %v121_v19 }
  0x18   :  { %511 = vmatmul.mubr.msk.bf16.gmra.mrb[4].mxu1 %vm134_vm0, %v125_v2 }
  0xe1   :  { %v500_v8 = vpop.f32.mrb[0].mxu0 }
  0xe2   :  { %v265_v22 = vmul.f32 %v500_v8, %v632_v20  ;;  %v193_v24 = vpop.f32.mrb[1].mxu0 }
  0xe3   :  { %v508_v23 = vpop.f32.mrb[0].mxu1  ;;  %v263_v26 = vmul.f32 %v632_v20, %v193_v24  ;;  %v501_v28 = vpop.f32.mrb[2].mxu0 }
  0xe4   :  { %v273_v25 = vmul.f32 %v508_v23, %v632_v20  ;;  %v225_v27 = vpop.f32.mrb[1].mxu1  ;;  %v288_v29 = vadd.f32 %v637_v21, %v265_v22  ;;  %v266_v31 = vmul.f32 %v501_v28, %v632_v20  ;;  %v196_v33 = vpop.f32.mrb[3].mxu0 }
  0xe5   :  { %v271_v30 = vmul.f32 %v632_v20, %v225_v27  ;;  %v509_v32 = vpop.f32.mrb[2].mxu1  ;;  %v286_v35 = vadd.f32 %v637_v21, %v263_v26  ;;  %v264_v37 = vmul.f32 %v632_v20, %v196_v33 }
  0xe6   :  { %v296_v34 = vadd.f32 %v637_v21, %v273_v25  ;;  %v274_v36 = vmul.f32 %v509_v32, %v632_v20  ;;  %v228_v38 = vpop.f32.mrb[3].mxu1  ;;  %v304_v39 = vmax.f32 %v288_v29, 0.0  ;;  %v289_v41 = vadd.f32 %v637_v21, %v266_v31 }
  0xe7   :  { %v294_v40 = vadd.f32 %v637_v21, %v271_v30  ;;  %v272_v42 = vmul.f32 %v632_v20, %v228_v38  ;;  %v302_v44 = vmax.f32 %v286_v35, 0.0  ;;  %v287_v46 = vadd.f32 %v637_v21, %v264_v37 }
  0xe8   :  { %v312_v43 = vmax.f32 %v296_v34, 0.0  ;;  %v297_v45 = vadd.f32 %v637_v21, %v274_v36  ;;  %v434_v47 = vpack.c.bf16 %v304_v39, %v304_v39  ;;  %v305_v49 = vmax.f32 %v289_v41, 0.0 }
  0xe9   :  { %v310_v48 = vmax.f32 %v294_v40, 0.0  ;;  %v295_v50 = vadd.f32 %v637_v21, %v272_v42  ;;  %v432_v52 = vpack.c.bf16 %v302_v44, %v302_v44  ;;  %v303_v54 = vmax.f32 %v287_v46, 0.0 }
  0xea   :  { %v442_v51 = vpack.c.bf16 %v312_v43, %v312_v43  ;;  %v313_v53 = vmax.f32 %v297_v45, 0.0  ;;  %385 = vst.msk [vmem:[%s741_s6 + $0x8] sm:$0xf] %vm382_vm1, %v434_v47  ;;  %v435_v56 = vpack.c.bf16 %v305_v49, %v305_v49  ;;  %v504_v60 = vpop.f32.mrb[4].mxu0 }
  0xeb   :  { %v440_v55 = vpack.c.bf16 %v310_v48, %v310_v48  ;;  %v311_v57 = vmax.f32 %v295_v50, 0.0  ;;  %383 = vst.msk [vmem:[%s741_s6] sm:$0xf] %vm382_vm1, %v432_v52  ;;  %v433_v59 = vpack.c.bf16 %v303_v54, %v303_v54  ;;  %v269_v62 = vmul.f32 %v504_v60, %v632_v20  ;;  %v512_v63 = vpop.f32.mrb[4].mxu1  ;;  %v209_v0 = vpop.f32.mrb[5].mxu0 }
  0xec   :  { %393 = vst.msk [vmem:[%s741_s6 + $0x28] sm:$0xf] %vm382_vm1, %v442_v51  ;;  %v443_v58 = vpack.c.bf16 %v313_v53, %v313_v53  ;;  %386 = vst.msk [vmem:[%s741_s6 + $0xc] sm:$0xf] %vm382_vm1, %v435_v56  ;;  %v277_v1 = vmul.f32 %v512_v63, %v632_v20  ;;  %v267_v3 = vmul.f32 %v632_v20, %v209_v0  ;;  %v241_v4 = vpop.f32.mrb[5].mxu1  ;;  %v505_v5 = vpop.f32.mrb[6].mxu0 }
  0xed   :  { %391 = vst.msk [vmem:[%s741_s6 + $0x20] sm:$0xf] %vm382_vm1, %v440_v55  ;;  %v441_v61 = vpack.c.bf16 %v311_v57, %v311_v57  ;;  %384 = vst.msk [vmem:[%s741_s6 + $0x4] sm:$0xf] %vm382_vm1, %v433_v59  ;;  %v292_v6 = vadd.f32 %v637_v21, %v269_v62  ;;  %v275_v7 = vmul.f32 %v632_v20, %v241_v4  ;;  %v513_v10 = vpop.f32.mrb[6].mxu1  ;;  %v212_v11 = vpop.f32.mrb[7].mxu0 }
  0xee   :  { %394 = vst.msk [vmem:[%s741_s6 + $0x2c] sm:$0xf] %vm382_vm1, %v443_v58  ;;  %v270_v9 = vmul.f32 %v505_v5, %v632_v20  ;;  %v300_v12 = vadd.f32 %v637_v21, %v277_v1  ;;  %v290_v13 = vadd.f32 %v637_v21, %v267_v3  ;;  %v278_v14 = vmul.f32 %v513_v10, %v632_v20  ;;  %v244_v16 = vpop.f32.mrb[7].mxu1 }
  0xef   :  { %392 = vst.msk [vmem:[%s741_s6 + $0x24] sm:$0xf] %vm382_vm1, %v441_v61  ;;  %v268_v15 = vmul.f32 %v632_v20, %v212_v11  ;;  %v308_v17 = vmax.f32 %v292_v6, 0.0  ;;  %v298_v18 = vadd.f32 %v637_v21, %v275_v7  ;;  %v276_v2 = vmul.f32 %v632_v20, %v244_v16 }
  0xf0   :  { %v293_v19 = vadd.f32 %v637_v21, %v270_v9  ;;  %v316_v8 = vmax.f32 %v300_v12, 0.0  ;;  %v306_v22 = vmax.f32 %v290_v13, 0.0  ;;  %v301_v23 = vadd.f32 %v637_v21, %v278_v14 }
  0xf1   :  { %v291_v24 = vadd.f32 %v637_v21, %v268_v15  ;;  %v438_v25 = vpack.c.bf16 %v308_v17, %v308_v17  ;;  %v314_v26 = vmax.f32 %v298_v18, 0.0  ;;  %v299_v28 = vadd.f32 %v637_v21, %v276_v2 }
  0xf2   :  { %v309_v27 = vmax.f32 %v293_v19, 0.0  ;;  %v446_v29 = vpack.c.bf16 %v316_v8, %v316_v8  ;;  %v436_v30 = vpack.c.bf16 %v306_v22, %v306_v22  ;;  %v317_v31 = vmax.f32 %v301_v23, 0.0 }
  0xf3   :  { %v307_v32 = vmax.f32 %v291_v24, 0.0  ;;  %389 = vst.msk [vmem:[%s741_s6 + $0x18] sm:$0xf] %vm382_vm1, %v438_v25  ;;  %v444_v20 = vpack.c.bf16 %v314_v26, %v314_v26  ;;  %v315_v34 = vmax.f32 %v299_v28, 0.0 }
  0xf4   :  { %v439_v33 = vpack.c.bf16 %v309_v27, %v309_v27  ;;  %397 = vst.msk [vmem:[%s741_s6 + $0x38] sm:$0xf] %vm382_vm1, %v446_v29  ;;  %387 = vst.msk [vmem:[%s741_s6 + $0x10] sm:$0xf] %vm382_vm1, %v436_v30  ;;  %v447_v21 = vpack.c.bf16 %v317_v31, %v317_v31 }
  0xf5   :  { %v437_v35 = vpack.c.bf16 %v307_v32, %v307_v32  ;;  %395 = vst.msk [vmem:[%s741_s6 + $0x30] sm:$0xf] %vm382_vm1, %v444_v20  ;;  %v445_v36 = vpack.c.bf16 %v315_v34, %v315_v34 }
  0xf6   :  { %390 = vst.msk [vmem:[%s741_s6 + $0x1c] sm:$0xf] %vm382_vm1, %v439_v33  ;;  %398 = vst.msk [vmem:[%s741_s6 + $0x3c] sm:$0xf] %vm382_vm1, %v447_v21 }
  0xf7   :  { %388 = vst.msk [vmem:[%s741_s6 + $0x14] sm:$0xf] %vm382_vm1, %v437_v35  ;;  %396 = vst.msk [vmem:[%s741_s6 + $0x34] sm:$0xf] %vm382_vm1, %v445_v36 }

// kernel: densenet_with_head_forward.29
= control target key start
LH: loop header
LB: loop body
LE: loop exit
PB: predicated region body
PF: predicated region fallthrough
CT: control target
= control target key end

     0   :  { %vm512_vm0 = vcmask 125952   ;;  %s1322_s0 = inlined_call_operand.vmem [shape: bf16[128,16], index: 0, kind: input, shape index: {}]   ;;  %s1323_s1 = inlined_call_operand.vmem [shape: bf16[128,16], index: 1, kind: input, shape index: {}]   ;;  %s1324_s2 = inlined_call_operand.vmem [shape: bf16[128,16], index: 2, kind: input, shape index: {}]   ;;  %s1325_s3 = inlined_call_operand.vmem [shape: bf16[128,16], index: 3, kind: input, shape index: {}]   ;;  %s1326_s4 = inlined_call_operand.vmem [shape: bf16[128,16], index: 4, kind: input, shape index: {}]   ;;  %s1327_s5 = inlined_call_operand.vmem [shape: bf16[128,16], index: 5, kind: input, shape index: {}]   ;;  %s1328_s6 = inlined_call_operand.vmem [shape: bf16[128,16], index: 6, kind: input, shape index: {}]   ;;  %s1329_s7 = inlined_call_operand.vmem [shape: bf16[128,16], index: 7, kind: input, shape index: {}]   ;;  %s1330_s8 = inlined_call_operand.vmem [shape: bf16[128,16], index: 8, kind: input, shape index: {}]   ;;  %s1331_s9 = inlined_call_operand.vmem [shape: bf16[128,16], index: 9, kind: output, shape index: {}]  }
   0x1   :  { %v566_v0 = vld [vmem:[%s1322_s0] sm:$0xff]   ;;  %v853_v17 = vld [vmem:[%s1322_s0 + $0x8] sm:$0xff]   ;;  %v854_v54 = vld [vmem:[%s1322_s0 + $0x10] sm:$0xff]  }
   0x2   :  { %v598_v1 = vld [vmem:[%s1323_s1] sm:$0xff]   ;;  %v567_v3 = vunpack.c.l.bf16 %v566_v0  ;;  %v568_v9 = vunpack.c.h.bf16 %v566_v0  ;;  %v860_v18 = vld [vmem:[%s1323_s1 + $0x8] sm:$0xff]   ;;  %v571_v31 = vunpack.c.l.bf16 %v853_v17  ;;  %v572_v48 = vunpack.c.h.bf16 %v853_v17  ;;  %v861_v59 = vld [vmem:[%s1323_s1 + $0x10] sm:$0xff]  }
   0x3   :  { %v630_v2 = vld [vmem:[%s1324_s2] sm:$0xff]   ;;  %v599_v4 = vunpack.c.l.bf16 %v598_v1  ;;  %v600_v13 = vunpack.c.h.bf16 %v598_v1  ;;  %v867_v23 = vld [vmem:[%s1324_s2 + $0x8] sm:$0xff]   ;;  %v603_v32 = vunpack.c.l.bf16 %v860_v18  ;;  %v604_v52 = vunpack.c.h.bf16 %v860_v18  ;;  %v868_v0 = vld [vmem:[%s1324_s2 + $0x10] sm:$0xff]  }
   0x4   :  { %v631_v5 = vunpack.c.l.bf16 %v630_v2  ;;  %v662_v6 = vld [vmem:[%s1325_s3] sm:$0xff]   ;;  %v632_v21 = vunpack.c.h.bf16 %v630_v2  ;;  %v874_v28 = vld [vmem:[%s1325_s3 + $0x8] sm:$0xff]   ;;  %v635_v37 = vunpack.c.l.bf16 %v867_v23  ;;  %v636_v53 = vunpack.c.h.bf16 %v867_v23  ;;  %v875_v1 = vld [vmem:[%s1325_s3 + $0x10] sm:$0xff]  }
   0x5   :  { %v694_v7 = vld [vmem:[%s1326_s4] sm:$0xff]   ;;  %v96_v14 = vmax.f32 %v567_v3, %v599_v4  ;;  %v663_v15 = vunpack.c.l.bf16 %v662_v6  ;;  %v97_v20 = vmax.f32 %v568_v9, %v600_v13  ;;  %v664_v22 = vunpack.c.h.bf16 %v662_v6  ;;  %v881_v33 = vld [vmem:[%s1326_s4 + $0x8] sm:$0xff]  }
   0x6   :  { %v726_v8 = vld [vmem:[%s1327_s5] sm:$0xff]   ;;  %v695_v16 = vunpack.c.l.bf16 %v694_v7  ;;  %v696_v30 = vunpack.c.h.bf16 %v694_v7  ;;  %v98_v40 = vmax.f32 %v571_v31, %v603_v32  ;;  %v667_v41 = vunpack.c.l.bf16 %v874_v28  ;;  %v888_v42 = vld [vmem:[%s1327_s5 + $0x8] sm:$0xff]   ;;  %v1063_v31 = vld [vmem:[%s1328_s6 + $0x10] sm:$0xff]  }
   0x7   :  { %v758_v10 = vld [vmem:[%s1328_s6] sm:$0xff]   ;;  %v727_v19 = vunpack.c.l.bf16 %v726_v8  ;;  %v144_v24 = vmax.f32 %v96_v14, %v631_v5  ;;  %v145_v29 = vmax.f32 %v97_v20, %v632_v21  ;;  %v728_v35 = vunpack.c.h.bf16 %v726_v8  ;;  %v1021_v43 = vld [vmem:[%s1328_s6 + $0x8] sm:$0xff]  }
   0x8   :  { %v990_v11 = vld [vmem:[%s1329_s7] sm:$0xff]   ;;  %v759_v25 = vunpack.c.l.bf16 %v758_v10  ;;  %v760_v36 = vunpack.c.h.bf16 %v758_v10  ;;  %v1026_v44 = vld [vmem:[%s1329_s7 + $0x8] sm:$0xff]   ;;  %v699_v47 = vunpack.c.l.bf16 %v881_v33  ;;  %v146_v50 = vmax.f32 %v98_v40, %v635_v37  ;;  %v882_v10 = vld [vmem:[%s1326_s4 + $0x10] sm:$0xff]  }
   0x9   :  { %v995_v12 = vld [vmem:[%s1330_s8] sm:$0xff]   ;;  %v791_v26 = vunpack.c.l.bf16 %v990_v11  ;;  %v192_v34 = vmax.f32 %v144_v24, %v663_v15  ;;  %v193_v38 = vmax.f32 %v145_v29, %v664_v22  ;;  %v792_v39 = vunpack.c.h.bf16 %v990_v11  ;;  %v1032_v51 = vld [vmem:[%s1330_s8 + $0x8] sm:$0xff]   ;;  %v1068_v37 = vld [vmem:[%s1329_s7 + $0x10] sm:$0xff]  }
   0xa   :  { %v823_v27 = vunpack.c.l.bf16 %v995_v12  ;;  %v824_v46 = vunpack.c.h.bf16 %v995_v12  ;;  %v731_v56 = vunpack.c.l.bf16 %v888_v42  ;;  %v763_v57 = vunpack.c.l.bf16 %v1021_v43 }
   0xb   :  { %v240_v45 = vmax.f32 %v192_v34, %v695_v16  ;;  %v241_v49 = vmax.f32 %v193_v38, %v696_v30  ;;  %v795_v58 = vunpack.c.l.bf16 %v1026_v44  ;;  %v194_v61 = vmax.f32 %v146_v50, %v667_v41  ;;  %v910_v50 = vld [vmem:[%s1330_s8 + $0x10] sm:$0xff]  }
   0xc   :  { %v99_v62 = vmax.f32 %v572_v48, %v604_v52  ;;  %v668_v63 = vunpack.c.h.bf16 %v874_v28  ;;  %v827_v3 = vunpack.c.l.bf16 %v1032_v51  ;;  %v700_v4 = vunpack.c.h.bf16 %v881_v33  ;;  %v869_v48 = vld [vmem:[%s1324_s2 + $0x18] sm:$0xff]  }
   0xd   :  { %v288_v55 = vmax.f32 %v240_v45, %v727_v19  ;;  %v289_v60 = vmax.f32 %v241_v49, %v728_v35  ;;  %v575_v5 = vunpack.c.l.bf16 %v854_v54  ;;  %v242_v7 = vmax.f32 %v194_v61, %v699_v47  ;;  %v1055_v19 = vld [vmem:[%s1327_s5 + $0x10] sm:$0xff]   ;;  %v862_v47 = vld [vmem:[%s1323_s1 + $0x18] sm:$0xff]  }
   0xe   :  { %v147_v8 = vmax.f32 %v99_v62, %v636_v53  ;;  %v607_v9 = vunpack.c.l.bf16 %v861_v59  ;;  %v732_v12 = vunpack.c.h.bf16 %v888_v42  ;;  %v639_v13 = vunpack.c.l.bf16 %v868_v0  ;;  %v855_v42 = vld [vmem:[%s1322_s0 + $0x18] sm:$0xff]  }
   0xf   :  { %v336_v2 = vmax.f32 %v288_v55, %v759_v25  ;;  %v337_v6 = vmax.f32 %v289_v60, %v760_v36  ;;  %v671_v14 = vunpack.c.l.bf16 %v875_v1  ;;  %v290_v16 = vmax.f32 %v242_v7, %v731_v56  ;;  %v883_v62 = vld [vmem:[%s1326_s4 + $0x18] sm:$0xff]  }
  0x10   :  { %v195_v17 = vmax.f32 %v147_v8, %v668_v63  ;;  %v100_v18 = vmax.f32 %v575_v5, %v607_v9  ;;  %v764_v21 = vunpack.c.h.bf16 %v1021_v43  ;;  %v796_v22 = vunpack.c.h.bf16 %v1026_v44  ;;  %v1109_v7 = vld [vmem:[%s1327_s5 + $0x18] sm:$0xff]  }
  0x11   :  { %v384_v11 = vmax.f32 %v336_v2, %v791_v26  ;;  %v385_v15 = vmax.f32 %v337_v6, %v792_v39  ;;  %v703_v23 = vunpack.c.l.bf16 %v882_v10  ;;  %v338_v25 = vmax.f32 %v290_v16, %v763_v57  ;;  %v876_v57 = vld [vmem:[%s1325_s3 + $0x18] sm:$0xff]  }
  0x12   :  { %v243_v26 = vmax.f32 %v195_v17, %v700_v4  ;;  %v148_v28 = vmax.f32 %v100_v18, %v639_v13  ;;  %v735_v30 = vunpack.c.l.bf16 %v1055_v19  ;;  %v576_v32 = vunpack.c.h.bf16 %v854_v54  ;;  %v1114_v8 = vld [vmem:[%s1328_s6 + $0x18] sm:$0xff]   ;;  %v856_v18 = vld [vmem:[%s1322_s0 + $0x20] sm:$0xff]  }
  0x13   :  { %v432_v20 = vmax.f32 %v384_v11, %v823_v27  ;;  %v433_v24 = vmax.f32 %v385_v15, %v824_v46  ;;  %v608_v33 = vunpack.c.h.bf16 %v861_v59  ;;  %v386_v34 = vmax.f32 %v338_v25, %v795_v58  ;;  %v1119_v15 = vld [vmem:[%s1329_s7 + $0x18] sm:$0xff]  }
  0x14   :  { %v291_v35 = vmax.f32 %v243_v26, %v732_v12  ;;  %v196_v36 = vmax.f32 %v148_v28, %v671_v14  ;;  %v828_v38 = vunpack.c.h.bf16 %v1032_v51  ;;  %v640_v40 = vunpack.c.h.bf16 %v868_v0  ;;  %v1136_v26 = vld [vmem:[%s1330_s8 + $0x18] sm:$0xff]  }
  0x15   :  { %v549_v29 = vpack.c.bf16 %v432_v20, %v432_v20  ;;  %v550_v27 = vpack.c.bf16 %v433_v24, %v433_v24  ;;  %v101_v39 = vmax.f32 %v576_v32, %v608_v33  ;;  %v672_v41 = vunpack.c.h.bf16 %v875_v1 }
  0x16   :  { %v434_v43 = vmax.f32 %v386_v34, %v827_v3  ;;  %v339_v44 = vmax.f32 %v291_v35, %v764_v21  ;;  %v244_v45 = vmax.f32 %v196_v36, %v703_v23  ;;  %v767_v46 = vunpack.c.l.bf16 %v1063_v31  ;;  %v863_v23 = vld [vmem:[%s1323_s1 + $0x20] sm:$0xff]  }
  0x17   :  { %513 = vst.msk [vmem:[%s1331_s9] sm:$0xf] %vm512_vm0, %v549_v29  ;;  %514 = vst.msk [vmem:[%s1331_s9 + $0x4] sm:$0xf] %vm512_vm0, %v550_v27  ;;  %v799_v49 = vunpack.c.l.bf16 %v1068_v37  ;;  %v149_v51 = vmax.f32 %v101_v39, %v640_v40  ;;  %v704_v52 = vunpack.c.h.bf16 %v882_v10  ;;  %v579_v56 = vunpack.c.l.bf16 %v855_v42  ;;  %v1148_v39 = vld [vmem:[%s1326_s4 + $0x20] sm:$0xff]  }
  0x18   :  { %v551_v53 = vpack.c.bf16 %v434_v43, %v434_v43  ;;  %v387_v54 = vmax.f32 %v339_v44, %v796_v22  ;;  %v292_v55 = vmax.f32 %v244_v45, %v735_v30  ;;  %v736_v59 = vunpack.c.h.bf16 %v1055_v19  ;;  %v870_v30 = vld [vmem:[%s1324_s2 + $0x20] sm:$0xff]  }
  0x19   :  { %v197_v58 = vmax.f32 %v149_v51, %v672_v41  ;;  %v611_v60 = vunpack.c.l.bf16 %v862_v47  ;;  %v643_v61 = vunpack.c.l.bf16 %v869_v48  ;;  %v831_v1 = vunpack.c.l.bf16 %v910_v50 }
  0x1a   :  { %515 = vst.msk [vmem:[%s1331_s9 + $0x8] sm:$0xf] %vm512_vm0, %v551_v53  ;;  %v435_v63 = vmax.f32 %v387_v54, %v828_v38  ;;  %v340_v0 = vmax.f32 %v292_v55, %v767_v46  ;;  %v768_v2 = vunpack.c.h.bf16 %v1063_v31  ;;  %v800_v4 = vunpack.c.h.bf16 %v1068_v37  ;;  %v877_v31 = vld [vmem:[%s1325_s3 + $0x20] sm:$0xff]  }
  0x1b   :  { %v245_v3 = vmax.f32 %v197_v58, %v704_v52  ;;  %v102_v5 = vmax.f32 %v579_v56, %v611_v60  ;;  %v675_v6 = vunpack.c.l.bf16 %v876_v57  ;;  %v707_v11 = vunpack.c.l.bf16 %v883_v62  ;;  %v1167_v52 = vld [vmem:[%s1328_s6 + $0x20] sm:$0xff]  }
  0x1c   :  { %v552_v9 = vpack.c.bf16 %v435_v63, %v435_v63  ;;  %v388_v10 = vmax.f32 %v340_v0, %v799_v49  ;;  %v580_v12 = vunpack.c.h.bf16 %v855_v42  ;;  %v612_v16 = vunpack.c.h.bf16 %v862_v47  ;;  %v1172_v58 = vld [vmem:[%s1329_s7 + $0x20] sm:$0xff]   ;;  %v857_v0 = vld [vmem:[%s1322_s0 + $0x28] sm:$0xff]  }
  0x1d   :  { %v293_v13 = vmax.f32 %v245_v3, %v736_v59  ;;  %v150_v14 = vmax.f32 %v102_v5, %v643_v61  ;;  %v644_v17 = vunpack.c.h.bf16 %v869_v48  ;;  %v832_v20 = vunpack.c.h.bf16 %v910_v50  ;;  %v1159_v48 = vld [vmem:[%s1327_s5 + $0x20] sm:$0xff]   ;;  %v864_v5 = vld [vmem:[%s1323_s1 + $0x28] sm:$0xff]  }
  0x1e   :  { %516 = vst.msk [vmem:[%s1331_s9 + $0xc] sm:$0xf] %vm512_vm0, %v552_v9  ;;  %v436_v19 = vmax.f32 %v388_v10, %v831_v1  ;;  %v739_v21 = vunpack.c.l.bf16 %v1109_v7  ;;  %v771_v22 = vunpack.c.l.bf16 %v1114_v8  ;;  %v103_v28 = vmax.f32 %v580_v12, %v612_v16  ;;  %v1177_v59 = vld [vmem:[%s1330_s8 + $0x20] sm:$0xff]  }
  0x1f   :  { %v341_v24 = vmax.f32 %v293_v13, %v768_v2  ;;  %v198_v25 = vmax.f32 %v150_v14, %v675_v6  ;;  %v676_v29 = vunpack.c.h.bf16 %v876_v57  ;;  %v803_v33 = vunpack.c.l.bf16 %v1119_v15  ;;  %v871_v6 = vld [vmem:[%s1324_s2 + $0x28] sm:$0xff]  }
  0x20   :  { %v553_v32 = vpack.c.bf16 %v436_v19, %v436_v19  ;;  %v708_v27 = vunpack.c.h.bf16 %v883_v62  ;;  %v583_v34 = vunpack.c.l.bf16 %v856_v18  ;;  %v151_v37 = vmax.f32 %v103_v28, %v644_v17 }
  0x21   :  { %v389_v35 = vmax.f32 %v341_v24, %v800_v4  ;;  %v246_v36 = vmax.f32 %v198_v25, %v707_v11  ;;  %v615_v38 = vunpack.c.l.bf16 %v863_v23  ;;  %v835_v40 = vunpack.c.l.bf16 %v1136_v26 }
  0x22   :  { %517 = vst.msk [vmem:[%s1331_s9 + $0x10] sm:$0xf] %vm512_vm0, %v553_v32  ;;  %v740_v41 = vunpack.c.h.bf16 %v1109_v7  ;;  %v647_v42 = vunpack.c.l.bf16 %v870_v30  ;;  %v679_v43 = vunpack.c.l.bf16 %v877_v31  ;;  %v199_v46 = vmax.f32 %v151_v37, %v676_v29  ;;  %v1222_v37 = vld [vmem:[%s1329_s7 + $0x28] sm:$0xff]  }
  0x23   :  { %v437_v44 = vmax.f32 %v389_v35, %v832_v20  ;;  %v294_v45 = vmax.f32 %v246_v36, %v739_v21  ;;  %v104_v47 = vmax.f32 %v583_v34, %v615_v38  ;;  %v772_v49 = vunpack.c.h.bf16 %v1114_v8  ;;  %v885_v20 = vld [vmem:[%s1326_s4 + $0x28] sm:$0xff]  }
  0x24   :  { %v804_v50 = vunpack.c.h.bf16 %v1119_v15  ;;  %v711_v51 = vunpack.c.l.bf16 %v1148_v39  ;;  %v584_v53 = vunpack.c.h.bf16 %v856_v18  ;;  %v247_v56 = vmax.f32 %v199_v46, %v708_v27  ;;  %v878_v15 = vld [vmem:[%s1325_s3 + $0x28] sm:$0xff]  }
  0x25   :  { %v554_v54 = vpack.c.bf16 %v437_v44, %v437_v44  ;;  %v342_v55 = vmax.f32 %v294_v45, %v771_v22  ;;  %v152_v57 = vmax.f32 %v104_v47, %v647_v42  ;;  %v836_v60 = vunpack.c.h.bf16 %v1136_v26  ;;  %v1217_v36 = vld [vmem:[%s1328_s6 + $0x28] sm:$0xff]  }
  0x26   :  { %v743_v61 = vunpack.c.l.bf16 %v1159_v48  ;;  %v616_v62 = vunpack.c.h.bf16 %v863_v23  ;;  %v648_v63 = vunpack.c.h.bf16 %v870_v30  ;;  %v295_v2 = vmax.f32 %v247_v56, %v740_v41  ;;  %v892_v30 = vld [vmem:[%s1327_s5 + $0x28] sm:$0xff]  }
  0x27   :  { %518 = vst.msk [vmem:[%s1331_s9 + $0x14] sm:$0xf] %vm512_vm0, %v554_v54  ;;  %v390_v1 = vmax.f32 %v342_v55, %v803_v33  ;;  %v200_v3 = vmax.f32 %v152_v57, %v679_v43  ;;  %v775_v4 = vunpack.c.l.bf16 %v1167_v52  ;;  %v807_v7 = vunpack.c.l.bf16 %v1172_v58  ;;  %v913_v57 = vld [vmem:[%s1330_s8 + $0x28] sm:$0xff]  }
  0x28   :  { %v839_v8 = vunpack.c.l.bf16 %v1177_v59  ;;  %v105_v9 = vmax.f32 %v584_v53, %v616_v62  ;;  %v680_v10 = vunpack.c.h.bf16 %v877_v31  ;;  %v343_v12 = vmax.f32 %v295_v2, %v772_v49  ;;  %v865_v49 = vld [vmem:[%s1323_s1 + $0x30] sm:$0xff]  }
  0x29   :  { %v438_v11 = vmax.f32 %v390_v1, %v835_v40  ;;  %v248_v13 = vmax.f32 %v200_v3, %v711_v51  ;;  %v587_v14 = vunpack.c.l.bf16 %v857_v0  ;;  %v712_v17 = vunpack.c.h.bf16 %v1148_v39 }
  0x2a   :  { %v153_v16 = vmax.f32 %v105_v9, %v648_v63  ;;  %v619_v18 = vunpack.c.l.bf16 %v864_v5  ;;  %v651_v19 = vunpack.c.l.bf16 %v871_v6  ;;  %v391_v22 = vmax.f32 %v343_v12, %v804_v50  ;;  %v872_v50 = vld [vmem:[%s1324_s2 + $0x30] sm:$0xff]  }
  0x2b   :  { %v555_v21 = vpack.c.bf16 %v438_v11, %v438_v11  ;;  %v296_v23 = vmax.f32 %v248_v13, %v743_v61  ;;  %v744_v24 = vunpack.c.h.bf16 %v1159_v48  ;;  %v776_v26 = vunpack.c.h.bf16 %v1167_v52  ;;  %v858_v48 = vld [vmem:[%s1322_s0 + $0x30] sm:$0xff]  }
  0x2c   :  { %v201_v25 = vmax.f32 %v153_v16, %v680_v10  ;;  %v106_v28 = vmax.f32 %v587_v14, %v619_v18  ;;  %v683_v29 = vunpack.c.l.bf16 %v878_v15  ;;  %v439_v31 = vmax.f32 %v391_v22, %v836_v60  ;;  %v879_v61 = vld [vmem:[%s1325_s3 + $0x30] sm:$0xff]  }
  0x2d   :  { %519 = vst.msk [vmem:[%s1331_s9 + $0x18] sm:$0xf] %vm512_vm0, %v555_v21  ;;  %v344_v32 = vmax.f32 %v296_v23, %v775_v4  ;;  %v808_v33 = vunpack.c.h.bf16 %v1172_v58  ;;  %v715_v27 = vunpack.c.l.bf16 %v885_v20  ;;  %v588_v38 = vunpack.c.h.bf16 %v857_v0  ;;  %v893_v14 = vld [vmem:[%s1327_s5 + $0x30] sm:$0xff]  }
  0x2e   :  { %v249_v34 = vmax.f32 %v201_v25, %v712_v17  ;;  %v154_v35 = vmax.f32 %v106_v28, %v651_v19  ;;  %v620_v39 = vunpack.c.h.bf16 %v864_v5  ;;  %v556_v40 = vpack.c.bf16 %v439_v31, %v439_v31  ;;  %v886_v5 = vld [vmem:[%s1326_s4 + $0x30] sm:$0xff]   ;;  %v866_v31 = vld [vmem:[%s1323_s1 + $0x38] sm:$0xff]  }
  0x2f   :  { %v392_v41 = vmax.f32 %v344_v32, %v807_v7  ;;  %v747_v42 = vunpack.c.l.bf16 %v892_v30  ;;  %v652_v43 = vunpack.c.h.bf16 %v871_v6  ;;  %v684_v47 = vunpack.c.h.bf16 %v878_v15  ;;  %v900_v17 = vld [vmem:[%s1328_s6 + $0x30] sm:$0xff]  }
  0x30   :  { %v297_v44 = vmax.f32 %v249_v34, %v744_v24  ;;  %v202_v45 = vmax.f32 %v154_v35, %v683_v29  ;;  %v107_v46 = vmax.f32 %v588_v38, %v620_v39  ;;  %520 = vst.msk [vmem:[%s1331_s9 + $0x1c] sm:$0xf] %vm512_vm0, %v556_v40  ;;  %v840_v52 = vunpack.c.h.bf16 %v1177_v59  ;;  %v907_v23 = vld [vmem:[%s1329_s7 + $0x30] sm:$0xff]   ;;  %v873_v35 = vld [vmem:[%s1324_s2 + $0x38] sm:$0xff]  }
  0x31   :  { %v440_v51 = vmax.f32 %v392_v41, %v839_v8  ;;  %v779_v53 = vunpack.c.l.bf16 %v1217_v36  ;;  %v811_v54 = vunpack.c.l.bf16 %v1222_v37  ;;  %v716_v60 = vunpack.c.h.bf16 %v885_v20  ;;  %v914_v38 = vld [vmem:[%s1330_s8 + $0x30] sm:$0xff]   ;;  %v880_v41 = vld [vmem:[%s1325_s3 + $0x38] sm:$0xff]  }
  0x32   :  { %v345_v55 = vmax.f32 %v297_v44, %v776_v26  ;;  %v250_v56 = vmax.f32 %v202_v45, %v715_v27  ;;  %v155_v58 = vmax.f32 %v107_v46, %v652_v43  ;;  %v591_v63 = vunpack.c.l.bf16 %v858_v48 }
  0x33   :  { %v557_v62 = vpack.c.bf16 %v440_v51, %v440_v51  ;;  %v623_v0 = vunpack.c.l.bf16 %v865_v49  ;;  %v655_v59 = vunpack.c.l.bf16 %v872_v50  ;;  %v748_v4 = vunpack.c.h.bf16 %v892_v30  ;;  %v859_v30 = vld [vmem:[%s1322_s0 + $0x38] sm:$0xff]  }
  0x34   :  { %v393_v1 = vmax.f32 %v345_v55, %v808_v33  ;;  %v298_v2 = vmax.f32 %v250_v56, %v747_v42  ;;  %v203_v3 = vmax.f32 %v155_v58, %v684_v47  ;;  %v843_v6 = vunpack.c.l.bf16 %v913_v57 }
  0x35   :  { %521 = vst.msk [vmem:[%s1331_s9 + $0x20] sm:$0xf] %vm512_vm0, %v557_v62  ;;  %v780_v7 = vunpack.c.h.bf16 %v1217_v36  ;;  %v108_v8 = vmax.f32 %v591_v63, %v623_v0  ;;  %v687_v9 = vunpack.c.l.bf16 %v879_v61  ;;  %v812_v13 = vunpack.c.h.bf16 %v1222_v37 }
  0x36   :  { %v441_v10 = vmax.f32 %v393_v1, %v840_v52  ;;  %v346_v11 = vmax.f32 %v298_v2, %v779_v53  ;;  %v251_v12 = vmax.f32 %v203_v3, %v716_v60  ;;  %v719_v16 = vunpack.c.l.bf16 %v886_v5  ;;  %v894_v60 = vld [vmem:[%s1327_s5 + $0x38] sm:$0xff]  }
  0x37   :  { %v156_v15 = vmax.f32 %v108_v8, %v655_v59  ;;  %v592_v18 = vunpack.c.h.bf16 %v858_v48  ;;  %v624_v19 = vunpack.c.h.bf16 %v865_v49  ;;  %v656_v24 = vunpack.c.h.bf16 %v872_v50  ;;  %v887_v50 = vld [vmem:[%s1326_s4 + $0x38] sm:$0xff]  }
  0x38   :  { %v558_v20 = vpack.c.bf16 %v441_v10, %v441_v10  ;;  %v394_v21 = vmax.f32 %v346_v11, %v811_v54  ;;  %v299_v22 = vmax.f32 %v251_v12, %v748_v4  ;;  %v751_v26 = vunpack.c.l.bf16 %v893_v14  ;;  %v901_v2 = vld [vmem:[%s1328_s6 + $0x38] sm:$0xff]  }
  0x39   :  { %v204_v25 = vmax.f32 %v156_v15, %v687_v9  ;;  %v109_v28 = vmax.f32 %v592_v18, %v624_v19  ;;  %v688_v29 = vunpack.c.h.bf16 %v879_v61  ;;  %v844_v27 = vunpack.c.h.bf16 %v913_v57  ;;  %v908_v10 = vld [vmem:[%s1329_s7 + $0x38] sm:$0xff]  }
  0x3a   :  { %522 = vst.msk [vmem:[%s1331_s9 + $0x24] sm:$0xf] %vm512_vm0, %v558_v20  ;;  %v442_v32 = vmax.f32 %v394_v21, %v843_v6  ;;  %v347_v33 = vmax.f32 %v299_v22, %v780_v7  ;;  %v783_v34 = vunpack.c.l.bf16 %v900_v17  ;;  %v815_v37 = vunpack.c.l.bf16 %v907_v23 }
  0x3b   :  { %v252_v36 = vmax.f32 %v204_v25, %v719_v16  ;;  %v157_v39 = vmax.f32 %v109_v28, %v656_v24  ;;  %v720_v40 = vunpack.c.h.bf16 %v886_v5  ;;  %v595_v44 = vunpack.c.l.bf16 %v859_v30 }
  0x3c   :  { %v559_v42 = vpack.c.bf16 %v442_v32, %v442_v32  ;;  %v395_v43 = vmax.f32 %v347_v33, %v812_v13  ;;  %v627_v45 = vunpack.c.l.bf16 %v866_v31  ;;  %v752_v48 = vunpack.c.h.bf16 %v893_v14 }
  0x3d   :  { %v300_v46 = vmax.f32 %v252_v36, %v751_v26  ;;  %v205_v47 = vmax.f32 %v157_v39, %v688_v29  ;;  %v659_v49 = vunpack.c.l.bf16 %v873_v35  ;;  %v847_v52 = vunpack.c.l.bf16 %v914_v38 }
  0x3e   :  { %523 = vst.msk [vmem:[%s1331_s9 + $0x28] sm:$0xf] %vm512_vm0, %v559_v42  ;;  %v443_v51 = vmax.f32 %v395_v43, %v844_v27  ;;  %v110_v53 = vmax.f32 %v595_v44, %v627_v45  ;;  %v691_v54 = vunpack.c.l.bf16 %v880_v41  ;;  %v784_v57 = vunpack.c.h.bf16 %v900_v17  ;;  %v915_v17 = vld [vmem:[%s1330_s8 + $0x38] sm:$0xff]  }
  0x3f   :  { %v348_v55 = vmax.f32 %v300_v46, %v783_v34  ;;  %v253_v56 = vmax.f32 %v205_v47, %v720_v40  ;;  %v816_v58 = vunpack.c.h.bf16 %v907_v23  ;;  %v723_v63 = vunpack.c.l.bf16 %v887_v50 }
  0x40   :  { %v560_v61 = vpack.c.bf16 %v443_v51, %v443_v51  ;;  %v158_v62 = vmax.f32 %v110_v53, %v659_v49  ;;  %v596_v0 = vunpack.c.h.bf16 %v859_v30  ;;  %v628_v3 = vunpack.c.h.bf16 %v866_v31 }
  0x41   :  { %v396_v59 = vmax.f32 %v348_v55, %v815_v37  ;;  %v301_v1 = vmax.f32 %v253_v56, %v752_v48  ;;  %v660_v4 = vunpack.c.h.bf16 %v873_v35  ;;  %v848_v5 = vunpack.c.h.bf16 %v914_v38 }
  0x42   :  { %524 = vst.msk [vmem:[%s1331_s9 + $0x2c] sm:$0xf] %vm512_vm0, %v560_v61  ;;  %v206_v6 = vmax.f32 %v158_v62, %v691_v54  ;;  %v755_v7 = vunpack.c.l.bf16 %v894_v60  ;;  %v111_v11 = vmax.f32 %v596_v0, %v628_v3  ;;  %v692_v12 = vunpack.c.h.bf16 %v880_v41 }
  0x43   :  { %v444_v8 = vmax.f32 %v396_v59, %v847_v52  ;;  %v349_v9 = vmax.f32 %v301_v1, %v784_v57  ;;  %v787_v14 = vunpack.c.l.bf16 %v901_v2  ;;  %v724_v19 = vunpack.c.h.bf16 %v887_v50 }
  0x44   :  { %v254_v13 = vmax.f32 %v206_v6, %v723_v63  ;;  %v159_v18 = vmax.f32 %v111_v11, %v660_v4  ;;  %v819_v21 = vunpack.c.l.bf16 %v908_v10  ;;  %v756_v24 = vunpack.c.h.bf16 %v894_v60 }
  0x45   :  { %v561_v15 = vpack.c.bf16 %v444_v8, %v444_v8  ;;  %v397_v16 = vmax.f32 %v349_v9, %v816_v58  ;;  %v851_v26 = vunpack.c.l.bf16 %v915_v17  ;;  %v788_v30 = vunpack.c.h.bf16 %v901_v2 }
  0x46   :  { %v302_v20 = vmax.f32 %v254_v13, %v755_v7  ;;  %v207_v23 = vmax.f32 %v159_v18, %v692_v12  ;;  %v820_v33 = vunpack.c.h.bf16 %v908_v10  ;;  %v852_v35 = vunpack.c.h.bf16 %v915_v17 }
  0x47   :  { %525 = vst.msk [vmem:[%s1331_s9 + $0x30] sm:$0xf] %vm512_vm0, %v561_v15  ;;  %v445_v22 = vmax.f32 %v397_v16, %v848_v5 }
  0x48   :  { %v350_v25 = vmax.f32 %v302_v20, %v787_v14  ;;  %v255_v29 = vmax.f32 %v207_v23, %v724_v19 }
  0x49   :  { %v562_v28 = vpack.c.bf16 %v445_v22, %v445_v22 }
  0x4a   :  { %v398_v31 = vmax.f32 %v350_v25, %v819_v21  ;;  %v303_v32 = vmax.f32 %v255_v29, %v756_v24 }
  0x4b   :  { %526 = vst.msk [vmem:[%s1331_s9 + $0x34] sm:$0xf] %vm512_vm0, %v562_v28 }
  0x4c   :  { %v446_v27 = vmax.f32 %v398_v31, %v851_v26  ;;  %v351_v34 = vmax.f32 %v303_v32, %v788_v30 }
  0x4e   :  { %v563_v36 = vpack.c.bf16 %v446_v27, %v446_v27  ;;  %v399_v37 = vmax.f32 %v351_v34, %v820_v33 }
  0x50   :  { %527 = vst.msk [vmem:[%s1331_s9 + $0x38] sm:$0xf] %vm512_vm0, %v563_v36  ;;  %v447_v38 = vmax.f32 %v399_v37, %v852_v35 }
  0x52   :  { %v564_v39 = vpack.c.bf16 %v447_v38, %v447_v38 }
  0x54   :  { %528 = vst.msk [vmem:[%s1331_s9 + $0x3c] sm:$0xf] %vm512_vm0, %v564_v39 }

// kernel: densenet_with_head_forward.31
= control target key start
LH: loop header
LB: loop body
LE: loop exit
PB: predicated region body
PF: predicated region fallthrough
CT: control target
= control target key end

     0   :  { %vm308_vm0 = vcmask 261120   ;;  %vm591_vm1 = vcmask 60416   ;;  %s1079_s1 = inlined_call_operand.vmem [shape: bf16[288,8], index: 1, kind: input, shape index: {}]   ;;  %s1080_s0 = inlined_call_operand.vmem [shape: bf16[128,288], index: 0, kind: input, shape index: {}]   ;;  %s1081_s2 = inlined_call_operand.vmem [shape: bf16[128,8], index: 2, kind: output, shape index: {}]  }
   0x1   :  { %v804_v0 = vld [vmem:[%s1079_s1 + $0x40] sm:$0xff]   ;;  %v806_v2 = vld [vmem:[%s1079_s1 + $0x48] sm:$0xff]   ;;  %v808_v4 = vld [vmem:[%s1079_s1 + $0x50] sm:$0xff]  }
   0x2   :  { %v805_v1 = vld [vmem:[%s1079_s1] sm:$0xff]   ;;  %694 = vmatprep.subr.bf16.mxu0 %v804_v0  ;;  %788 = vmatprep.subr.bf16.mxu1 %v804_v0  ;;  %v807_v3 = vld [vmem:[%s1079_s1 + $0x8] sm:$0xff]   ;;  %v809_v5 = vld [vmem:[%s1079_s1 + $0x10] sm:$0xff]  }
   0x3   :  { %695 = vmatpush3.bf16.msra.mxu0 %v805_v1  ;;  %796 = vmatpush3.bf16.msra.mxu1 %v805_v1  ;;  %v810_v6 = vld [vmem:[%s1079_s1 + $0x58] sm:$0xff]   ;;  %v812_v8 = vld [vmem:[%s1079_s1 + $0x60] sm:$0xff]   ;;  %v814_v10 = vld [vmem:[%s1079_s1 + $0x68] sm:$0xff]  }
   0x4   :  { %696 = vmatprep.subr.bf16.mxu0 %v806_v2  ;;  %789 = vmatprep.subr.bf16.mxu1 %v806_v2  ;;  %v811_v7 = vld [vmem:[%s1079_s1 + $0x18] sm:$0xff]   ;;  %v813_v9 = vld [vmem:[%s1079_s1 + $0x20] sm:$0xff]   ;;  %v815_v13 = vld [vmem:[%s1079_s1 + $0x28] sm:$0xff]  }
   0x5   :  { %v822_v11 = vld [vmem:[%s1080_s0 + $0x4] ss:$12 sps:$4 sm:$0xff]   ;;  %v825_v12 = vld [vmem:[%s1080_s0 + $0x94] ss:$12 sps:$4 sm:$0xff]   ;;  %v818_v16 = vld [vmem:[%s1079_s1 + $0x78] sm:$0xff]  }
   0x6   :  { %v816_v14 = vld [vmem:[%s1079_s1 + $0x70] sm:$0xff]   ;;  %365 = vmatprep.mubr.bf16.mxu0 %v822_v11  ;;  %413 = vmatprep.mubr.bf16.mxu1 %v825_v12  ;;  %v819_v17 = vld [vmem:[%s1079_s1 + $0x38] sm:$0xff]   ;;  %v820_v18 = vld [vmem:[%s1080_s0] ss:$12 sps:$4 sm:$0xff]  }
   0x7   :  { %697 = vmatpush3.bf16.msra.mxu0 %v807_v3  ;;  %797 = vmatpush3.bf16.msra.mxu1 %v807_v3  ;;  %v817_v15 = vld [vmem:[%s1079_s1 + $0x30] sm:$0xff]   ;;  %v826_v19 = vld [vmem:[%s1079_s1 + $0x80] sm:$0xff]   ;;  %v827_v21 = vld [vmem:[%s1080_s0 + $0x1c] ss:$12 sps:$4 sm:$0xff]  }
   0x8   :  { %698 = vmatprep.subr.bf16.mxu0 %v808_v4  ;;  %790 = vmatprep.subr.bf16.mxu1 %v808_v4  ;;  %v823_v20 = vld [vmem:[%s1080_s0 + $0x90] ss:$12 sps:$4 sm:$0xff]   ;;  %v829_v22 = vld [vmem:[%s1080_s0 + $0xac] ss:$12 sps:$4 sm:$0xff]   ;;  %v832_v25 = vld [vmem:[%s1080_s0 + $0xa8] ss:$12 sps:$4 sm:$0xff]  }
   0x9   :  { %v833_v23 = vld [vmem:[%s1079_s1 + $0x88] sm:$0xff]   ;;  %v831_v24 = vld [vmem:[%s1080_s0 + $0x18] ss:$12 sps:$4 sm:$0xff]   ;;  %v834_v26 = vld [vmem:[%s1080_s0 + $0x34] ss:$12 sps:$4 sm:$0xff]  }
   0xa   :  { %v836_v27 = vld [vmem:[%s1080_s0 + $0x8] ss:$12 sps:$4 sm:$0xff]   ;;  %v837_v28 = vld [vmem:[%s1080_s0 + $0x30] ss:$12 sps:$4 sm:$0xff]   ;;  %v838_v29 = vld [vmem:[%s1080_s0 + $0x20] ss:$12 sps:$4 sm:$0xff]  }
   0xb   :  { %699 = vmatpush3.bf16.msra.mxu0 %v809_v5  ;;  %798 = vmatpush3.bf16.msra.mxu1 %v809_v5  ;;  %v839_v30 = vld [vmem:[%s1080_s0 + $0x4c] ss:$12 sps:$4 sm:$0xff]   ;;  %v842_v32 = vld [vmem:[%s1080_s0 + $0x48] ss:$12 sps:$4 sm:$0xff]   ;;  %v843_v33 = vld [vmem:[%s1080_s0 + $0x50] ss:$12 sps:$4 sm:$0xff]  }
   0xc   :  { %700 = vmatprep.subr.bf16.mxu0 %v810_v6  ;;  %791 = vmatprep.subr.bf16.mxu1 %v810_v6  ;;  %v841_v31 = vld [vmem:[%s1080_s0 + $0x38] ss:$12 sps:$4 sm:$0xff]   ;;  %v846_v35 = vld [vmem:[%s1080_s0 + $0x68] ss:$12 sps:$4 sm:$0xff]   ;;  %v847_v36 = vld [vmem:[%s1080_s0 + $0x60] ss:$12 sps:$4 sm:$0xff]  }
   0xd   :  { %v844_v34 = vld [vmem:[%s1080_s0 + $0x64] ss:$12 sps:$4 sm:$0xff]   ;;  %v848_v37 = vld [vmem:[%s1080_s0 + $0x80] ss:$12 sps:$4 sm:$0xff]   ;;  %v849_v38 = vld [vmem:[%s1080_s0 + $0x7c] ss:$12 sps:$4 sm:$0xff]  }
   0xe   :  { %v851_v39 = vld [vmem:[%s1080_s0 + $0x98] ss:$12 sps:$4 sm:$0xff]   ;;  %v853_v41 = vld [vmem:[%s1080_s0 + $0xb0] ss:$12 sps:$4 sm:$0xff]  }
   0xf   :  { %701 = vmatpush3.bf16.msra.mxu0 %v811_v7  ;;  %799 = vmatpush3.bf16.msra.mxu1 %v811_v7  ;;  %v852_v40 = vld [vmem:[%s1080_s0 + $0x78] ss:$12 sps:$4 sm:$0xff]  }
  0x10   :  { %702 = vmatprep.subr.bf16.mxu0 %v812_v8  ;;  %792 = vmatprep.subr.bf16.mxu1 %v812_v8 }
  0x13   :  { %703 = vmatpush3.bf16.msra.mxu0 %v813_v9  ;;  %800 = vmatpush3.bf16.msra.mxu1 %v813_v9 }
  0x14   :  { %704 = vmatprep.subr.bf16.mxu0 %v814_v10  ;;  %793 = vmatprep.subr.bf16.mxu1 %v814_v10 }
  0x17   :  { %705 = vmatpush3.bf16.msra.mxu0 %v815_v13  ;;  %801 = vmatpush3.bf16.msra.mxu1 %v815_v13 }
  0x18   :  { %706 = vmatprep.subr.bf16.mxu0 %v816_v14  ;;  %794 = vmatprep.subr.bf16.mxu1 %v816_v14 }
  0x1b   :  { %707 = vmatpush3.bf16.msra.mxu0 %v817_v15  ;;  %802 = vmatpush3.bf16.msra.mxu1 %v817_v15 }
  0x1c   :  { %708 = vmatprep.subr.bf16.mxu0 %v818_v16  ;;  %795 = vmatprep.subr.bf16.mxu1 %v818_v16 }
  0x1f   :  { %709 = vmatpush3.bf16.msra.mxu0 %v819_v17  ;;  %803 = vmatpush3.bf16.msra.mxu1 %v819_v17 }
  0x20   :  { %768 = vmatprep.subr.bf16.mxu1 %v826_v19 }
  0x22   :  { %366 = vmatmul.mubr.bf16.vlgmr.msra.gmra.mrb[0].mxu0 %v820_v18  ;;  %414 = vmatmul.mubr.bf16.vlgmr.msra.gmra.mrb[0].mxu1 %v823_v20 }
  0x23   :  { %769 = vmatpush3.bf16.msra.mxu1 %v826_v19  ;;  %373 = vmatprep.mubr.bf16.mxu0 %v827_v21 }
  0x24   :  { %421 = vmatprep.mubr.bf16.mxu1 %v829_v22  ;;  %770 = vmatprep.subr.bf16.mxu1 %v833_v23 }
  0x27   :  { %771 = vmatpush3.bf16.msra.mxu1 %v833_v23 }
  0x2a   :  { %374 = vmatmul.mubr.bf16.gmra.mrb[4].mxu0 %v831_v24  ;;  %422 = vmatmul.mubr.bf16.gmra.mrb[4].mxu1 %v832_v25 }
  0x2b   :  { %381 = vmatprep.mubr.bf16.mxu0 %v834_v26  ;;  %772 = vmatprep.mubr.msk.bf16.mxu1 %vm308_vm0, %v836_v27 }
  0x32   :  { %382 = vmatmul.mubr.bf16.gmra.mrb[8].mxu0 %v837_v28  ;;  %773 = vmatmul.mubr.msk.bf16.vlgmr.msra.gmra.mrb[8].mxu1 %vm308_vm0, %v838_v29 }
  0x33   :  { %389 = vmatprep.mubr.bf16.mxu0 %v839_v30  ;;  %776 = vmatprep.mubr.msk.bf16.mxu1 %vm308_vm0, %v841_v31 }
  0x3a   :  { %390 = vmatmul.mubr.bf16.gmra.mrb[12].mxu0 %v842_v32  ;;  %777 = vmatmul.mubr.msk.bf16.gmra.mrb[12].mxu1 %vm308_vm0, %v843_v33 }
  0x3b   :  { %397 = vmatprep.mubr.bf16.mxu0 %v844_v34  ;;  %780 = vmatprep.mubr.msk.bf16.mxu1 %vm308_vm0, %v846_v35 }
  0x42   :  { %398 = vmatmul.mubr.bf16.gmra.mrb[16].mxu0 %v847_v36  ;;  %781 = vmatmul.mubr.msk.bf16.gmra.mrb[16].mxu1 %vm308_vm0, %v848_v37 }
  0x43   :  { %405 = vmatprep.mubr.bf16.mxu0 %v849_v38  ;;  %784 = vmatprep.mubr.msk.bf16.mxu1 %vm308_vm0, %v851_v39 }
  0x4a   :  { %406 = vmatmul.mubr.bf16.gmra.mrb[20].mxu0 %v852_v40  ;;  %785 = vmatmul.mubr.msk.bf16.gmra.mrb[20].mxu1 %vm308_vm0, %v853_v41 }
  0xf5   :  { %v710_v42 = vpop.f32.mrb[0].mxu0  ;;  %v746_v43 = vpop.f32.mrb[0].mxu1 }
  0xf6   :  { %v711_v44 = vpop.f32.mrb[1].mxu0  ;;  %v747_v45 = vpop.f32.mrb[1].mxu1 }
  0xf7   :  { %v712_v46 = vadd.f32 %v711_v44, %v710_v42  ;;  %v1003_v47 = vadd.f32 %v747_v45, %v746_v43  ;;  %v713_v48 = vpop.f32.mrb[2].mxu0  ;;  %v749_v49 = vpop.f32.mrb[2].mxu1 }
  0xf8   :  { %v714_v50 = vpop.f32.mrb[3].mxu0  ;;  %v750_v51 = vpop.f32.mrb[3].mxu1 }
  0xf9   :  { %v715_v52 = vadd.f32 %v714_v50, %v713_v48  ;;  %v1005_v53 = vadd.f32 %v750_v51, %v749_v49 }
  0xfd   :  { %v716_v54 = vpop.f32.mrb[4].mxu0  ;;  %v752_v55 = vpop.f32.mrb[4].mxu1 }
  0xfe   :  { %v717_v56 = vpop.f32.mrb[5].mxu0  ;;  %v753_v57 = vpop.f32.mrb[5].mxu1 }
  0xff   :  { %v718_v58 = vadd.f32 %v717_v56, %v716_v54  ;;  %v1007_v59 = vadd.f32 %v753_v57, %v752_v55  ;;  %v719_v60 = vpop.f32.mrb[6].mxu0  ;;  %v755_v61 = vpop.f32.mrb[6].mxu1 }
 0x100   :  { %v720_v62 = vpop.f32.mrb[7].mxu0  ;;  %v756_v63 = vpop.f32.mrb[7].mxu1 }
 0x101   :  { %v721_v0 = vadd.f32 %v720_v62, %v719_v60  ;;  %v1009_v1 = vadd.f32 %v756_v63, %v755_v61 }
 0x105   :  { %v722_v2 = vpop.f32.mrb[8].mxu0  ;;  %v774_v3 = vpop.f32.mrb[8].mxu1 }
 0x106   :  { %v473_v4 = vadd.f32 %v774_v3, %v718_v58  ;;  %v723_v5 = vpop.f32.mrb[9].mxu0  ;;  %v464_v6 = vpop.f32.mrb[9].mxu1 }
 0x107   :  { %v724_v7 = vadd.f32 %v723_v5, %v722_v2  ;;  %v465_v8 = vadd.f32 %v712_v46, %v464_v6  ;;  %v725_v9 = vpop.f32.mrb[10].mxu0  ;;  %v775_v10 = vpop.f32.mrb[10].mxu1 }
 0x108   :  { %v680_v11 = vpack.c.bf16 %v473_v4, %v473_v4  ;;  %v476_v12 = vadd.f32 %v775_v10, %v721_v0  ;;  %v726_v13 = vpop.f32.mrb[11].mxu0  ;;  %v467_v14 = vpop.f32.mrb[11].mxu1 }
 0x109   :  { %v678_v15 = vpack.c.bf16 %v465_v8, %v465_v8  ;;  %v727_v16 = vadd.f32 %v726_v13, %v725_v9  ;;  %v468_v17 = vadd.f32 %v715_v52, %v467_v14 }
 0x10a   :  { %594 = vst.msk [vmem:[%s1081_s2 + $0x8] sm:$0xf] %vm591_vm1, %v680_v11  ;;  %v681_v18 = vpack.c.bf16 %v476_v12, %v476_v12 }
 0x10b   :  { %592 = vst.msk [vmem:[%s1081_s2] sm:$0xf] %vm591_vm1, %v678_v15  ;;  %v679_v19 = vpack.c.bf16 %v468_v17, %v468_v17 }
 0x10c   :  { %595 = vst.msk [vmem:[%s1081_s2 + $0xc] sm:$0xf] %vm591_vm1, %v681_v18 }
 0x10d   :  { %593 = vst.msk [vmem:[%s1081_s2 + $0x4] sm:$0xf] %vm591_vm1, %v679_v19  ;;  %v728_v20 = vpop.f32.mrb[12].mxu0  ;;  %v778_v21 = vpop.f32.mrb[12].mxu1 }
 0x10e   :  { %v729_v22 = vpop.f32.mrb[13].mxu0  ;;  %v480_v23 = vpop.f32.mrb[13].mxu1 }
 0x10f   :  { %v730_v24 = vadd.f32 %v729_v22, %v728_v20  ;;  %v481_v25 = vadd.f32 %v724_v7, %v480_v23  ;;  %v731_v26 = vpop.f32.mrb[14].mxu0  ;;  %v779_v27 = vpop.f32.mrb[14].mxu1 }
 0x110   :  { %v732_v28 = vpop.f32.mrb[15].mxu0  ;;  %v483_v29 = vpop.f32.mrb[15].mxu1 }
 0x111   :  { %v489_v30 = vadd.f32 %v778_v21, %v730_v24  ;;  %v682_v31 = vpack.c.bf16 %v481_v25, %v481_v25  ;;  %v733_v32 = vadd.f32 %v732_v28, %v731_v26  ;;  %v484_v33 = vadd.f32 %v727_v16, %v483_v29 }
 0x113   :  { %v684_v34 = vpack.c.bf16 %v489_v30, %v489_v30  ;;  %596 = vst.msk [vmem:[%s1081_s2 + $0x10] sm:$0xf] %vm591_vm1, %v682_v31  ;;  %v492_v35 = vadd.f32 %v779_v27, %v733_v32  ;;  %v683_v36 = vpack.c.bf16 %v484_v33, %v484_v33 }
 0x115   :  { %598 = vst.msk [vmem:[%s1081_s2 + $0x18] sm:$0xf] %vm591_vm1, %v684_v34  ;;  %v685_v37 = vpack.c.bf16 %v492_v35, %v492_v35  ;;  %597 = vst.msk [vmem:[%s1081_s2 + $0x14] sm:$0xf] %vm591_vm1, %v683_v36  ;;  %v734_v38 = vpop.f32.mrb[16].mxu0  ;;  %v782_v39 = vpop.f32.mrb[16].mxu1 }
 0x116   :  { %v735_v40 = vpop.f32.mrb[17].mxu0  ;;  %v496_v41 = vpop.f32.mrb[17].mxu1 }
 0x117   :  { %599 = vst.msk [vmem:[%s1081_s2 + $0x1c] sm:$0xf] %vm591_vm1, %v685_v37  ;;  %v736_v42 = vadd.f32 %v735_v40, %v734_v38  ;;  %v737_v43 = vpop.f32.mrb[18].mxu0  ;;  %v783_v44 = vpop.f32.mrb[18].mxu1 }
 0x118   :  { %v738_v45 = vpop.f32.mrb[19].mxu0  ;;  %v499_v46 = vpop.f32.mrb[19].mxu1 }
 0x119   :  { %v497_v48 = vadd.f32 %v736_v42, %v496_v41  ;;  %v739_v49 = vadd.f32 %v738_v45, %v737_v43 }
 0x11b   :  { %v686_v50 = vpack.c.bf16 %v497_v48, %v497_v48  ;;  %v500_v51 = vadd.f32 %v739_v49, %v499_v46 }
 0x11d   :  { %600 = vst.msk [vmem:[%s1081_s2 + $0x20] sm:$0xf] %vm591_vm1, %v686_v50  ;;  %v687_v52 = vpack.c.bf16 %v500_v51, %v500_v51  ;;  %v740_v54 = vpop.f32.mrb[20].mxu0  ;;  %v786_v55 = vpop.f32.mrb[20].mxu1 }
 0x11e   :  { %v521_v56 = vadd.f32 %v786_v55, %v1007_v59  ;;  %v741_v57 = vpop.f32.mrb[21].mxu0  ;;  %v512_v58 = vpop.f32.mrb[21].mxu1 }
 0x11f   :  { %601 = vst.msk [vmem:[%s1081_s2 + $0x24] sm:$0xf] %vm591_vm1, %v687_v52  ;;  %v742_v60 = vadd.f32 %v741_v57, %v740_v54  ;;  %v513_v61 = vadd.f32 %v1003_v47, %v512_v58  ;;  %v743_v62 = vpop.f32.mrb[22].mxu0  ;;  %v787_v63 = vpop.f32.mrb[22].mxu1 }
 0x120   :  { %v692_v0 = vpack.c.bf16 %v521_v56, %v521_v56  ;;  %v524_v2 = vadd.f32 %v787_v63, %v1009_v1  ;;  %v744_v3 = vpop.f32.mrb[23].mxu0  ;;  %v515_v4 = vpop.f32.mrb[23].mxu1 }
 0x121   :  { %v505_v5 = vadd.f32 %v782_v39, %v742_v60  ;;  %v690_v6 = vpack.c.bf16 %v513_v61, %v513_v61  ;;  %v745_v59 = vadd.f32 %v744_v3, %v743_v62  ;;  %v516_v7 = vadd.f32 %v1005_v53, %v515_v4 }
 0x122   :  { %606 = vst.msk [vmem:[%s1081_s2 + $0x38] sm:$0xf] %vm591_vm1, %v692_v0  ;;  %v693_v8 = vpack.c.bf16 %v524_v2, %v524_v2 }
 0x123   :  { %v688_v9 = vpack.c.bf16 %v505_v5, %v505_v5  ;;  %604 = vst.msk [vmem:[%s1081_s2 + $0x30] sm:$0xf] %vm591_vm1, %v690_v6  ;;  %v508_v47 = vadd.f32 %v783_v44, %v745_v59  ;;  %v691_v1 = vpack.c.bf16 %v516_v7, %v516_v7 }
 0x124   :  { %607 = vst.msk [vmem:[%s1081_s2 + $0x3c] sm:$0xf] %vm591_vm1, %v693_v8 }
 0x125   :  { %602 = vst.msk [vmem:[%s1081_s2 + $0x28] sm:$0xf] %vm591_vm1, %v688_v9  ;;  %v689_v53 = vpack.c.bf16 %v508_v47, %v508_v47  ;;  %605 = vst.msk [vmem:[%s1081_s2 + $0x34] sm:$0xf] %vm591_vm1, %v691_v1 }
 0x127   :  { %603 = vst.msk [vmem:[%s1081_s2 + $0x2c] sm:$0xf] %vm591_vm1, %v689_v53 }

// kernel: densenet_with_head_forward.32
= control target key start
LH: loop header
LB: loop body
LE: loop exit
PB: predicated region body
PF: predicated region fallthrough
CT: control target
= control target key end

     0   :  { %vm163_vm0 = vcmask 1043456   ;;  %vm138_vm1 = vcmask 195584   ;;  %vm390_vm2 = vcmask 257024   ;;  %s758_s1 = inlined_call_operand.vmem [shape: bf16[24,32], index: 1, kind: input, shape index: {}]   ;;  %s759_s0 = inlined_call_operand.vmem [shape: bf16[128,24], index: 0, kind: input, shape index: {}]   ;;  %s760_s2 = inlined_call_operand.vmem [shape: f32[1,24], index: 2, kind: input, shape index: {}]   ;;  %s761_s3 = inlined_call_operand.vmem [shape: f32[1,24], index: 3, kind: input, shape index: {}]   ;;  %s762_s4 = inlined_call_operand.vmem [shape: f32[1,32], index: 4, kind: input, shape index: {}]   ;;  %s763_s5 = inlined_call_operand.vmem [shape: f32[1,32], index: 5, kind: input, shape index: {}]   ;;  %s764_s6 = inlined_call_operand.vmem [shape: bf16[128,32], index: 6, kind: output, shape index: {}]  }
   0x1   :  { %v532_v0 = vld [vmem:[%s758_s1] sm:$0xff]   ;;  %v533_v1 = vld [vmem:[%s758_s1 + $0x8] ss:$0 sps:$4 sm:$0xff]   ;;  %v490_v17 = vld [vmem:[%s759_s0 + $0x10] sm:$0xff]  }
   0x2   :  { %v458_v2 = vld [vmem:[%s759_s0] sm:$0xff]   ;;  %506 = vmatprep.subr.bf16.mxu0 %v532_v0  ;;  %526 = vmatprep.subr.bf16.mxu1 %v532_v0  ;;  %v165_v7 = vsel %vm163_vm0, %v533_v1, 0  ;;  %v489_v11 = vld [vmem:[%s759_s0 + $0x8] sm:$0xff]   ;;  %v467_v29 = vunpack.c.l.bf16 %v490_v17  ;;  %v494_v38 = vld [vmem:[%s759_s0 + $0x30] sm:$0xff]   ;;  %v468_v42 = vunpack.c.h.bf16 %v490_v17 }
   0x3   :  { %v459_v3 = vunpack.c.l.bf16 %v458_v2  ;;  %v460_v4 = vunpack.c.h.bf16 %v458_v2  ;;  %v581_v5 = vld [vmem:[%s760_s2] ss:$0 sm:$0xff]  ;;  %507 = vmatpush3.bf16.msra.mxu0 %v532_v0  ;;  %528 = vmatpush3.bf16.msra.mxu1 %v532_v0  ;;  %v493_v12 = vld [vmem:[%s759_s0 + $0x28] sm:$0xff]   ;;  %v463_v15 = vunpack.c.l.bf16 %v489_v11  ;;  %v464_v16 = vunpack.c.h.bf16 %v489_v11  ;;  %v491_v43 = vld [vmem:[%s759_s0 + $0x18] sm:$0xff]  }
   0x4   :  { %v492_v6 = vld [vmem:[%s759_s0 + $0x20] sm:$0xff]   ;;  %530 = vmatprep.subr.msk.bf16.mxu0 %vm163_vm0, %v533_v1  ;;  %531 = vmatprep.subr.msk.bf16.mxu1 %vm163_vm0, %v533_v1  ;;  %v479_v20 = vunpack.c.l.bf16 %v493_v12  ;;  %v480_v21 = vunpack.c.h.bf16 %v493_v12  ;;  %v67_v47 = vmul.f32 %v467_v29, %v581_v5  ;;  %v495_v48 = vld [vmem:[%s759_s0 + $0x38] sm:$0xff]   ;;  %v68_v50 = vmul.f32 %v468_v42, %v581_v5 }
   0x5   :  { %v590_v8 = vld [vmem:[%s761_s3] ss:$0 sm:$0xff]  ;;  %v475_v9 = vunpack.c.l.bf16 %v492_v6  ;;  %v476_v10 = vunpack.c.h.bf16 %v492_v6  ;;  %v63_v13 = vmul.f32 %v459_v3, %v581_v5  ;;  %v64_v14 = vmul.f32 %v460_v4, %v581_v5 }
   0x6   :  { %v65_v24 = vmul.f32 %v463_v15, %v581_v5  ;;  %v66_v25 = vmul.f32 %v464_v16, %v581_v5  ;;  %v73_v28 = vmul.f32 %v479_v20, %v581_v5  ;;  %v74_v36 = vmul.f32 %v480_v21, %v581_v5 }
   0x7   :  { %v71_v18 = vmul.f32 %v475_v9, %v581_v5  ;;  %v72_v19 = vmul.f32 %v476_v10, %v581_v5  ;;  %v86_v22 = vadd.f32 %v590_v8, %v63_v13  ;;  %v87_v23 = vadd.f32 %v590_v8, %v64_v14  ;;  %509 = vmatpush3.bf16.msra.mxu0 %v165_v7 }
   0x8   :  { %529 = vmatpush3.bf16.msra.mxu1 %v165_v7  ;;  %v88_v32 = vadd.f32 %v590_v8, %v65_v24  ;;  %v89_v33 = vadd.f32 %v590_v8, %v66_v25  ;;  %v96_v37 = vadd.f32 %v590_v8, %v73_v28  ;;  %v97_v45 = vadd.f32 %v590_v8, %v74_v36 }
   0x9   :  { %v94_v26 = vadd.f32 %v590_v8, %v71_v18  ;;  %v95_v27 = vadd.f32 %v590_v8, %v72_v19  ;;  %v102_v30 = vmax.f32 %v86_v22, 0.0  ;;  %v103_v31 = vmax.f32 %v87_v23, 0.0 }
   0xa   :  { %v104_v40 = vmax.f32 %v88_v32, 0.0  ;;  %v105_v41 = vmax.f32 %v89_v33, 0.0  ;;  %v112_v46 = vmax.f32 %v96_v37, 0.0  ;;  %v483_v51 = vunpack.c.l.bf16 %v494_v38 }
   0xb   :  { %v110_v34 = vmax.f32 %v94_v26, 0.0  ;;  %v111_v35 = vmax.f32 %v95_v27, 0.0  ;;  %v118_v39 = vpack.c.bf16 %v103_v31, %v102_v30  ;;  %v484_v52 = vunpack.c.h.bf16 %v494_v38 }
   0xc   :  { %v119_v49 = vpack.c.bf16 %v105_v41, %v104_v40  ;;  %v113_v53 = vmax.f32 %v97_v45, 0.0  ;;  %v90_v54 = vadd.f32 %v590_v8, %v67_v47  ;;  %v471_v55 = vunpack.c.l.bf16 %v491_v43 }
   0xd   :  { %v122_v44 = vpack.c.bf16 %v111_v35, %v110_v34  ;;  %510 = vmatprep.mubr.msk.bf16.mxu0 %vm138_vm1, %v118_v39  ;;  %v472_v56 = vunpack.c.h.bf16 %v491_v43  ;;  %v91_v57 = vadd.f32 %v590_v8, %v68_v50  ;;  %v75_v58 = vmul.f32 %v483_v51, %v581_v5 }
   0xe   :  { %511 = vmatmul.mubr.msk.bf16.vlgmr.msra.gmra.mrb[0].mxu0 %vm138_vm1, %v119_v49  ;;  %v76_v59 = vmul.f32 %v484_v52, %v581_v5  ;;  %v487_v60 = vunpack.c.l.bf16 %v495_v48  ;;  %v123_v61 = vpack.c.bf16 %v113_v53, %v112_v46  ;;  %v106_v62 = vmax.f32 %v90_v54, 0.0 }
   0xf   :  { %518 = vmatprep.mubr.msk.bf16.mxu1 %vm138_vm1, %v122_v44  ;;  %v69_v63 = vmul.f32 %v471_v55, %v581_v5  ;;  %v70_v0 = vmul.f32 %v472_v56, %v581_v5  ;;  %v107_v1 = vmax.f32 %v91_v57, 0.0  ;;  %v98_v2 = vadd.f32 %v590_v8, %v75_v58 }
  0x10   :  { %v99_v3 = vadd.f32 %v590_v8, %v76_v59  ;;  %v488_v4 = vunpack.c.h.bf16 %v495_v48  ;;  %519 = vmatmul.mubr.msk.bf16.vlgmr.msra.gmra.mrb[0].mxu1 %vm138_vm1, %v123_v61  ;;  %v77_v9 = vmul.f32 %v487_v60, %v581_v5 }
  0x11   :  { %v92_v6 = vadd.f32 %v590_v8, %v69_v63  ;;  %v93_v7 = vadd.f32 %v590_v8, %v70_v0  ;;  %v120_v10 = vpack.c.bf16 %v107_v1, %v106_v62  ;;  %v114_v11 = vmax.f32 %v98_v2, 0.0 }
  0x12   :  { %v115_v12 = vmax.f32 %v99_v3, 0.0  ;;  %v78_v13 = vmul.f32 %v488_v4, %v581_v5  ;;  %v100_v16 = vadd.f32 %v590_v8, %v77_v9  ;;  %v655_v5 = vld [vmem:[%s762_s4] ss:$0 sm:$0xff] }
  0x13   :  { %v108_v14 = vmax.f32 %v92_v6, 0.0  ;;  %v109_v15 = vmax.f32 %v93_v7, 0.0  ;;  %514 = vmatprep.mubr.msk.bf16.mxu0 %vm138_vm1, %v120_v10 }
  0x14   :  { %v124_v17 = vpack.c.bf16 %v115_v12, %v114_v11  ;;  %v101_v18 = vadd.f32 %v590_v8, %v78_v13  ;;  %v116_v20 = vmax.f32 %v100_v16, 0.0  ;;  %v660_v8 = vld [vmem:[%s763_s5] ss:$0 sm:$0xff] }
  0x15   :  { %v121_v19 = vpack.c.bf16 %v109_v15, %v108_v14 }
  0x16   :  { %522 = vmatprep.mubr.msk.bf16.mxu1 %vm138_vm1, %v124_v17  ;;  %v117_v21 = vmax.f32 %v101_v18, 0.0 }
  0x17   :  { %515 = vmatmul.mubr.msk.bf16.gmra.mrb[4].mxu0 %vm138_vm1, %v121_v19 }
  0x18   :  { %v125_v22 = vpack.c.bf16 %v117_v21, %v116_v20 }
  0x1a   :  { %523 = vmatmul.mubr.msk.bf16.gmra.mrb[4].mxu1 %vm138_vm1, %v125_v22 }
  0xe1   :  { %v512_v23 = vpop.f32.mrb[0].mxu0 }
  0xe2   :  { %v273_v24 = vmul.f32 %v512_v23, %v655_v5  ;;  %v201_v25 = vpop.f32.mrb[1].mxu0 }
  0xe3   :  { %v271_v26 = vmul.f32 %v655_v5, %v201_v25  ;;  %v513_v27 = vpop.f32.mrb[2].mxu0  ;;  %v520_v29 = vpop.f32.mrb[0].mxu1 }
  0xe4   :  { %v296_v28 = vadd.f32 %v660_v8, %v273_v24  ;;  %v274_v30 = vmul.f32 %v513_v27, %v655_v5  ;;  %v204_v31 = vpop.f32.mrb[3].mxu0  ;;  %v281_v32 = vmul.f32 %v520_v29, %v655_v5  ;;  %v233_v34 = vpop.f32.mrb[1].mxu1 }
  0xe5   :  { %v294_v33 = vadd.f32 %v660_v8, %v271_v26  ;;  %v272_v35 = vmul.f32 %v655_v5, %v204_v31  ;;  %v279_v37 = vmul.f32 %v655_v5, %v233_v34  ;;  %v521_v39 = vpop.f32.mrb[2].mxu1 }
  0xe6   :  { %v312_v36 = vmax.f32 %v296_v28, 0.0  ;;  %v297_v38 = vadd.f32 %v660_v8, %v274_v30  ;;  %v304_v40 = vadd.f32 %v660_v8, %v281_v32  ;;  %v282_v42 = vmul.f32 %v521_v39, %v655_v5  ;;  %v236_v44 = vpop.f32.mrb[3].mxu1 }
  0xe7   :  { %v310_v41 = vmax.f32 %v294_v33, 0.0  ;;  %v295_v43 = vadd.f32 %v660_v8, %v272_v35  ;;  %v302_v46 = vadd.f32 %v660_v8, %v279_v37  ;;  %v280_v48 = vmul.f32 %v655_v5, %v236_v44 }
  0xe8   :  { %v443_v45 = vpack.c.bf16 %v312_v36, %v312_v36  ;;  %v313_v47 = vmax.f32 %v297_v38, 0.0  ;;  %v320_v49 = vmax.f32 %v304_v40, 0.0  ;;  %v305_v51 = vadd.f32 %v660_v8, %v282_v42 }
  0xe9   :  { %v441_v50 = vpack.c.bf16 %v310_v41, %v310_v41  ;;  %v311_v52 = vmax.f32 %v295_v43, 0.0  ;;  %v318_v53 = vmax.f32 %v302_v46, 0.0  ;;  %v303_v55 = vadd.f32 %v660_v8, %v280_v48 }
  0xea   :  { %393 = vst.msk [vmem:[%s764_s6 + $0x8] sm:$0xf] %vm390_vm2, %v443_v45  ;;  %v444_v54 = vpack.c.bf16 %v313_v47, %v313_v47  ;;  %v516_v56 = vpop.f32.mrb[4].mxu0  ;;  %v451_v57 = vpack.c.bf16 %v320_v49, %v320_v49  ;;  %v321_v58 = vmax.f32 %v305_v51, 0.0 }
  0xeb   :  { %391 = vst.msk [vmem:[%s764_s6] sm:$0xf] %vm390_vm2, %v441_v50  ;;  %v442_v59 = vpack.c.bf16 %v311_v52, %v311_v52  ;;  %v277_v60 = vmul.f32 %v516_v56, %v655_v5  ;;  %v217_v61 = vpop.f32.mrb[5].mxu0  ;;  %v449_v62 = vpack.c.bf16 %v318_v53, %v318_v53  ;;  %v319_v63 = vmax.f32 %v303_v55, 0.0 }
  0xec   :  { %394 = vst.msk [vmem:[%s764_s6 + $0xc] sm:$0xf] %vm390_vm2, %v444_v54  ;;  %v275_v0 = vmul.f32 %v655_v5, %v217_v61  ;;  %v517_v1 = vpop.f32.mrb[6].mxu0  ;;  %401 = vst.msk [vmem:[%s764_s6 + $0x28] sm:$0xf] %vm390_vm2, %v451_v57  ;;  %v452_v2 = vpack.c.bf16 %v321_v58, %v321_v58 }
  0xed   :  { %392 = vst.msk [vmem:[%s764_s6 + $0x4] sm:$0xf] %vm390_vm2, %v442_v59  ;;  %v300_v3 = vadd.f32 %v660_v8, %v277_v60  ;;  %v524_v4 = vpop.f32.mrb[4].mxu1  ;;  %v278_v6 = vmul.f32 %v517_v1, %v655_v5  ;;  %v220_v7 = vpop.f32.mrb[7].mxu0  ;;  %399 = vst.msk [vmem:[%s764_s6 + $0x20] sm:$0xf] %vm390_vm2, %v449_v62  ;;  %v450_v9 = vpack.c.bf16 %v319_v63, %v319_v63 }
  0xee   :  { %v285_v10 = vmul.f32 %v524_v4, %v655_v5  ;;  %v298_v11 = vadd.f32 %v660_v8, %v275_v0  ;;  %v249_v12 = vpop.f32.mrb[5].mxu1  ;;  %v276_v13 = vmul.f32 %v655_v5, %v220_v7  ;;  %402 = vst.msk [vmem:[%s764_s6 + $0x2c] sm:$0xf] %vm390_vm2, %v452_v2 }
  0xef   :  { %v316_v14 = vmax.f32 %v300_v3, 0.0  ;;  %v283_v15 = vmul.f32 %v655_v5, %v249_v12  ;;  %v301_v16 = vadd.f32 %v660_v8, %v278_v6  ;;  %v525_v17 = vpop.f32.mrb[6].mxu1  ;;  %400 = vst.msk [vmem:[%s764_s6 + $0x24] sm:$0xf] %vm390_vm2, %v450_v9 }
  0xf0   :  { %v308_v18 = vadd.f32 %v660_v8, %v285_v10  ;;  %v314_v19 = vmax.f32 %v298_v11, 0.0  ;;  %v286_v20 = vmul.f32 %v525_v17, %v655_v5  ;;  %v299_v21 = vadd.f32 %v660_v8, %v276_v13  ;;  %v252_v22 = vpop.f32.mrb[7].mxu1 }
  0xf1   :  { %v447_v23 = vpack.c.bf16 %v316_v14, %v316_v14  ;;  %v306_v24 = vadd.f32 %v660_v8, %v283_v15  ;;  %v317_v25 = vmax.f32 %v301_v16, 0.0  ;;  %v284_v26 = vmul.f32 %v655_v5, %v252_v22 }
  0xf2   :  { %v324_v27 = vmax.f32 %v308_v18, 0.0  ;;  %v445_v28 = vpack.c.bf16 %v314_v19, %v314_v19  ;;  %v309_v29 = vadd.f32 %v660_v8, %v286_v20  ;;  %v315_v30 = vmax.f32 %v299_v21, 0.0 }
  0xf3   :  { %397 = vst.msk [vmem:[%s764_s6 + $0x18] sm:$0xf] %vm390_vm2, %v447_v23  ;;  %v322_v31 = vmax.f32 %v306_v24, 0.0  ;;  %v448_v32 = vpack.c.bf16 %v317_v25, %v317_v25  ;;  %v307_v33 = vadd.f32 %v660_v8, %v284_v26 }
  0xf4   :  { %v455_v34 = vpack.c.bf16 %v324_v27, %v324_v27  ;;  %395 = vst.msk [vmem:[%s764_s6 + $0x10] sm:$0xf] %vm390_vm2, %v445_v28  ;;  %v325_v5 = vmax.f32 %v309_v29, 0.0  ;;  %v446_v35 = vpack.c.bf16 %v315_v30, %v315_v30 }
  0xf5   :  { %v453_v36 = vpack.c.bf16 %v322_v31, %v322_v31  ;;  %398 = vst.msk [vmem:[%s764_s6 + $0x1c] sm:$0xf] %vm390_vm2, %v448_v32  ;;  %v323_v37 = vmax.f32 %v307_v33, 0.0 }
  0xf6   :  { %405 = vst.msk [vmem:[%s764_s6 + $0x38] sm:$0xf] %vm390_vm2, %v455_v34  ;;  %v456_v8 = vpack.c.bf16 %v325_v5, %v325_v5  ;;  %396 = vst.msk [vmem:[%s764_s6 + $0x14] sm:$0xf] %vm390_vm2, %v446_v35 }
  0xf7   :  { %403 = vst.msk [vmem:[%s764_s6 + $0x30] sm:$0xf] %vm390_vm2, %v453_v36  ;;  %v454_v38 = vpack.c.bf16 %v323_v37, %v323_v37 }
  0xf8   :  { %406 = vst.msk [vmem:[%s764_s6 + $0x3c] sm:$0xf] %vm390_vm2, %v456_v8 }
  0xf9   :  { %404 = vst.msk [vmem:[%s764_s6 + $0x34] sm:$0xf] %vm390_vm2, %v454_v38 }

// kernel: densenet_with_head_forward.35
= control target key start
LH: loop header
LB: loop body
LE: loop exit
PB: predicated region body
PF: predicated region fallthrough
CT: control target
= control target key end

     0   :  { %vm42_vm0 = vcmask 261120   ;;  %vm114_vm1 = vcmask 125952   ;;  %s192_s1 = inlined_call_operand.vmem [shape: bf16[32,16], index: 1, kind: input, shape index: {}]   ;;  %s193_s0 = inlined_call_operand.vmem [shape: bf16[32,32], index: 0, kind: input, shape index: {}]   ;;  %s194_s2 = inlined_call_operand.vmem [shape: bf16[32,16], index: 2, kind: output, shape index: {}]  }
   0x1   :  { %v149_v0 = vld [vmem:[%s192_s1] sm:$0xff]   ;;  %v150_v1 = vld [vmem:[%s192_s1 + $0x8] sm:$0xff]  }
   0x2   :  { %141 = vmatprep.subr.bf16.mxu0 %v149_v0  ;;  %v151_v2 = vld [vmem:[%s193_s0] sm:$0xff]   ;;  %v152_v3 = vld [vmem:[%s193_s0 + $0x8] sm:$0xff]  }
   0x3   :  { %142 = vmatpush3.bf16.msra.mxu0 %v149_v0  ;;  %145 = vmatprep.mubr.msk.bf16.mxu0 %vm42_vm0, %v151_v2 }
   0x4   :  { %143 = vmatprep.subr.bf16.mxu0 %v150_v1 }
   0x7   :  { %144 = vmatpush3.bf16.msra.mxu0 %v150_v1 }
   0xa   :  { %146 = vmatmul.mubr.msk.bf16.vlgmr.msra.gmra.mrb[0].mxu0 %vm42_vm0, %v152_v3 }
  0xdd   :  { %v147_v4 = vpop.f32.mrb[0].mxu0 }
  0xde   :  { %v135_v5 = vpack.c.bf16 %v147_v4, %v147_v4  ;;  %v83_v6 = vpop.f32.mrb[1].mxu0 }
  0xdf   :  { %v133_v7 = vpack.c.bf16 %v83_v6, %v83_v6  ;;  %v148_v8 = vpop.f32.mrb[2].mxu0 }
  0xe0   :  { %117 = vst.msk [vmem:[%s194_s2 + $0x8] sm:$0xf] %vm114_vm1, %v135_v5  ;;  %v136_v9 = vpack.c.bf16 %v148_v8, %v148_v8  ;;  %v86_v10 = vpop.f32.mrb[3].mxu0 }
  0xe1   :  { %115 = vst.msk [vmem:[%s194_s2] sm:$0xf] %vm114_vm1, %v133_v7  ;;  %v134_v11 = vpack.c.bf16 %v86_v10, %v86_v10 }
  0xe2   :  { %118 = vst.msk [vmem:[%s194_s2 + $0xc] sm:$0xf] %vm114_vm1, %v136_v9 }
  0xe3   :  { %116 = vst.msk [vmem:[%s194_s2 + $0x4] sm:$0xf] %vm114_vm1, %v134_v11 }

// kernel: densenet_with_head_forward.34
= control target key start
LH: loop header
LB: loop body
LE: loop exit
PB: predicated region body
PF: predicated region fallthrough
CT: control target
= control target key end

     0   :  { %vm149_vm0 = vcmask 257024   ;;  %s321_s0 = inlined_call_operand.vmem [shape: bf16[32,32], index: 0, kind: input, shape index: {}]   ;;  %s322_s1 = inlined_call_operand.vmem [shape: bf16[32,32], index: 1, kind: input, shape index: {}]   ;;  %s323_s2 = inlined_call_operand.vmem [shape: bf16[32,32], index: 2, kind: input, shape index: {}]   ;;  %s324_s3 = inlined_call_operand.vmem [shape: bf16[32,32], index: 3, kind: input, shape index: {}]   ;;  %s325_s4 = inlined_call_operand.vmem [shape: f32[1,32], index: 4, kind: input, shape index: {}]   ;;  %s326_s5 = inlined_call_operand.vmem [shape: f32[1,32], index: 5, kind: input, shape index: {}]   ;;  %s327_s6 = inlined_call_operand.vmem [shape: bf16[32,32], index: 6, kind: output, shape index: {}]  }
   0x1   :  { %v242_v0 = vld [vmem:[%s325_s4] ss:$0 sm:$0xff]  ;;  %v200_v28 = vld [vmem:[%s321_s0 + $0x8] sm:$0xff]  }
   0x2   :  { %v169_v1 = vld [vmem:[%s321_s0] sm:$0xff]   ;;  %v201_v29 = vld [vmem:[%s322_s1 + $0x8] sm:$0xff]   ;;  %v174_v42 = vunpack.c.l.bf16 %v200_v28  ;;  %v175_v50 = vunpack.c.h.bf16 %v200_v28 }
   0x3   :  { %v170_v2 = vunpack.c.l.bf16 %v169_v1  ;;  %v177_v3 = vld [vmem:[%s322_s1] sm:$0xff]   ;;  %v171_v6 = vunpack.c.h.bf16 %v169_v1  ;;  %v202_v34 = vld [vmem:[%s323_s2 + $0x8] sm:$0xff]   ;;  %v182_v43 = vunpack.c.l.bf16 %v201_v29  ;;  %v183_v51 = vunpack.c.h.bf16 %v201_v29 }
   0x4   :  { %v185_v4 = vld [vmem:[%s323_s2] sm:$0xff]   ;;  %v178_v8 = vunpack.c.l.bf16 %v177_v3  ;;  %v179_v11 = vunpack.c.h.bf16 %v177_v3  ;;  %v203_v35 = vld [vmem:[%s324_s3 + $0x8] sm:$0xff]   ;;  %v190_v46 = vunpack.c.l.bf16 %v202_v34  ;;  %v41_v48 = vmul.f32 %v174_v42, %v242_v0 }
   0x5   :  { %v193_v5 = vld [vmem:[%s324_s3] sm:$0xff]   ;;  %v186_v9 = vunpack.c.l.bf16 %v185_v4  ;;  %v39_v12 = vmul.f32 %v170_v2, %v242_v0  ;;  %v40_v13 = vmul.f32 %v171_v6, %v242_v0  ;;  %v187_v14 = vunpack.c.h.bf16 %v185_v4 }
   0x6   :  { %v259_v7 = vld [vmem:[%s326_s5] ss:$0 sm:$0xff]  ;;  %v194_v10 = vunpack.c.l.bf16 %v193_v5  ;;  %v195_v15 = vunpack.c.h.bf16 %v193_v5  ;;  %v65_v16 = vmul.f32 %v178_v8, %v242_v0  ;;  %v66_v19 = vmul.f32 %v179_v11, %v242_v0 }
   0x7   :  { %v89_v17 = vmul.f32 %v186_v9, %v242_v0  ;;  %v49_v20 = vadd.f32 %v259_v7, %v39_v12  ;;  %v50_v21 = vadd.f32 %v259_v7, %v40_v13  ;;  %v90_v22 = vmul.f32 %v187_v14, %v242_v0 }
   0x8   :  { %v113_v18 = vmul.f32 %v194_v10, %v242_v0  ;;  %v114_v23 = vmul.f32 %v195_v15, %v242_v0  ;;  %v69_v24 = vadd.f32 %v259_v7, %v65_v16  ;;  %v70_v27 = vadd.f32 %v259_v7, %v66_v19 }
   0x9   :  { %v93_v25 = vadd.f32 %v259_v7, %v89_v17  ;;  %v53_v30 = vmax.f32 %v49_v20, 0.0  ;;  %v54_v31 = vmax.f32 %v50_v21, 0.0  ;;  %v94_v32 = vadd.f32 %v259_v7, %v90_v22 }
   0xa   :  { %v117_v26 = vadd.f32 %v259_v7, %v113_v18  ;;  %v118_v33 = vadd.f32 %v259_v7, %v114_v23  ;;  %v73_v36 = vmax.f32 %v69_v24, 0.0  ;;  %v74_v39 = vmax.f32 %v70_v27, 0.0 }
   0xb   :  { %v97_v37 = vmax.f32 %v93_v25, 0.0  ;;  %v98_v40 = vmax.f32 %v94_v32, 0.0  ;;  %v198_v47 = vunpack.c.l.bf16 %v203_v35  ;;  %v67_v49 = vmul.f32 %v182_v43, %v242_v0 }
   0xc   :  { %v121_v38 = vmax.f32 %v117_v26, 0.0  ;;  %v122_v41 = vmax.f32 %v118_v33, 0.0  ;;  %v77_v44 = vadd.f32 %v73_v36, %v53_v30  ;;  %v78_v45 = vadd.f32 %v74_v39, %v54_v31 }
   0xd   :  { %v91_v54 = vmul.f32 %v190_v46, %v242_v0  ;;  %v115_v55 = vmul.f32 %v198_v47, %v242_v0  ;;  %v51_v56 = vadd.f32 %v259_v7, %v41_v48  ;;  %v71_v57 = vadd.f32 %v259_v7, %v67_v49 }
   0xe   :  { %v101_v52 = vadd.f32 %v97_v37, %v77_v44  ;;  %v102_v53 = vadd.f32 %v98_v40, %v78_v45  ;;  %v42_v58 = vmul.f32 %v175_v50, %v242_v0  ;;  %v68_v59 = vmul.f32 %v183_v51, %v242_v0 }
   0xf   :  { %v95_v62 = vadd.f32 %v259_v7, %v91_v54  ;;  %v119_v63 = vadd.f32 %v259_v7, %v115_v55  ;;  %v55_v1 = vmax.f32 %v51_v56, 0.0  ;;  %v75_v2 = vmax.f32 %v71_v57, 0.0 }
  0x10   :  { %v125_v60 = vadd.f32 %v121_v38, %v101_v52  ;;  %v126_v61 = vadd.f32 %v122_v41, %v102_v53  ;;  %v52_v3 = vadd.f32 %v259_v7, %v42_v58  ;;  %v72_v4 = vadd.f32 %v259_v7, %v68_v59 }
  0x11   :  { %v99_v8 = vmax.f32 %v95_v62, 0.0  ;;  %v123_v9 = vmax.f32 %v119_v63, 0.0  ;;  %v79_v10 = vadd.f32 %v75_v2, %v55_v1  ;;  %v191_v13 = vunpack.c.h.bf16 %v202_v34 }
  0x12   :  { %v129_v5 = vmul.f32 0.25, %v125_v60  ;;  %v130_v6 = vmul.f32 0.25, %v126_v61  ;;  %v56_v11 = vmax.f32 %v52_v3, 0.0  ;;  %v76_v12 = vmax.f32 %v72_v4, 0.0 }
  0x13   :  { %v199_v16 = vunpack.c.h.bf16 %v203_v35  ;;  %v103_v17 = vadd.f32 %v99_v8, %v79_v10  ;;  %v92_v18 = vmul.f32 %v191_v13, %v242_v0 }
  0x14   :  { %v164_v14 = vpack.c.bf16 %v129_v5, %v129_v5  ;;  %v165_v15 = vpack.c.bf16 %v130_v6, %v130_v6  ;;  %v80_v21 = vadd.f32 %v76_v12, %v56_v11 }
  0x15   :  { %v116_v19 = vmul.f32 %v199_v16, %v242_v0  ;;  %v127_v20 = vadd.f32 %v123_v9, %v103_v17  ;;  %v96_v22 = vadd.f32 %v259_v7, %v92_v18 }
  0x16   :  { %150 = vst.msk [vmem:[%s327_s6] sm:$0xf] %vm149_vm0, %v164_v14  ;;  %151 = vst.msk [vmem:[%s327_s6 + $0x4] sm:$0xf] %vm149_vm0, %v165_v15 }
  0x17   :  { %v120_v23 = vadd.f32 %v259_v7, %v116_v19  ;;  %v131_v24 = vmul.f32 0.25, %v127_v20  ;;  %v100_v25 = vmax.f32 %v96_v22, 0.0 }
  0x19   :  { %v124_v26 = vmax.f32 %v120_v23, 0.0  ;;  %v166_v27 = vpack.c.bf16 %v131_v24, %v131_v24  ;;  %v104_v28 = vadd.f32 %v100_v25, %v80_v21 }
  0x1b   :  { %152 = vst.msk [vmem:[%s327_s6 + $0x8] sm:$0xf] %vm149_vm0, %v166_v27  ;;  %v128_v29 = vadd.f32 %v124_v26, %v104_v28 }
  0x1d   :  { %v132_v30 = vmul.f32 0.25, %v128_v29 }
  0x1f   :  { %v167_v31 = vpack.c.bf16 %v132_v30, %v132_v30 }
  0x21   :  { %153 = vst.msk [vmem:[%s327_s6 + $0xc] sm:$0xf] %vm149_vm0, %v167_v31 }

// kernel: densenet_with_head_forward.36
= control target key start
LH: loop header
LB: loop body
LE: loop exit
PB: predicated region body
PF: predicated region fallthrough
CT: control target
= control target key end

     0   :  { %11 = vsyncpa [#allocation3], 0  ;;  %s465_s0 = inlined_call_operand.vmem [shape: bf16[32,16], index: 0, kind: input, shape index: {}]   ;;  %s466_s1 = inlined_call_operand.vmem [shape: bf16[16,32], index: 1, kind: input, shape index: {}]   ;;  %s467_s2 = inlined_call_operand.hbm [shape: f32[1,16], index: 2, kind: input, shape index: {}]   ;;  %s468_s3 = inlined_call_operand.hbm [shape: f32[1,16], index: 3, kind: input, shape index: {}]   ;;  %s469_s4 = inlined_call_operand.hbm [shape: f32[1,32], index: 4, kind: input, shape index: {}]   ;;  %s470_s5 = inlined_call_operand.hbm [shape: f32[1,32], index: 5, kind: input, shape index: {}]   ;;  %s471_s6 = inlined_call_operand.vmem [shape: bf16[32,32], index: 6, kind: output, shape index: {}]  }
   0x1   :  { %12 = vsyncpa [#allocation5], 0 }
   0x2   :  { %13 = vsyncpa [#allocation8], 0  ;;  %s357_s21 = smov [#allocation4]   ;;  %s358_s23 = smov [#allocation2]  }
   0x3   :  { %s34_s22 = sshll.u32 %s357_s21, 4  ;;  %s24_s24 = sshll.u32 %s358_s23, 4  ;;  %s35_s22 = int_to_ptr.vmem [resolvable:$true] %s34_s22  ;;  %s25_s24 = int_to_ptr.vmem [resolvable:$true] %s24_s24 }
   0x4   :  { %s263_s27 = scalar_lea.hbm %s468_s3, 16 }
   0x5   :  { %p264_p0 = scmp.ne.s32.totalorder %s468_s3, %s263_s27  ;;  %p267_p1 = scmp.lt.u32.totalorder %s263_s27, %s468_s3 }
   0x7   :  { %p269_p2 = pnand %p267_p1, %p264_p0 }
   0x9   :  { %272 = shalt.err (!%p269_p2)
}
   0xa   :  { %s273_s8 = scalar_lea.vmem %s35_s22, 16  ;;  %s277_s9 = scalar_lea.vmem %s35_s22, 32 }
   0xb   :  { %p274_p3 = scmp.ne.s32.totalorder %s35_s22, %s273_s8  ;;  %p278_p4 = scmp.lt.s32.totalorder %s35_s22, %s35_s22 }
   0xc   :  { %p279_p5 = scmp.lt.s32.totalorder %s277_s9, %s273_s8 }
   0xe   :  { %p280_p6 = por %p279_p5, %p278_p4 }
  0x10   :  { %p281_p7 = pnand %p280_p6, %p274_p3 }
  0x12   :  { %284 = shalt.err (!%p281_p7)
}
  0x13   :  { %37 = dma.hbm_to_vmem [thread:$0]  %s468_s3, 16, %s35_s22, [#allocation5]  }
  0x14   :  { %s285_s14 = scalar_lea.hbm %s467_s2, 16 }
  0x15   :  { %p286_p8 = scmp.ne.s32.totalorder %s467_s2, %s285_s14  ;;  %p289_p9 = scmp.lt.u32.totalorder %s285_s14, %s467_s2 }
  0x17   :  { %p291_p10 = pnand %p289_p9, %p286_p8 }
  0x19   :  { %294 = shalt.err (!%p291_p10)
}
  0x1a   :  { %s295_s19 = scalar_lea.vmem %s25_s24, 16  ;;  %s299_s20 = scalar_lea.vmem %s25_s24, 32 }
  0x1b   :  { %p296_p11 = scmp.ne.s32.totalorder %s25_s24, %s295_s19  ;;  %p300_p12 = scmp.lt.s32.totalorder %s25_s24, %s25_s24 }
  0x1c   :  { %p301_p13 = scmp.lt.s32.totalorder %s299_s20, %s295_s19 }
  0x1e   :  { %p302_p0 = por %p301_p13, %p300_p12 }
  0x20   :  { %p303_p1 = pnand %p302_p0, %p296_p11 }
  0x22   :  { %306 = shalt.err (!%p303_p1)
}
  0x23   :  { %27 = dma.hbm_to_vmem [thread:$0]  %s467_s2, 16, %s25_s24, [#allocation3]  }
  0x24   :  { %s359_s22 = smov [#allocation6]   ;;  %s360_s25 = smov [#allocation7]  }
  0x25   :  { %s44_s23 = sshll.u32 %s359_s22, 4  ;;  %s54_s26 = sshll.u32 %s360_s25, 4  ;;  %s45_s23 = int_to_ptr.vmem [resolvable:$true] %s44_s23  ;;  %s55_s26 = int_to_ptr.vmem [resolvable:$true] %s54_s26 }
  0x26   :  { %s307_s29 = scalar_lea.hbm %s469_s4, 16 }
  0x27   :  { %p308_p2 = scmp.ne.s32.totalorder %s469_s4, %s307_s29  ;;  %p311_p3 = scmp.lt.u32.totalorder %s307_s29, %s469_s4 }
  0x29   :  { %p313_p4 = pnand %p311_p3, %p308_p2 }
  0x2b   :  { %316 = shalt.err (!%p313_p4)
}
  0x2c   :  { %s317_s2 = scalar_lea.vmem %s45_s23, 16  ;;  %s321_s24 = scalar_lea.vmem %s45_s23, 32 }
  0x2d   :  { %p318_p5 = scmp.ne.s32.totalorder %s45_s23, %s317_s2  ;;  %p322_p6 = scmp.lt.s32.totalorder %s45_s23, %s45_s23 }
  0x2e   :  { %p323_p7 = scmp.lt.s32.totalorder %s321_s24, %s317_s2 }
  0x30   :  { %p324_p8 = por %p323_p7, %p322_p6 }
  0x32   :  { %p325_p9 = pnand %p324_p8, %p318_p5 }
  0x34   :  { %328 = shalt.err (!%p325_p9)
}
  0x35   :  { %47 = dma.hbm_to_vmem [thread:$0]  %s469_s4, 16, %s45_s23, [#allocation5]  }
  0x36   :  { %s329_s14 = scalar_lea.hbm %s470_s5, 16 }
  0x37   :  { %p330_p10 = scmp.ne.s32.totalorder %s470_s5, %s329_s14  ;;  %p333_p11 = scmp.lt.u32.totalorder %s329_s14, %s470_s5 }
  0x39   :  { %p335_p12 = pnand %p333_p11, %p330_p10 }
  0x3b   :  { %338 = shalt.err (!%p335_p12)
}
  0x3c   :  { %s339_s19 = scalar_lea.vmem %s55_s26, 16  ;;  %s343_s20 = scalar_lea.vmem %s55_s26, 32 }
  0x3d   :  { %p340_p13 = scmp.ne.s32.totalorder %s55_s26, %s339_s19  ;;  %p344_p0 = scmp.lt.s32.totalorder %s55_s26, %s55_s26 }
  0x3e   :  { %p345_p1 = scmp.lt.s32.totalorder %s343_s20, %s339_s19 }
  0x40   :  { %p346_p2 = por %p345_p1, %p344_p0 }
  0x42   :  { %p347_p3 = pnand %p346_p2, %p340_p13 }
  0x44   :  { %350 = shalt.err (!%p347_p3)
}
  0x45   :  { %57 = dma.hbm_to_vmem [thread:$0]  %s470_s5, 16, %s55_s26, [#allocation8]  }
  0x46   :  { %351 = dma.done.wait [#allocation3], 16  }
  0x47   :  { %352 = vsyncadd [#allocation3], 4294967280 }
  0x48   :  { %353 = dma.done.wait [#allocation5], 32  }
  0x49   :  { %354 = vsyncadd [#allocation5], 4294967264 }
  0x4a   :  { %355 = dma.done.wait [#allocation8], 16  }
  0x4b   :  { %356 = vsyncadd [#allocation8], 4294967280  ;;  %v262_v0 = vld [vmem:[%s466_s1] sm:$0xff]   ;;  %v248_v5 = vld [vmem:[%s465_s0 + $0x8] sm:$0xff]   ;;  %vm115_vm0 = vcmask 130048   ;;  %vm213_vm1 = vcmask 257024  }
  0x4c   :  { %v241_v1 = vld [vmem:[%s465_s0] sm:$0xff]   ;;  %252 = vmatprep.subr.bf16.mxu0 %v262_v0  ;;  %v246_v7 = vunpack.c.l.bf16 %v248_v5  ;;  %v247_v8 = vunpack.c.h.bf16 %v248_v5 }
  0x4d   :  { %v225_v2 = vld [vmem:[#allocation2] ss:$0 sm:$0xff]  ;;  %v242_v3 = vunpack.c.l.bf16 %v241_v1  ;;  %v243_v4 = vunpack.c.h.bf16 %v241_v1  ;;  %253 = vmatpush3.bf16.msra.mxu0 %v262_v0  ;;  %v226_v6 = vld [vmem:[#allocation4] ss:$0 sm:$0xff]  ;;  %v230_v23 = vld [vmem:[#allocation6] ss:$0 sm:$0xff] }
  0x4e   :  { %v88_v11 = vmul.f32 %v246_v7, %v225_v2  ;;  %v89_v12 = vmul.f32 %v247_v8, %v225_v2  ;;  %v231_v25 = vld [vmem:[#allocation7] ss:$0 sm:$0xff] }
  0x4f   :  { %v86_v9 = vmul.f32 %v242_v3, %v225_v2  ;;  %v87_v10 = vmul.f32 %v243_v4, %v225_v2 }
  0x50   :  { %v99_v15 = vadd.f32 %v226_v6, %v88_v11  ;;  %v100_v16 = vadd.f32 %v226_v6, %v89_v12 }
  0x51   :  { %v97_v13 = vadd.f32 %v226_v6, %v86_v9  ;;  %v98_v14 = vadd.f32 %v226_v6, %v87_v10 }
  0x52   :  { %v103_v19 = vmax.f32 %v99_v15, 0.0  ;;  %v104_v20 = vmax.f32 %v100_v16, 0.0 }
  0x53   :  { %v101_v17 = vmax.f32 %v97_v13, 0.0  ;;  %v102_v18 = vmax.f32 %v98_v14, 0.0 }
  0x54   :  { %v106_v22 = vpack.c.bf16 %v104_v20, %v103_v19 }
  0x55   :  { %v105_v21 = vpack.c.bf16 %v102_v18, %v101_v17 }
  0x57   :  { %254 = vmatprep.mubr.msk.bf16.mxu0 %vm115_vm0, %v105_v21 }
  0x58   :  { %255 = vmatmul.mubr.msk.bf16.vlgmr.msra.gmra.mrb[0].mxu0 %vm115_vm0, %v106_v22 }
 0x12b   :  { %v256_v24 = vpop.f32.mrb[0].mxu0 }
 0x12c   :  { %v180_v26 = vmul.f32 %v256_v24, %v230_v23  ;;  %v156_v27 = vpop.f32.mrb[1].mxu0 }
 0x12d   :  { %v178_v28 = vmul.f32 %v230_v23, %v156_v27  ;;  %v257_v29 = vpop.f32.mrb[2].mxu0 }
 0x12e   :  { %v191_v30 = vadd.f32 %v231_v25, %v180_v26  ;;  %v181_v31 = vmul.f32 %v257_v29, %v230_v23  ;;  %v159_v32 = vpop.f32.mrb[3].mxu0 }
 0x12f   :  { %v189_v33 = vadd.f32 %v231_v25, %v178_v28  ;;  %v179_v34 = vmul.f32 %v230_v23, %v159_v32 }
 0x130   :  { %v195_v35 = vmax.f32 %v191_v30, 0.0  ;;  %v192_v36 = vadd.f32 %v231_v25, %v181_v31 }
 0x131   :  { %v193_v37 = vmax.f32 %v189_v33, 0.0  ;;  %v190_v38 = vadd.f32 %v231_v25, %v179_v34 }
 0x132   :  { %v238_v39 = vpack.c.bf16 %v195_v35, %v195_v35  ;;  %v196_v40 = vmax.f32 %v192_v36, 0.0 }
 0x133   :  { %v236_v41 = vpack.c.bf16 %v193_v37, %v193_v37  ;;  %v194_v42 = vmax.f32 %v190_v38, 0.0 }
 0x134   :  { %216 = vst.msk [vmem:[%s471_s6 + $0x8] sm:$0xf] %vm213_vm1, %v238_v39  ;;  %v239_v43 = vpack.c.bf16 %v196_v40, %v196_v40 }
 0x135   :  { %214 = vst.msk [vmem:[%s471_s6] sm:$0xf] %vm213_vm1, %v236_v41  ;;  %v237_v44 = vpack.c.bf16 %v194_v42, %v194_v42 }
 0x136   :  { %217 = vst.msk [vmem:[%s471_s6 + $0xc] sm:$0xf] %vm213_vm1, %v239_v43 }
 0x137   :  { %215 = vst.msk [vmem:[%s471_s6 + $0x4] sm:$0xf] %vm213_vm1, %v237_v44 }
 0x138   :  { %222 = vsyncpa [#allocation3], 1 }
 0x139   :  { %223 = vsyncpa [#allocation5], 1 }
 0x13a   :  { %224 = vsyncpa [#allocation8], 1 }

// kernel: densenet_with_head_forward.37
= control target key start
LH: loop header
LB: loop body
LE: loop exit
PB: predicated region body
PF: predicated region fallthrough
CT: control target
= control target key end

     0   :  { %vm194_vm0 = vcmask 261120   ;;  %vm315_vm1 = vcmask 60416   ;;  %s527_s1 = inlined_call_operand.vmem [shape: bf16[288,8], index: 1, kind: input, shape index: {}]   ;;  %s528_s0 = inlined_call_operand.vmem [shape: bf16[32,288], index: 0, kind: input, shape index: {}]   ;;  %s529_s2 = inlined_call_operand.vmem [shape: bf16[32,8], index: 2, kind: output, shape index: {}]  }
   0x1   :  { %v398_v0 = vld [vmem:[%s527_s1 + $0x40] sm:$0xff]   ;;  %v400_v2 = vld [vmem:[%s527_s1 + $0x48] sm:$0xff]   ;;  %v402_v4 = vld [vmem:[%s527_s1 + $0x50] sm:$0xff]  }
   0x2   :  { %v399_v1 = vld [vmem:[%s527_s1] sm:$0xff]   ;;  %358 = vmatprep.subr.bf16.mxu0 %v398_v0  ;;  %v401_v3 = vld [vmem:[%s527_s1 + $0x8] sm:$0xff]   ;;  %v403_v5 = vld [vmem:[%s527_s1 + $0x10] sm:$0xff]  }
   0x3   :  { %359 = vmatpush3.bf16.msra.mxu0 %v399_v1  ;;  %v404_v6 = vld [vmem:[%s527_s1 + $0x58] sm:$0xff]   ;;  %v406_v8 = vld [vmem:[%s527_s1 + $0x60] sm:$0xff]   ;;  %v408_v11 = vld [vmem:[%s527_s1 + $0x68] sm:$0xff]  }
   0x4   :  { %360 = vmatprep.subr.bf16.mxu0 %v400_v2  ;;  %v405_v7 = vld [vmem:[%s527_s1 + $0x18] sm:$0xff]   ;;  %v412_v9 = vld [vmem:[%s527_s1 + $0x80] sm:$0xff]   ;;  %v409_v12 = vld [vmem:[%s527_s1 + $0x28] sm:$0xff]  }
   0x5   :  { %v407_v10 = vld [vmem:[%s527_s1 + $0x20] sm:$0xff]   ;;  %390 = vmatprep.subr.bf16.mxu1 %v412_v9  ;;  %v415_v13 = vld [vmem:[%s527_s1 + $0x88] sm:$0xff]   ;;  %v410_v14 = vld [vmem:[%s527_s1 + $0x70] sm:$0xff]  }
   0x6   :  { %391 = vmatpush3.bf16.msra.mxu1 %v412_v9  ;;  %v418_v15 = vld [vmem:[%s528_s0 + $0x4] ss:$12 sps:$4 sm:$0xff]   ;;  %v419_v16 = vld [vmem:[%s528_s0 + $0x8] ss:$12 sps:$4 sm:$0xff]   ;;  %v420_v17 = vld [vmem:[%s528_s0 + $0x20] ss:$12 sps:$4 sm:$0xff]  }
   0x7   :  { %361 = vmatpush3.bf16.msra.mxu0 %v401_v3  ;;  %392 = vmatprep.subr.bf16.mxu1 %v415_v13  ;;  %v411_v18 = vld [vmem:[%s527_s1 + $0x30] sm:$0xff]   ;;  %v413_v19 = vld [vmem:[%s527_s1 + $0x78] sm:$0xff]   ;;  %v416_v21 = vld [vmem:[%s528_s0] ss:$12 sps:$4 sm:$0xff]  }
   0x8   :  { %362 = vmatprep.subr.bf16.mxu0 %v402_v4  ;;  %233 = vmatprep.mubr.bf16.mxu0 %v418_v15  ;;  %v414_v20 = vld [vmem:[%s527_s1 + $0x38] sm:$0xff]  }
   0x9   :  { %394 = vmatprep.mubr.msk.bf16.mxu1 %vm194_vm0, %v419_v16  ;;  %v421_v22 = vld [vmem:[%s528_s0 + $0x1c] ss:$12 sps:$4 sm:$0xff]   ;;  %v423_v23 = vld [vmem:[%s528_s0 + $0x18] ss:$12 sps:$4 sm:$0xff]  }
   0xa   :  { %393 = vmatpush3.bf16.msra.mxu1 %v415_v13 }
   0xb   :  { %363 = vmatpush3.bf16.msra.mxu0 %v403_v5 }
   0xc   :  { %364 = vmatprep.subr.bf16.mxu0 %v404_v6 }
   0xd   :  { %395 = vmatmul.mubr.msk.bf16.vlgmr.msra.gmra.mrb[0].mxu1 %vm194_vm0, %v420_v17 }
   0xf   :  { %365 = vmatpush3.bf16.msra.mxu0 %v405_v7 }
  0x10   :  { %366 = vmatprep.subr.bf16.mxu0 %v406_v8 }
  0x13   :  { %367 = vmatpush3.bf16.msra.mxu0 %v407_v10 }
  0x14   :  { %368 = vmatprep.subr.bf16.mxu0 %v408_v11 }
  0x17   :  { %369 = vmatpush3.bf16.msra.mxu0 %v409_v12 }
  0x18   :  { %370 = vmatprep.subr.bf16.mxu0 %v410_v14 }
  0x1b   :  { %371 = vmatpush3.bf16.msra.mxu0 %v411_v18 }
  0x1c   :  { %372 = vmatprep.subr.bf16.mxu0 %v413_v19 }
  0x1f   :  { %373 = vmatpush3.bf16.msra.mxu0 %v414_v20 }
  0x22   :  { %234 = vmatmul.mubr.bf16.vlgmr.msra.gmra.mrb[0].mxu0 %v416_v21 }
  0x23   :  { %241 = vmatprep.mubr.bf16.mxu0 %v421_v22 }
  0x2a   :  { %242 = vmatmul.mubr.bf16.gmra.mrb[4].mxu0 %v423_v23 }
  0xe0   :  { %v396_v24 = vpop.f32.mrb[0].mxu1 }
  0xe1   :  { %v284_v25 = vpop.f32.mrb[1].mxu1 }
  0xe2   :  { %v397_v26 = vpop.f32.mrb[2].mxu1 }
  0xe3   :  { %v287_v27 = vpop.f32.mrb[3].mxu1 }
  0xf5   :  { %v374_v28 = vpop.f32.mrb[0].mxu0 }
  0xf6   :  { %v375_v29 = vpop.f32.mrb[1].mxu0 }
  0xf7   :  { %v376_v30 = vadd.f32 %v375_v29, %v374_v28  ;;  %v377_v31 = vpop.f32.mrb[2].mxu0 }
  0xf8   :  { %v378_v32 = vpop.f32.mrb[3].mxu0 }
  0xf9   :  { %v379_v33 = vadd.f32 %v378_v32, %v377_v31  ;;  %v285_v34 = vadd.f32 %v376_v30, %v284_v25 }
  0xfb   :  { %v354_v35 = vpack.c.bf16 %v285_v34, %v285_v34  ;;  %v288_v36 = vadd.f32 %v379_v33, %v287_v27 }
  0xfd   :  { %316 = vst.msk [vmem:[%s529_s2] sm:$0xf] %vm315_vm1, %v354_v35  ;;  %v355_v37 = vpack.c.bf16 %v288_v36, %v288_v36  ;;  %v380_v38 = vpop.f32.mrb[4].mxu0 }
  0xfe   :  { %v381_v39 = vpop.f32.mrb[5].mxu0 }
  0xff   :  { %317 = vst.msk [vmem:[%s529_s2 + $0x4] sm:$0xf] %vm315_vm1, %v355_v37  ;;  %v382_v40 = vadd.f32 %v381_v39, %v380_v38  ;;  %v383_v41 = vpop.f32.mrb[6].mxu0 }
 0x100   :  { %v384_v42 = vpop.f32.mrb[7].mxu0 }
 0x101   :  { %v293_v43 = vadd.f32 %v396_v24, %v382_v40  ;;  %v385_v44 = vadd.f32 %v384_v42, %v383_v41 }
 0x103   :  { %v356_v45 = vpack.c.bf16 %v293_v43, %v293_v43  ;;  %v296_v46 = vadd.f32 %v397_v26, %v385_v44 }
 0x105   :  { %318 = vst.msk [vmem:[%s529_s2 + $0x8] sm:$0xf] %vm315_vm1, %v356_v45  ;;  %v357_v47 = vpack.c.bf16 %v296_v46, %v296_v46 }
 0x107   :  { %319 = vst.msk [vmem:[%s529_s2 + $0xc] sm:$0xf] %vm315_vm1, %v357_v47 }

// kernel: densenet_with_head_forward.38
= control target key start
LH: loop header
LB: loop body
LE: loop exit
PB: predicated region body
PF: predicated region fallthrough
CT: control target
= control target key end

     0   :  { %11 = vsyncpa [#allocation3], 0  ;;  %s482_s0 = inlined_call_operand.vmem [shape: bf16[32,24], index: 0, kind: input, shape index: {}]   ;;  %s483_s1 = inlined_call_operand.vmem [shape: bf16[24,32], index: 1, kind: input, shape index: {}]   ;;  %s484_s2 = inlined_call_operand.hbm [shape: f32[1,24], index: 2, kind: input, shape index: {}]   ;;  %s485_s3 = inlined_call_operand.hbm [shape: f32[1,24], index: 3, kind: input, shape index: {}]   ;;  %s486_s4 = inlined_call_operand.hbm [shape: f32[1,32], index: 4, kind: input, shape index: {}]   ;;  %s487_s5 = inlined_call_operand.hbm [shape: f32[1,32], index: 5, kind: input, shape index: {}]   ;;  %s488_s6 = inlined_call_operand.vmem [shape: bf16[32,32], index: 6, kind: output, shape index: {}]  }
   0x1   :  { %12 = vsyncpa [#allocation5], 0 }
   0x2   :  { %13 = vsyncpa [#allocation8], 0  ;;  %s371_s21 = smov [#allocation4]   ;;  %s372_s23 = smov [#allocation2]  }
   0x3   :  { %s34_s22 = sshll.u32 %s371_s21, 4  ;;  %s24_s24 = sshll.u32 %s372_s23, 4  ;;  %s35_s22 = int_to_ptr.vmem [resolvable:$true] %s34_s22  ;;  %s25_s24 = int_to_ptr.vmem [resolvable:$true] %s24_s24 }
   0x4   :  { %s277_s27 = scalar_lea.hbm %s485_s3, 16 }
   0x5   :  { %p278_p0 = scmp.ne.s32.totalorder %s485_s3, %s277_s27  ;;  %p281_p1 = scmp.lt.u32.totalorder %s277_s27, %s485_s3 }
   0x7   :  { %p283_p2 = pnand %p281_p1, %p278_p0 }
   0x9   :  { %286 = shalt.err (!%p283_p2)
}
   0xa   :  { %s287_s8 = scalar_lea.vmem %s35_s22, 16  ;;  %s291_s9 = scalar_lea.vmem %s35_s22, 32 }
   0xb   :  { %p288_p3 = scmp.ne.s32.totalorder %s35_s22, %s287_s8  ;;  %p292_p4 = scmp.lt.s32.totalorder %s35_s22, %s35_s22 }
   0xc   :  { %p293_p5 = scmp.lt.s32.totalorder %s291_s9, %s287_s8 }
   0xe   :  { %p294_p6 = por %p293_p5, %p292_p4 }
  0x10   :  { %p295_p7 = pnand %p294_p6, %p288_p3 }
  0x12   :  { %298 = shalt.err (!%p295_p7)
}
  0x13   :  { %37 = dma.hbm_to_vmem [thread:$0]  %s485_s3, 16, %s35_s22, [#allocation5]  }
  0x14   :  { %s299_s14 = scalar_lea.hbm %s484_s2, 16 }
  0x15   :  { %p300_p8 = scmp.ne.s32.totalorder %s484_s2, %s299_s14  ;;  %p303_p9 = scmp.lt.u32.totalorder %s299_s14, %s484_s2 }
  0x17   :  { %p305_p10 = pnand %p303_p9, %p300_p8 }
  0x19   :  { %308 = shalt.err (!%p305_p10)
}
  0x1a   :  { %s309_s19 = scalar_lea.vmem %s25_s24, 16  ;;  %s313_s20 = scalar_lea.vmem %s25_s24, 32 }
  0x1b   :  { %p310_p11 = scmp.ne.s32.totalorder %s25_s24, %s309_s19  ;;  %p314_p12 = scmp.lt.s32.totalorder %s25_s24, %s25_s24 }
  0x1c   :  { %p315_p13 = scmp.lt.s32.totalorder %s313_s20, %s309_s19 }
  0x1e   :  { %p316_p0 = por %p315_p13, %p314_p12 }
  0x20   :  { %p317_p1 = pnand %p316_p0, %p310_p11 }
  0x22   :  { %320 = shalt.err (!%p317_p1)
}
  0x23   :  { %27 = dma.hbm_to_vmem [thread:$0]  %s484_s2, 16, %s25_s24, [#allocation3]  }
  0x24   :  { %s373_s22 = smov [#allocation6]   ;;  %s374_s25 = smov [#allocation7]  }
  0x25   :  { %s44_s23 = sshll.u32 %s373_s22, 4  ;;  %s54_s26 = sshll.u32 %s374_s25, 4  ;;  %s45_s23 = int_to_ptr.vmem [resolvable:$true] %s44_s23  ;;  %s55_s26 = int_to_ptr.vmem [resolvable:$true] %s54_s26 }
  0x26   :  { %s321_s29 = scalar_lea.hbm %s486_s4, 16 }
  0x27   :  { %p322_p2 = scmp.ne.s32.totalorder %s486_s4, %s321_s29  ;;  %p325_p3 = scmp.lt.u32.totalorder %s321_s29, %s486_s4 }
  0x29   :  { %p327_p4 = pnand %p325_p3, %p322_p2 }
  0x2b   :  { %330 = shalt.err (!%p327_p4)
}
  0x2c   :  { %s331_s2 = scalar_lea.vmem %s45_s23, 16  ;;  %s335_s24 = scalar_lea.vmem %s45_s23, 32 }
  0x2d   :  { %p332_p5 = scmp.ne.s32.totalorder %s45_s23, %s331_s2  ;;  %p336_p6 = scmp.lt.s32.totalorder %s45_s23, %s45_s23 }
  0x2e   :  { %p337_p7 = scmp.lt.s32.totalorder %s335_s24, %s331_s2 }
  0x30   :  { %p338_p8 = por %p337_p7, %p336_p6 }
  0x32   :  { %p339_p9 = pnand %p338_p8, %p332_p5 }
  0x34   :  { %342 = shalt.err (!%p339_p9)
}
  0x35   :  { %47 = dma.hbm_to_vmem [thread:$0]  %s486_s4, 16, %s45_s23, [#allocation5]  }
  0x36   :  { %s343_s14 = scalar_lea.hbm %s487_s5, 16 }
  0x37   :  { %p344_p10 = scmp.ne.s32.totalorder %s487_s5, %s343_s14  ;;  %p347_p11 = scmp.lt.u32.totalorder %s343_s14, %s487_s5 }
  0x39   :  { %p349_p12 = pnand %p347_p11, %p344_p10 }
  0x3b   :  { %352 = shalt.err (!%p349_p12)
}
  0x3c   :  { %s353_s19 = scalar_lea.vmem %s55_s26, 16  ;;  %s357_s20 = scalar_lea.vmem %s55_s26, 32 }
  0x3d   :  { %p354_p13 = scmp.ne.s32.totalorder %s55_s26, %s353_s19  ;;  %p358_p0 = scmp.lt.s32.totalorder %s55_s26, %s55_s26 }
  0x3e   :  { %p359_p1 = scmp.lt.s32.totalorder %s357_s20, %s353_s19 }
  0x40   :  { %p360_p2 = por %p359_p1, %p358_p0 }
  0x42   :  { %p361_p3 = pnand %p360_p2, %p354_p13 }
  0x44   :  { %364 = shalt.err (!%p361_p3)
}
  0x45   :  { %57 = dma.hbm_to_vmem [thread:$0]  %s487_s5, 16, %s55_s26, [#allocation8]  }
  0x46   :  { %365 = dma.done.wait [#allocation3], 16  }
  0x47   :  { %366 = vsyncadd [#allocation3], 4294967280 }
  0x48   :  { %367 = dma.done.wait [#allocation5], 32  }
  0x49   :  { %368 = vsyncadd [#allocation5], 4294967264 }
  0x4a   :  { %369 = dma.done.wait [#allocation8], 16  }
  0x4b   :  { %370 = vsyncadd [#allocation8], 4294967280  ;;  %v275_v0 = vld [vmem:[%s483_s1] sm:$0xff]   ;;  %v276_v1 = vld [vmem:[%s483_s1 + $0x8] ss:$0 sps:$4 sm:$0xff]   ;;  %vm126_vm0 = vcmask 1043456  }
  0x4c   :  { %v250_v2 = vld [vmem:[%s482_s0] sm:$0xff]   ;;  %262 = vmatprep.subr.bf16.mxu0 %v275_v0  ;;  %v257_v6 = vld [vmem:[%s482_s0 + $0x8] sm:$0xff]   ;;  %v128_v10 = vsel %vm126_vm0, %v276_v1, 0  ;;  %vm119_vm1 = vcmask 195584   ;;  %vm221_vm2 = vcmask 257024  }
  0x4d   :  { %v251_v3 = vunpack.c.l.bf16 %v250_v2  ;;  %v252_v4 = vunpack.c.h.bf16 %v250_v2  ;;  %v233_v5 = vld [vmem:[#allocation2] ss:$0 sm:$0xff]  ;;  %263 = vmatpush3.bf16.msra.mxu0 %v275_v0  ;;  %v234_v7 = vld [vmem:[#allocation4] ss:$0 sm:$0xff]  ;;  %v255_v8 = vunpack.c.l.bf16 %v257_v6  ;;  %v256_v9 = vunpack.c.h.bf16 %v257_v6  ;;  %v239_v25 = vld [vmem:[#allocation6] ss:$0 sm:$0xff] }
  0x4e   :  { %270 = vmatprep.subr.msk.bf16.mxu0 %vm126_vm0, %v276_v1  ;;  %v240_v27 = vld [vmem:[#allocation7] ss:$0 sm:$0xff] }
  0x4f   :  { %v86_v11 = vmul.f32 %v251_v3, %v233_v5  ;;  %v87_v12 = vmul.f32 %v252_v4, %v233_v5  ;;  %v88_v13 = vmul.f32 %v255_v8, %v233_v5  ;;  %v89_v14 = vmul.f32 %v256_v9, %v233_v5 }
  0x51   :  { %v97_v15 = vadd.f32 %v234_v7, %v86_v11  ;;  %v98_v16 = vadd.f32 %v234_v7, %v87_v12  ;;  %265 = vmatpush3.bf16.msra.mxu0 %v128_v10  ;;  %v99_v17 = vadd.f32 %v234_v7, %v88_v13  ;;  %v100_v18 = vadd.f32 %v234_v7, %v89_v14 }
  0x53   :  { %v101_v19 = vmax.f32 %v97_v15, 0.0  ;;  %v102_v20 = vmax.f32 %v98_v16, 0.0  ;;  %v103_v21 = vmax.f32 %v99_v17, 0.0  ;;  %v104_v22 = vmax.f32 %v100_v18, 0.0 }
  0x55   :  { %v105_v23 = vpack.c.bf16 %v102_v20, %v101_v19  ;;  %v106_v24 = vpack.c.bf16 %v104_v22, %v103_v21 }
  0x57   :  { %266 = vmatprep.mubr.msk.bf16.mxu0 %vm119_vm1, %v105_v23 }
  0x58   :  { %267 = vmatmul.mubr.msk.bf16.vlgmr.msra.gmra.mrb[0].mxu0 %vm119_vm1, %v106_v24 }
 0x12b   :  { %v268_v26 = vpop.f32.mrb[0].mxu0 }
 0x12c   :  { %v188_v28 = vmul.f32 %v268_v26, %v239_v25  ;;  %v164_v29 = vpop.f32.mrb[1].mxu0 }
 0x12d   :  { %v186_v30 = vmul.f32 %v239_v25, %v164_v29  ;;  %v269_v31 = vpop.f32.mrb[2].mxu0 }
 0x12e   :  { %v199_v32 = vadd.f32 %v240_v27, %v188_v28  ;;  %v189_v33 = vmul.f32 %v269_v31, %v239_v25  ;;  %v167_v34 = vpop.f32.mrb[3].mxu0 }
 0x12f   :  { %v197_v35 = vadd.f32 %v240_v27, %v186_v30  ;;  %v187_v36 = vmul.f32 %v239_v25, %v167_v34 }
 0x130   :  { %v203_v37 = vmax.f32 %v199_v32, 0.0  ;;  %v200_v38 = vadd.f32 %v240_v27, %v189_v33 }
 0x131   :  { %v201_v39 = vmax.f32 %v197_v35, 0.0  ;;  %v198_v40 = vadd.f32 %v240_v27, %v187_v36 }
 0x132   :  { %v247_v41 = vpack.c.bf16 %v203_v37, %v203_v37  ;;  %v204_v42 = vmax.f32 %v200_v38, 0.0 }
 0x133   :  { %v245_v43 = vpack.c.bf16 %v201_v39, %v201_v39  ;;  %v202_v44 = vmax.f32 %v198_v40, 0.0 }
 0x134   :  { %224 = vst.msk [vmem:[%s488_s6 + $0x8] sm:$0xf] %vm221_vm2, %v247_v41  ;;  %v248_v45 = vpack.c.bf16 %v204_v42, %v204_v42 }
 0x135   :  { %222 = vst.msk [vmem:[%s488_s6] sm:$0xf] %vm221_vm2, %v245_v43  ;;  %v246_v46 = vpack.c.bf16 %v202_v44, %v202_v44 }
 0x136   :  { %225 = vst.msk [vmem:[%s488_s6 + $0xc] sm:$0xf] %vm221_vm2, %v248_v45 }
 0x137   :  { %223 = vst.msk [vmem:[%s488_s6 + $0x4] sm:$0xf] %vm221_vm2, %v246_v46 }
 0x138   :  { %230 = vsyncpa [#allocation3], 1 }
 0x139   :  { %231 = vsyncpa [#allocation5], 1 }
 0x13a   :  { %232 = vsyncpa [#allocation8], 1 }

// kernel: densenet_with_head_forward.41
= control target key start
LH: loop header
LB: loop body
LE: loop exit
PB: predicated region body
PF: predicated region fallthrough
CT: control target
= control target key end

     0   :  { %v98_v0 = vmov 0.0   ;;  %vm99_vm0 = vmmov 0   ;;  %vm29_vm1 = vcmask 261120   ;;  %vm74_vm2 = vcmask 125952   ;;  %s127_s1 = inlined_call_operand.vmem [shape: bf16[32,16], index: 1, kind: input, shape index: {}]   ;;  %s128_s0 = inlined_call_operand.vmem [shape: bf16[8,32], index: 0, kind: input, shape index: {}]   ;;  %s129_s2 = inlined_call_operand.vmem [shape: bf16[8,16], index: 2, kind: output, shape index: {}]  }
   0x1   :  { %86 = vmatprep.subr.bf16.mxu0 %v98_v0  ;;  %v96_v1 = vld [vmem:[%s127_s1] sm:$0xff]   ;;  %90 = vmatprep.mubr.msk.bf16.mxu0 %vm99_vm0, %v98_v0  ;;  %v97_v2 = vld [vmem:[%s127_s1 + $0x8] sm:$0xff]  }
   0x2   :  { %87 = vmatpush3.bf16.msra.mxu0 %v96_v1  ;;  %v12_v3 = vld [vmem:[%s128_s0] sm:$0xf] }
   0x3   :  { %88 = vmatprep.subr.bf16.mxu0 %v98_v0 }
   0x6   :  { %89 = vmatpush3.bf16.msra.mxu0 %v97_v2 }
   0x9   :  { %91 = vmatmul.mubr.msk.bf16.vlgmr.msra.gmra.mrb[0].mxu0 %vm29_vm1, %v12_v3 }
  0xdc   :  { %v67_v4 = vpop.f32.mrb[0].mxu0 }
  0xdd   :  { %v73_v5 = vpack.c.bf16 %v67_v4, %v67_v4  ;;  %v92_v6 = vpop.f32.mrb[1].mxu0 }
  0xde   :  { %v70_v7 = vpop.f32.mrb[2].mxu0 }
  0xdf   :  { %75 = vst.msk [vmem:[%s129_s2] sm:$0xf] %vm74_vm2, %v73_v5  ;;  %v93_v8 = vpop.f32.mrb[3].mxu0 }

// kernel: densenet_with_head_forward.40
= control target key start
LH: loop header
LB: loop body
LE: loop exit
PB: predicated region body
PF: predicated region fallthrough
CT: control target
= control target key end

     0   :  { %vm62_vm0 = vcmask 257024   ;;  %s126_s0 = inlined_call_operand.vmem [shape: bf16[8,32], index: 0, kind: input, shape index: {}]   ;;  %s127_s1 = inlined_call_operand.vmem [shape: bf16[8,32], index: 1, kind: input, shape index: {}]   ;;  %s128_s2 = inlined_call_operand.vmem [shape: bf16[8,32], index: 2, kind: input, shape index: {}]   ;;  %s129_s3 = inlined_call_operand.vmem [shape: bf16[8,32], index: 3, kind: input, shape index: {}]   ;;  %s130_s4 = inlined_call_operand.vmem [shape: f32[1,32], index: 4, kind: input, shape index: {}]   ;;  %s131_s5 = inlined_call_operand.vmem [shape: f32[1,32], index: 5, kind: input, shape index: {}]   ;;  %s132_s6 = inlined_call_operand.vmem [shape: bf16[8,32], index: 6, kind: output, shape index: {}]  }
   0x1   :  { %v68_v0 = vld [vmem:[%s130_s4] ss:$0 sm:$0xff] }
   0x2   :  { %v25_v1 = vld [vmem:[%s126_s0] sm:$0xf] }
   0x3   :  { %v26_v2 = vunpack.c.l.bf16 %v25_v1  ;;  %v42_v3 = vld [vmem:[%s127_s1] sm:$0xf] }
   0x4   :  { %v48_v4 = vld [vmem:[%s128_s2] sm:$0xf]  ;;  %v43_v7 = vunpack.c.l.bf16 %v42_v3 }
   0x5   :  { %v54_v5 = vld [vmem:[%s129_s3] sm:$0xf]  ;;  %v49_v8 = vunpack.c.l.bf16 %v48_v4  ;;  %v33_v10 = vmul.f32 %v68_v0, %v26_v2 }
   0x6   :  { %v69_v6 = vld [vmem:[%s131_s5] ss:$0 sm:$0xff]  ;;  %v55_v9 = vunpack.c.l.bf16 %v54_v5  ;;  %v44_v11 = vmul.f32 %v68_v0, %v43_v7 }
   0x7   :  { %v50_v12 = vmul.f32 %v68_v0, %v49_v8  ;;  %v40_v14 = vadd.f32 %v69_v6, %v33_v10 }
   0x8   :  { %v56_v13 = vmul.f32 %v68_v0, %v55_v9  ;;  %v45_v15 = vadd.f32 %v69_v6, %v44_v11 }
   0x9   :  { %v51_v16 = vadd.f32 %v69_v6, %v50_v12  ;;  %v41_v18 = vmax.f32 %v40_v14, 0.0 }
   0xa   :  { %v57_v17 = vadd.f32 %v69_v6, %v56_v13  ;;  %v46_v19 = vmax.f32 %v45_v15, 0.0 }
   0xb   :  { %v52_v20 = vmax.f32 %v51_v16, 0.0 }
   0xc   :  { %v47_v21 = vadd.f32 %v46_v19, %v41_v18  ;;  %v58_v22 = vmax.f32 %v57_v17, 0.0 }
   0xe   :  { %v53_v23 = vadd.f32 %v52_v20, %v47_v21 }
  0x10   :  { %v59_v24 = vadd.f32 %v58_v22, %v53_v23 }
  0x12   :  { %v60_v25 = vmul.f32 0.25, %v59_v24 }
  0x14   :  { %v61_v26 = vpack.c.bf16 %v60_v25, %v60_v25 }
  0x16   :  { %63 = vst.msk [vmem:[%s132_s6] sm:$0xf] %vm62_vm0, %v61_v26 }

// kernel: densenet_with_head_forward.42
= control target key start
LH: loop header
LB: loop body
LE: loop exit
PB: predicated region body
PF: predicated region fallthrough
CT: control target
= control target key end

     0   :  { %v137_v0 = vmov 0.0   ;;  %vm138_vm0 = vmmov 0   ;;  %vm52_vm1 = vcmask 130048   ;;  %vm114_vm2 = vcmask 257024   ;;  %s195_s1 = inlined_call_operand.vmem [shape: bf16[16,32], index: 1, kind: input, shape index: {}]   ;;  %s196_s0 = inlined_call_operand.vmem [shape: bf16[8,16], index: 0, kind: input, shape index: {}]   ;;  %s197_s2 = inlined_call_operand.vmem [shape: f32[1,16], index: 2, kind: input, shape index: {}]   ;;  %s198_s3 = inlined_call_operand.vmem [shape: f32[1,16], index: 3, kind: input, shape index: {}]   ;;  %s199_s4 = inlined_call_operand.vmem [shape: f32[1,32], index: 4, kind: input, shape index: {}]   ;;  %s200_s5 = inlined_call_operand.vmem [shape: f32[1,32], index: 5, kind: input, shape index: {}]   ;;  %s201_s6 = inlined_call_operand.vmem [shape: bf16[8,32], index: 6, kind: output, shape index: {}]  }
   0x1   :  { %128 = vmatprep.subr.bf16.mxu0 %v137_v0  ;;  %v136_v1 = vld [vmem:[%s195_s1] sm:$0xff]   ;;  %130 = vmatprep.mubr.msk.bf16.mxu0 %vm138_vm0, %v137_v0 }
   0x2   :  { %v24_v2 = vld [vmem:[%s196_s0] sm:$0xf]  ;;  %129 = vmatpush3.bf16.msra.mxu0 %v136_v1 }
   0x3   :  { %v120_v3 = vld [vmem:[%s197_s2] ss:$0 sm:$0xff]  ;;  %v25_v4 = vunpack.c.l.bf16 %v24_v2 }
   0x4   :  { %v121_v5 = vld [vmem:[%s198_s3] ss:$0 sm:$0xff] }
   0x5   :  { %v33_v6 = vmul.f32 %v120_v3, %v25_v4  ;;  %v124_v10 = vld [vmem:[%s199_s4] ss:$0 sm:$0xff] }
   0x6   :  { %v125_v12 = vld [vmem:[%s200_s5] ss:$0 sm:$0xff] }
   0x7   :  { %v41_v7 = vadd.f32 %v121_v5, %v33_v6 }
   0x9   :  { %v42_v8 = vmax.f32 %v41_v7, 0.0 }
   0xb   :  { %v43_v9 = vpack.c.bf16 %v42_v8, %v42_v8 }
   0xd   :  { %131 = vmatmul.mubr.msk.bf16.vlgmr.msra.gmra.mrb[0].mxu0 %vm52_vm1, %v43_v9 }
  0xe0   :  { %v90_v11 = vpop.f32.mrb[0].mxu0 }
  0xe1   :  { %v103_v13 = vmul.f32 %v124_v10, %v90_v11  ;;  %v132_v14 = vpop.f32.mrb[1].mxu0 }
  0xe2   :  { %v93_v15 = vpop.f32.mrb[2].mxu0 }
  0xe3   :  { %v111_v16 = vadd.f32 %v125_v12, %v103_v13  ;;  %v133_v17 = vpop.f32.mrb[3].mxu0 }
  0xe5   :  { %v112_v18 = vmax.f32 %v111_v16, 0.0 }
  0xe7   :  { %v113_v19 = vpack.c.bf16 %v112_v18, %v112_v18 }
  0xe9   :  { %115 = vst.msk [vmem:[%s201_s6] sm:$0xf] %vm114_vm2, %v113_v19 }

// kernel: densenet_with_head_forward.44
= control target key start
LH: loop header
LB: loop body
LE: loop exit
PB: predicated region body
PF: predicated region fallthrough
CT: control target
= control target key end

     0   :  { %v150_v0 = vmov 0.0   ;;  %vm60_vm0 = vcmask 1043456   ;;  %vm151_vm1 = vmmov 0   ;;  %vm56_vm2 = vcmask 195584   ;;  %s211_s1 = inlined_call_operand.vmem [shape: bf16[24,32], index: 1, kind: input, shape index: {}]   ;;  %s212_s0 = inlined_call_operand.vmem [shape: bf16[8,24], index: 0, kind: input, shape index: {}]   ;;  %s213_s2 = inlined_call_operand.vmem [shape: f32[1,24], index: 2, kind: input, shape index: {}]   ;;  %s214_s3 = inlined_call_operand.vmem [shape: f32[1,24], index: 3, kind: input, shape index: {}]   ;;  %s215_s4 = inlined_call_operand.vmem [shape: f32[1,32], index: 4, kind: input, shape index: {}]   ;;  %s216_s5 = inlined_call_operand.vmem [shape: f32[1,32], index: 5, kind: input, shape index: {}]   ;;  %s217_s6 = inlined_call_operand.vmem [shape: bf16[8,32], index: 6, kind: output, shape index: {}]  }
   0x1   :  { %138 = vmatprep.subr.bf16.mxu0 %v150_v0  ;;  %v148_v1 = vld [vmem:[%s211_s1] sm:$0xff]   ;;  %142 = vmatprep.mubr.msk.bf16.mxu0 %vm151_vm1, %v150_v0  ;;  %v149_v2 = vld [vmem:[%s211_s1 + $0x8] ss:$0 sps:$4 sm:$0xff]   ;;  %vm122_vm3 = vcmask 257024  }
   0x2   :  { %v24_v3 = vld [vmem:[%s212_s0] sm:$0xf]  ;;  %139 = vmatpush3.bf16.msra.mxu0 %v148_v1  ;;  %v62_v6 = vsel %vm60_vm0, %v149_v2, 0 }
   0x3   :  { %v25_v4 = vunpack.c.l.bf16 %v24_v3  ;;  %v128_v5 = vld [vmem:[%s213_s2] ss:$0 sm:$0xff]  ;;  %140 = vmatprep.subr.bf16.mxu0 %v150_v0 }
   0x4   :  { %v129_v7 = vld [vmem:[%s214_s3] ss:$0 sm:$0xff] }
   0x5   :  { %v33_v8 = vmul.f32 %v128_v5, %v25_v4  ;;  %v133_v12 = vld [vmem:[%s215_s4] ss:$0 sm:$0xff] }
   0x6   :  { %141 = vmatpush3.bf16.msra.mxu0 %v62_v6  ;;  %v134_v14 = vld [vmem:[%s216_s5] ss:$0 sm:$0xff] }
   0x7   :  { %v41_v9 = vadd.f32 %v129_v7, %v33_v8 }
   0x9   :  { %v42_v10 = vmax.f32 %v41_v9, 0.0 }
   0xb   :  { %v43_v11 = vpack.c.bf16 %v42_v10, %v42_v10 }
   0xd   :  { %143 = vmatmul.mubr.msk.bf16.vlgmr.msra.gmra.mrb[0].mxu0 %vm56_vm2, %v43_v11 }
  0xe0   :  { %v98_v13 = vpop.f32.mrb[0].mxu0 }
  0xe1   :  { %v111_v15 = vmul.f32 %v133_v12, %v98_v13  ;;  %v144_v16 = vpop.f32.mrb[1].mxu0 }
  0xe2   :  { %v101_v17 = vpop.f32.mrb[2].mxu0 }
  0xe3   :  { %v119_v18 = vadd.f32 %v134_v14, %v111_v15  ;;  %v145_v19 = vpop.f32.mrb[3].mxu0 }
  0xe5   :  { %v120_v20 = vmax.f32 %v119_v18, 0.0 }
  0xe7   :  { %v121_v21 = vpack.c.bf16 %v120_v20, %v120_v20 }
  0xe9   :  { %123 = vst.msk [vmem:[%s217_s6] sm:$0xf] %vm122_vm3, %v121_v21 }

// kernel: densenet_with_head_forward.43
= control target key start
LH: loop header
LB: loop body
LE: loop exit
PB: predicated region body
PF: predicated region fallthrough
CT: control target
= control target key end

     0   :  { %v337_v1 = vmov 0.0   ;;  %vm338_vm0 = vmmov 0   ;;  %vm168_vm1 = vcmask 261120   ;;  %vm253_vm2 = vcmask 60416   ;;  %s417_s1 = inlined_call_operand.vmem [shape: bf16[288,8], index: 1, kind: input, shape index: {}]   ;;  %s418_s0 = inlined_call_operand.vmem [shape: bf16[8,288], index: 0, kind: input, shape index: {}]   ;;  %s419_s2 = inlined_call_operand.vmem [shape: bf16[8,8], index: 2, kind: output, shape index: {}]  }
   0x1   :  { %v316_v0 = vld [vmem:[%s417_s1 + $0x40] sm:$0xff]   ;;  %306 = vmatprep.subr.bf16.mxu1 %v337_v1  ;;  %310 = vmatprep.mubr.msk.bf16.mxu1 %vm338_vm0, %v337_v1  ;;  %v318_v3 = vld [vmem:[%s417_s1 + $0x48] sm:$0xff]   ;;  %v320_v5 = vld [vmem:[%s417_s1 + $0x50] sm:$0xff]  }
   0x2   :  { %v317_v2 = vld [vmem:[%s417_s1] sm:$0xff]   ;;  %281 = vmatprep.subr.bf16.mxu0 %v316_v0  ;;  %v319_v4 = vld [vmem:[%s417_s1 + $0x8] sm:$0xff]   ;;  %v321_v6 = vld [vmem:[%s417_s1 + $0x10] sm:$0xff]  }
   0x3   :  { %282 = vmatpush3.bf16.msra.mxu0 %v317_v2  ;;  %v322_v7 = vld [vmem:[%s417_s1 + $0x58] sm:$0xff]   ;;  %v324_v9 = vld [vmem:[%s417_s1 + $0x60] sm:$0xff]   ;;  %v326_v12 = vld [vmem:[%s417_s1 + $0x68] sm:$0xff]  }
   0x4   :  { %283 = vmatprep.subr.bf16.mxu0 %v318_v3  ;;  %v323_v8 = vld [vmem:[%s417_s1 + $0x18] sm:$0xff]   ;;  %v330_v10 = vld [vmem:[%s417_s1 + $0x80] sm:$0xff]   ;;  %v333_v13 = vld [vmem:[%s417_s1 + $0x88] sm:$0xff]  }
   0x5   :  { %v325_v11 = vld [vmem:[%s417_s1 + $0x20] sm:$0xff]   ;;  %307 = vmatpush3.bf16.msra.mxu1 %v330_v10  ;;  %v327_v15 = vld [vmem:[%s417_s1 + $0x28] sm:$0xff]   ;;  %v328_v18 = vld [vmem:[%s417_s1 + $0x70] sm:$0xff]  }
   0x6   :  { %308 = vmatprep.subr.bf16.mxu1 %v337_v1  ;;  %v12_v14 = vld [vmem:[%s418_s0] sm:$0xff]  ;;  %v336_v17 = vld [vmem:[%s418_s0 + $0x8] ss:$0 sps:$4 sm:$0xff]   ;;  %v329_v19 = vld [vmem:[%s417_s1 + $0x30] sm:$0xff]  }
   0x7   :  { %284 = vmatpush3.bf16.msra.mxu0 %v319_v4  ;;  %v260_v16 = vcombine.high %v12_v14, %v12_v14  ;;  %v331_v20 = vld [vmem:[%s417_s1 + $0x78] sm:$0xff]   ;;  %v259_v22 = vcombine.low %v12_v14, %v12_v14 }
   0x8   :  { %285 = vmatprep.subr.bf16.mxu0 %v320_v5  ;;  %v332_v21 = vld [vmem:[%s417_s1 + $0x38] sm:$0xff]  }
   0x9   :  { %309 = vmatpush3.bf16.msra.mxu1 %v333_v13  ;;  %204 = vmatprep.mubr.bf16.mxu0 %v260_v16 }
   0xb   :  { %286 = vmatpush3.bf16.msra.mxu0 %v321_v6 }
   0xc   :  { %287 = vmatprep.subr.bf16.mxu0 %v322_v7  ;;  %311 = vmatmul.mubr.msk.bf16.vlgmr.msra.gmra.mrb[0].mxu1 %vm168_vm1, %v336_v17 }
   0xf   :  { %288 = vmatpush3.bf16.msra.mxu0 %v323_v8 }
  0x10   :  { %289 = vmatprep.subr.bf16.mxu0 %v324_v9 }
  0x13   :  { %290 = vmatpush3.bf16.msra.mxu0 %v325_v11 }
  0x14   :  { %291 = vmatprep.subr.bf16.mxu0 %v326_v12 }
  0x17   :  { %292 = vmatpush3.bf16.msra.mxu0 %v327_v15 }
  0x18   :  { %293 = vmatprep.subr.bf16.mxu0 %v328_v18 }
  0x1b   :  { %294 = vmatpush3.bf16.msra.mxu0 %v329_v19 }
  0x1c   :  { %295 = vmatprep.subr.bf16.mxu0 %v331_v20 }
  0x1f   :  { %296 = vmatpush3.bf16.msra.mxu0 %v332_v21 }
  0x22   :  { %205 = vmatmul.mubr.bf16.vlgmr.msra.gmra.mrb[0].mxu0 %v259_v22 }
  0xdf   :  { %v246_v23 = vpop.f32.mrb[0].mxu1 }
  0xe0   :  { %v312_v24 = vpop.f32.mrb[1].mxu1 }
  0xe1   :  { %v249_v25 = vpop.f32.mrb[2].mxu1 }
  0xe2   :  { %v313_v26 = vpop.f32.mrb[3].mxu1 }
  0xf5   :  { %v297_v27 = vpop.f32.mrb[0].mxu0 }
  0xf6   :  { %v298_v28 = vpop.f32.mrb[1].mxu0 }
  0xf7   :  { %v299_v29 = vadd.f32 %v298_v28, %v297_v27  ;;  %v300_v30 = vpop.f32.mrb[2].mxu0 }
  0xf8   :  { %v301_v31 = vpop.f32.mrb[3].mxu0 }
  0xf9   :  { %v247_v32 = vadd.f32 %v299_v29, %v246_v23 }
  0xfb   :  { %v252_v33 = vpack.c.bf16 %v247_v32, %v247_v32 }
  0xfd   :  { %254 = vst.msk [vmem:[%s419_s2] sm:$0xf] %vm253_vm2, %v252_v33 }

// kernel: densenet_with_head_forward.52
= control target key start
LH: loop header
LB: loop body
LE: loop exit
PB: predicated region body
PF: predicated region fallthrough
CT: control target
= control target key end

     0   :  { %v30_v0 = vlaneseq  ;;  %vm38_vm0 = vcmask 1041409   ;;  %vm41_vm1 = vcmask 254976   ;;  %s82_s0 = inlined_call_operand.vmem [shape: bf16[2,1,32], index: 0, kind: input, shape index: {}]   ;;  %s83_s1 = inlined_call_operand.vmem [shape: f32[1,1,32], index: 1, kind: input, shape index: {}]   ;;  %s84_s2 = inlined_call_operand.vmem [shape: f32[1,1,32], index: 2, kind: input, shape index: {}]   ;;  %s85_s3 = inlined_call_operand.vmem [shape: f32[2,32], index: 3, kind: output, shape index: {}]  }
   0x1   :  { %v14_v1 = vld [vmem:[%s82_s0] sm:$0x1]  ;;  %v15_v2 = vld [vmem:[%s82_s0 + $0x1] sm:$0x1] }
   0x2   :  { %v18_v3 = vld [vmem:[%s83_s1] sm:$0x1]  ;;  %v16_v4 = vunpack.c.l.bf16 %v14_v1  ;;  %v17_v5 = vunpack.c.l.bf16 %v15_v2  ;;  %v31_v6 = vshrl.u32 %v30_v0, 7 }
   0x3   :  { %v21_v7 = vld [vmem:[%s84_s2] sm:$0x1] }
   0x4   :  { %v19_v8 = vmul.f32 %v18_v3, %v16_v4  ;;  %v20_v9 = vmul.f32 %v18_v3, %v17_v5  ;;  %v32_v12 = vsub.s32 0, %v31_v6 }
   0x6   :  { %v22_v10 = vadd.f32 %v21_v7, %v19_v8  ;;  %v23_v11 = vadd.f32 %v21_v7, %v20_v9 }
   0x8   :  { %v24_v13 = vmax.f32 %v22_v10, 0.0  ;;  %v25_v14 = vmax.f32 %v23_v11, 0.0 }
   0xa   :  { %v33_v15 = vrot.slane %v24_v13, %v32_v12  ;;  %v37_v16 = vrot.slane %v25_v14, %v32_v12 }
   0xc   :  { %v39_v17 = vsel %vm38_vm0, %v37_v16, %v33_v15 }
   0xd   :  { %42 = vst.msk [vmem:[%s85_s3] sm:$0x3] %vm41_vm1, %v39_v17 }

// kernel: densenet_with_head_forward.54
= control target key start
LH: loop header
LB: loop body
LE: loop exit
PB: predicated region body
PF: predicated region fallthrough
CT: control target
= control target key end

     0   :  { %v180_v0 = vmov 0.0|0.0   ;;  %vm181_vm0 = vmmov 0   ;;  %v182_v4 = vmov 0.0   ;;  %vm36_vm1 = vcmask 523264   ;;  %s252_s1 = inlined_call_operand.vmem [shape: f32[64,32], index: 1, kind: input, shape index: {}]   ;;  %s253_s0 = inlined_call_operand.vmem [shape: f32[2,64], index: 0, kind: input, shape index: {}]   ;;  %s254_s2 = inlined_call_operand.vmem [shape: f32[1,32], index: 2, kind: input, shape index: {}]   ;;  %s255_s3 = inlined_call_operand.vmem [shape: f32[1,32], index: 3, kind: input, shape index: {}]   ;;  %s256_s4 = inlined_call_operand.vmem [shape: f32[1,32], index: 4, kind: input, shape index: {}]   ;;  %s257_s5 = inlined_call_operand.vmem [shape: f32[2,32], index: 5, kind: output, shape index: {}]  }
   0x1   :  { %165 = vmatprep.subr.bf16.mxu0 %v180_v0  ;;  %v21_v1 = vld [vmem:[%s252_s1] sm:$0xff]  ;;  %v22_v2 = vld [vmem:[%s252_s1 + $0x8] sm:$0xff]  ;;  %v23_v3 = vld [vmem:[%s252_s1 + $0x10] sm:$0xff]  ;;  %162 = vmatprep.mubr.msk.f32.mxu0 %vm181_vm0, %v182_v4  ;;  %vm127_vm2 = vcmask 254976  }
   0x2   :  { %v166_v5 = vpack.c.bf16 %v22_v2, %v21_v1  ;;  %v24_v6 = vld [vmem:[%s252_s1 + $0x18] sm:$0xff]  ;;  %v25_v8 = vld [vmem:[%s252_s1 + $0x20] sm:$0xff]  ;;  %v26_v9 = vld [vmem:[%s252_s1 + $0x28] sm:$0xff] }
   0x3   :  { %v169_v7 = vpack.c.bf16 %v24_v6, %v23_v3  ;;  %v172_v10 = vpack.c.bf16 %v26_v9, %v25_v8  ;;  %v27_v11 = vld [vmem:[%s252_s1 + $0x30] sm:$0xff]  ;;  %v28_v12 = vld [vmem:[%s252_s1 + $0x38] sm:$0xff]  ;;  %v20_v14 = vld [vmem:[%s253_s0] sm:$0x3] }
   0x4   :  { %167 = vmatpush3.bf16.msra.mxu0 %v166_v5  ;;  %v175_v13 = vpack.c.bf16 %v28_v12, %v27_v11  ;;  %v133_v15 = vld [vmem:[%s254_s2] ss:$0 sm:$0xff] }
   0x5   :  { %168 = vmatprep.subr.bf16.mxu0 %v180_v0  ;;  %v135_v19 = vld [vmem:[%s255_s3] ss:$0 sm:$0xff] }
   0x6   :  { %v136_v21 = vld [vmem:[%s256_s4] ss:$0 sm:$0xff] }
   0x8   :  { %170 = vmatpush3.bf16.msra.mxu0 %v169_v7 }
   0x9   :  { %171 = vmatprep.subr.bf16.mxu0 %v180_v0 }
   0xc   :  { %173 = vmatpush3.bf16.msra.mxu0 %v172_v10 }
   0xd   :  { %174 = vmatprep.subr.bf16.mxu0 %v180_v0 }
  0x10   :  { %176 = vmatpush3.bf16.msra.mxu0 %v175_v13 }
  0x13   :  { %163 = vmatmul.mubr.msk.f32.vlgmr.msra.gmra.mrb[0].mxu0 %vm36_vm1, %v20_v14 }
  0xe6   :  { %v106_v16 = vpop.f32.mrb[0].mxu0 }
  0xe7   :  { %v107_v17 = vadd.f32 %v133_v15, %v106_v16  ;;  %v164_v18 = vpop.f32.mrb[1].mxu0 }
  0xe9   :  { %v110_v20 = vmax.f32 %v107_v17, 0.0 }
  0xeb   :  { %v118_v22 = vmul.f32 %v135_v19, %v110_v20 }
  0xed   :  { %v126_v23 = vadd.f32 %v136_v21, %v118_v22 }
  0xef   :  { %128 = vst.msk [vmem:[%s257_s5] sm:$0x3] %vm127_vm2, %v126_v23 }

// kernel: densenet_with_head_forward.53
= control target key start
LH: loop header
LB: loop body
LE: loop exit
PB: predicated region body
PF: predicated region fallthrough
CT: control target
= control target key end

     0   :  { %v158_v0 = vmov 0.0|0.0   ;;  %vm159_vm0 = vmmov 0   ;;  %v160_v4 = vmov 0.0   ;;  %vm32_vm1 = vcmask 261120   ;;  %s218_s1 = inlined_call_operand.vmem [shape: f32[32,64], index: 1, kind: input, shape index: {}]   ;;  %s219_s0 = inlined_call_operand.vmem [shape: f32[2,32], index: 0, kind: input, shape index: {}]   ;;  %s220_s2 = inlined_call_operand.vmem [shape: f32[1,64], index: 2, kind: input, shape index: {}]   ;;  %s221_s3 = inlined_call_operand.vmem [shape: f32[1,64], index: 3, kind: input, shape index: {}]   ;;  %s222_s4 = inlined_call_operand.vmem [shape: f32[1,64], index: 4, kind: input, shape index: {}]   ;;  %s223_s5 = inlined_call_operand.vmem [shape: f32[2,64], index: 5, kind: output, shape index: {}]  }
   0x1   :  { %149 = vmatprep.subr.bf16.mxu0 %v158_v0  ;;  %v21_v1 = vld [vmem:[%s218_s1] sm:$0xff]  ;;  %v22_v2 = vld [vmem:[%s218_s1 + $0x8] sm:$0xff]  ;;  %v23_v3 = vld [vmem:[%s218_s1 + $0x10] sm:$0xff]  ;;  %146 = vmatprep.mubr.msk.f32.mxu0 %vm159_vm0, %v160_v4  ;;  %vm123_vm2 = vcmask 517120  }
   0x2   :  { %v150_v5 = vpack.c.bf16 %v22_v2, %v21_v1  ;;  %v24_v6 = vld [vmem:[%s218_s1 + $0x18] sm:$0xff]  ;;  %v20_v8 = vld [vmem:[%s219_s0] sm:$0x3] }
   0x3   :  { %v153_v7 = vpack.c.bf16 %v24_v6, %v23_v3  ;;  %v129_v9 = vld [vmem:[%s220_s2] ss:$0 sm:$0xff] }
   0x4   :  { %151 = vmatpush3.bf16.msra.mxu0 %v150_v5  ;;  %v131_v13 = vld [vmem:[%s221_s3] ss:$0 sm:$0xff] }
   0x5   :  { %152 = vmatprep.subr.bf16.mxu0 %v158_v0  ;;  %v132_v15 = vld [vmem:[%s222_s4] ss:$0 sm:$0xff] }
   0x8   :  { %154 = vmatpush3.bf16.msra.mxu0 %v153_v7 }
   0xb   :  { %147 = vmatmul.mubr.msk.f32.vlgmr.msra.gmra.mrb[0].mxu0 %vm32_vm1, %v20_v8 }
  0xde   :  { %v102_v10 = vpop.f32.mrb[0].mxu0 }
  0xdf   :  { %v103_v11 = vadd.f32 %v129_v9, %v102_v10  ;;  %v148_v12 = vpop.f32.mrb[1].mxu0 }
  0xe1   :  { %v106_v14 = vmax.f32 %v103_v11, 0.0 }
  0xe3   :  { %v114_v16 = vmul.f32 %v131_v13, %v106_v14 }
  0xe5   :  { %v122_v17 = vadd.f32 %v132_v15, %v114_v16 }
  0xe7   :  { %124 = vst.msk [vmem:[%s223_s5] sm:$0x3] %vm123_vm2, %v122_v17 }

// kernel: densenet_with_head_forward.55
= control target key start
LH: loop header
LB: loop body
LE: loop exit
PB: predicated region body
PF: predicated region fallthrough
CT: control target
= control target key end

     0   :  { %v108_v0 = vmov 0.0   ;;  %vm109_vm0 = vmmov 0   ;;  %vm26_vm1 = vcmask 261120   ;;  %vm86_vm2 = vcmask 80896   ;;  %s159_s1 = inlined_call_operand.vmem [shape: f32[32,10], index: 1, kind: input, shape index: {}]   ;;  %s160_s0 = inlined_call_operand.vmem [shape: f32[8,32], index: 0, kind: input, shape index: {}]   ;;  %s161_s2 = inlined_call_operand.vmem [shape: f32[1,10], index: 2, kind: input, shape index: {}]   ;;  %s162_s3 = inlined_call_operand.vmem [shape: f32[1,10], index: 3, kind: input, shape index: {}]   ;;  %s163_s4 = inlined_call_operand.vmem [shape: f32[8,10], index: 4, kind: output, shape index: {}]  }
   0x1   :  { %98 = vmatprep.subr.bf16.mxu0 %v108_v0  ;;  %v20_v1 = vld [vmem:[%s159_s1] sm:$0xff]  ;;  %v21_v2 = vld [vmem:[%s159_s1 + $0x8] sm:$0xff]  ;;  %v22_v3 = vld [vmem:[%s159_s1 + $0x10] sm:$0xff]  ;;  %102 = vmatprep.mubr.msk.bf16.mxu0 %vm109_vm0, %v108_v0 }
   0x2   :  { %v24_v4 = vpack.c.bf16 %v21_v2, %v20_v1  ;;  %v23_v5 = vld [vmem:[%s159_s1 + $0x18] sm:$0xff]  ;;  %v18_v7 = vld [vmem:[%s160_s0] sm:$0xff] }
   0x3   :  { %v25_v6 = vpack.c.bf16 %v23_v5, %v22_v3  ;;  %v19_v8 = vpack.c.bf16 %v18_v7, %v18_v7  ;;  %v93_v9 = vld [vmem:[%s161_s2] ss:$0 sm:$0xff] }
   0x4   :  { %99 = vmatpush3.bf16.msra.mxu0 %v24_v4  ;;  %v94_v11 = vld [vmem:[%s162_s3] ss:$0 sm:$0xff] }
   0x5   :  { %100 = vmatprep.subr.bf16.mxu0 %v108_v0 }
   0x8   :  { %101 = vmatpush3.bf16.msra.mxu0 %v25_v6 }
   0xb   :  { %103 = vmatmul.mubr.msk.bf16.vlgmr.msra.gmra.mrb[0].mxu0 %vm26_vm1, %v19_v8 }
  0xde   :  { %v64_v10 = vpop.f32.mrb[0].mxu0 }
  0xdf   :  { %v77_v12 = vmul.f32 %v93_v9, %v64_v10  ;;  %v104_v13 = vpop.f32.mrb[1].mxu0 }
  0xe0   :  { %v67_v14 = vpop.f32.mrb[2].mxu0 }
  0xe1   :  { %v85_v15 = vadd.f32 %v94_v11, %v77_v12  ;;  %v105_v16 = vpop.f32.mrb[3].mxu0 }
  0xe3   :  { %87 = vst.msk [vmem:[%s163_s4] sm:$0xff] %vm86_vm2, %v85_v15 }

</bundles_post_ra>
